<compile_context>
chip_gen: v5e
topology: v5e:2x2
jax: 0.10.0
libtpu: 0.0.40
codegen_flags: <defaults>
</compile_context>

<pallas_src>
import functools

import numpy as np
import jax
import jax.numpy as jnp
from jax.experimental import pallas as pl
from jax.experimental.pallas import tpu as pltpu


LANES = 128
SUBLANES = 8


# ----------------------------------------------------------------------------
# Pallas kernel: embedding lookup (tiny table in SMEM, pure select chain)
# ----------------------------------------------------------------------------
def _embedding_lookup_kernel(num_emb, table_ref, idx_ref, out_ref):
    # table_ref: SMEM (num_emb,) float32  -- nn.Embedding weight (dim=1, squeezed)
    # idx_ref  : VMEM (blk_rows, 128) int32
    # out_ref  : VMEM (blk_rows, 128) float32
    idx = idx_ref[...]
    # Pure select chain: 1 compare + 1 select per table entry (no add).
    # Indices >= num_emb (never produced by the module) would map to 0.0.
    acc = jnp.where(idx == 0, table_ref[0], jnp.float32(0.0))
    for k in range(1, num_emb):
        acc = jnp.where(idx == k, table_ref[k], acc)
    out_ref[...] = acc


def _pad_lane_dense(dist_2d_np):
    """Flatten an (N, M) int distance matrix and pad to a lane-dense
    (rows, 128) int32 array with rows a multiple of 8.  Build-time only."""
    flat = np.asarray(dist_2d_np, np.int32).reshape(-1)
    n = flat.shape[0]
    rows = -(-n // LANES)                       # ceil-div to 128 lanes
    rows = -(-rows // SUBLANES) * SUBLANES      # round up to multiple of 8
    padded = np.zeros(rows * LANES, np.int32)   # pad with index 0 (valid)
    padded[:n] = flat
    return jnp.asarray(padded.reshape(rows, LANES))


def embedding_lookup_padded(table_1d, idx_padded, out_shape):
    """out[i, j] = table_1d[dist[i, j]] using a lane-dense padded index tile."""
    num_emb = int(table_1d.shape[0])
    rows, lanes = idx_padded.shape
    # 2 parallel row blocks (use both v7x TensorCores, pipeline DMA on v5e/v6e)
    # as long as each block stays a multiple of 8 sublanes; else a single block.
    nblk = 2 if (rows % (2 * SUBLANES) == 0) else 1
    blk_rows = rows // nblk
    kernel = functools.partial(_embedding_lookup_kernel, num_emb)
    out = pl.pallas_call(
        kernel,
        out_shape=jax.ShapeDtypeStruct((rows, lanes), jnp.float32),
        grid=(nblk,),
        in_specs=[
            # tiny table -> scalar memory, passed whole to every block
            pl.BlockSpec(memory_space=pltpu.MemorySpace.SMEM),
            pl.BlockSpec((blk_rows, lanes), lambda i: (i, 0)),
        ],
        out_specs=pl.BlockSpec((blk_rows, lanes), lambda i: (i, 0)),
        compiler_params=pltpu.CompilerParams(
            dimension_semantics=("parallel",)),
    )(table_1d.astype(jnp.float32), idx_padded)
    n, m = out_shape
    return out.reshape(-1)[: n * m].reshape(n, m)


# ----------------------------------------------------------------------------
# Module equivalent
# ----------------------------------------------------------------------------
class AttentionEmbeddingJAX:
    """JAX/Pallas port of AttentionEmbdding(skel='NTU')."""

    def __init__(self, key):
        self.max_par_dist = 14
        self.max_spar_dist = 42

        # --- synthetic deterministic Graph.minDist tables (see TODO above) ---
        v25 = np.arange(25)
        v10 = np.arange(10)
        v5 = np.arange(5)
        # clamp so all embedding indices stay in range (< 14 / < 42)
        minDist0 = np.minimum(np.abs(v25[:, None] - v25[None, :]), 12)
        minDist1 = np.minimum(np.abs(v10[:, None] - v10[None, :]), 9)
        minDist2 = np.abs(v5[:, None] - v5[None, :])

        def build_dist(minDist, n_nodes, total, temporal_fn):
            i = np.arange(total)
            t = i // n_nodes
            v = i % n_nodes
            spatial = minDist[v[:, None], v[None, :]]
            temporal = temporal_fn(np.abs(t[:, None] - t[None, :]))
            return (spatial + temporal).astype(np.int32)

        # init_dist(skel='NTU') equivalents
        d_par_0 = build_dist(minDist0, 25, 375, lambda d: d // 10)
        d_par_1 = build_dist(minDist1, 10, 100, lambda d: d // 10)
        d_par_2 = build_dist(minDist2, 5, 25, lambda d: d // 10)
        d_spar_0 = build_dist(minDist0, 25, 375, lambda d: d * 2)
        d_spar_1 = build_dist(minDist1, 10, 100, lambda d: (d * 1.5).astype(np.int64))
        d_spar_2 = build_dist(minDist2, 5, 25, lambda d: (d * 1.5).astype(np.int64))

        # original-shape matrices (reference / external use)
        self.dist_par_0 = jnp.asarray(d_par_0)
        self.dist_par_1 = jnp.asarray(d_par_1)
        self.dist_par_2 = jnp.asarray(d_par_2)
        self.dist_spar_0 = jnp.asarray(d_spar_0)
        self.dist_spar_1 = jnp.asarray(d_spar_1)
        self.dist_spar_2 = jnp.asarray(d_spar_2)

        # lane-dense padded copies consumed by the kernel (build-time constant)
        self.dist_par_0_p = _pad_lane_dense(d_par_0)     # (1104, 128)
        self.dist_par_1_p = _pad_lane_dense(d_par_1)     # (80, 128)
        self.dist_par_2_p = _pad_lane_dense(d_par_2)     # (8, 128)
        self.dist_spar_0_p = _pad_lane_dense(d_spar_0)   # (1104, 128)
        self.dist_spar_1_p = _pad_lane_dense(d_spar_1)   # (80, 128)
        self.dist_spar_2_p = _pad_lane_dense(d_spar_2)   # (8, 128)

        # --- nn.Embedding weights: normal(0, 0.02), shape (num_emb, 1) -> (num_emb,)
        keys = jax.random.split(key, 6)
        mk = lambda k, n: (jax.random.normal(k, (n, 1), jnp.float32) * 0.02)[:, 0]
        self.par_encoder0 = mk(keys[0], self.max_par_dist)
        self.spar_encoder0 = mk(keys[1], self.max_spar_dist)
        self.par_encoder1 = mk(keys[2], self.max_par_dist)
        self.spar_encoder1 = mk(keys[3], self.max_spar_dist)
        self.par_encoder2 = mk(keys[4], self.max_par_dist)
        self.spar_encoder2 = mk(keys[5], self.max_spar_dist)

    def forward(self, switched, stage):
        if not switched:
            if stage == 0:
                return embedding_lookup_padded(
                    self.par_encoder0, self.dist_par_0_p, (375, 375))
            elif stage == 1:
                return embedding_lookup_padded(
                    self.par_encoder1, self.dist_par_1_p, (100, 100))
            elif stage == 2:
                return embedding_lookup_padded(
                    self.par_encoder2, self.dist_par_2_p, (25, 25))
            else:
                raise AssertionError
        elif stage == 0:
            return embedding_lookup_padded(
                self.spar_encoder0, self.dist_spar_0_p, (375, 375))
        elif stage == 1:
            return embedding_lookup_padded(
                self.spar_encoder1, self.dist_spar_1_p, (100, 100))
        elif stage == 2:
            return embedding_lookup_padded(
                self.spar_encoder2, self.dist_spar_2_p, (25, 25))
        else:
            raise AssertionError


# ----------------------------------------------------------------------------
# Driver
# ----------------------------------------------------------------------------
if __name__ == "__main__":
    key = jax.random.PRNGKey(0)
    module = AttentionEmbeddingJAX(key)

    cases = {
        (False, 0): (module.par_encoder0, module.dist_par_0),
        (False, 1): (module.par_encoder1, module.dist_par_1),
        (False, 2): (module.par_encoder2, module.dist_par_2),
        (True, 0): (module.spar_encoder0, module.dist_spar_0),
        (True, 1): (module.spar_encoder1, module.dist_spar_1),
        (True, 2): (module.spar_encoder2, module.dist_spar_2),
    }

    ok = True
    for (switched, stage), (table, dist) in cases.items():
        out = module.forward(switched, stage)
        out = jax.block_until_ready(out)
        ref = jnp.take(table, dist)  # pure-JAX reference of nn.Embedding(...).squeeze()
        if out.shape != dist.shape or out.dtype != jnp.float32:
            ok = False
        if not bool(jnp.allclose(out, ref, atol=1e-6)):
            ok = False

    if ok:
        print("KERNEL_OK")
    else:
        print("KERNEL_MISMATCH")
</pallas_src>

<mosaic_0001>
module attributes {stable_mosaic.version = 11 : i64} {
  func.func @_embedding_lookup_kernel(%arg0: i32, %arg1: memref<14xf32, #tpu.memory_space<smem>>, %arg2: memref<552x128xi32, #tpu.memory_space<vmem>>, %arg3: memref<552x128xf32, #tpu.memory_space<vmem>>) attributes {dimension_semantics = [#tpu.dimension_semantics<parallel>], iteration_bounds = array<i64: 2>, scalar_prefetch = 0 : i64, scratch_operands = 0 : i64, tpu.core_type = #tpu.core_type<tc>, window_params = [{transform_indices = @transform_0, window_bounds = array<i64: 14>}, {transform_indices = @transform_1, window_bounds = array<i64: 552, 128>}, {transform_indices = @transform_2, window_bounds = array<i64: 552, 128>}]} {
    %c0 = arith.constant 0 : index
    %c0_0 = arith.constant 0 : index
    %0 = vector.load %arg2[%c0, %c0_0] : memref<552x128xi32, #tpu.memory_space<vmem>>, vector<552x128xi32>
    %c0_i32 = arith.constant 0 : i32
    %1 = vector.broadcast %c0_i32 : i32 to vector<552x128xi32>
    %2 = arith.cmpi eq, %0, %1 : vector<552x128xi32>
    %c0_1 = arith.constant 0 : index
    %3 = memref.load %arg1[%c0_1] : memref<14xf32, #tpu.memory_space<smem>>
    %cst = arith.constant 0.000000e+00 : f32
    %4 = vector.broadcast %3 : f32 to vector<552x128xf32>
    %5 = vector.broadcast %cst : f32 to vector<552x128xf32>
    %6 = arith.select %2, %4, %5 : vector<552x128xi1>, vector<552x128xf32>
    %c1_i32 = arith.constant 1 : i32
    %7 = vector.broadcast %c1_i32 : i32 to vector<552x128xi32>
    %8 = arith.cmpi eq, %0, %7 : vector<552x128xi32>
    %c1 = arith.constant 1 : index
    %9 = memref.load %arg1[%c1] : memref<14xf32, #tpu.memory_space<smem>>
    %10 = vector.broadcast %9 : f32 to vector<552x128xf32>
    %11 = arith.select %8, %10, %6 : vector<552x128xi1>, vector<552x128xf32>
    %c2_i32 = arith.constant 2 : i32
    %12 = vector.broadcast %c2_i32 : i32 to vector<552x128xi32>
    %13 = arith.cmpi eq, %0, %12 : vector<552x128xi32>
    %c2 = arith.constant 2 : index
    %14 = memref.load %arg1[%c2] : memref<14xf32, #tpu.memory_space<smem>>
    %15 = vector.broadcast %14 : f32 to vector<552x128xf32>
    %16 = arith.select %13, %15, %11 : vector<552x128xi1>, vector<552x128xf32>
    %c3_i32 = arith.constant 3 : i32
    %17 = vector.broadcast %c3_i32 : i32 to vector<552x128xi32>
    %18 = arith.cmpi eq, %0, %17 : vector<552x128xi32>
    %c3 = arith.constant 3 : index
    %19 = memref.load %arg1[%c3] : memref<14xf32, #tpu.memory_space<smem>>
    %20 = vector.broadcast %19 : f32 to vector<552x128xf32>
    %21 = arith.select %18, %20, %16 : vector<552x128xi1>, vector<552x128xf32>
    %c4_i32 = arith.constant 4 : i32
    %22 = vector.broadcast %c4_i32 : i32 to vector<552x128xi32>
    %23 = arith.cmpi eq, %0, %22 : vector<552x128xi32>
    %c4 = arith.constant 4 : index
    %24 = memref.load %arg1[%c4] : memref<14xf32, #tpu.memory_space<smem>>
    %25 = vector.broadcast %24 : f32 to vector<552x128xf32>
    %26 = arith.select %23, %25, %21 : vector<552x128xi1>, vector<552x128xf32>
    %c5_i32 = arith.constant 5 : i32
    %27 = vector.broadcast %c5_i32 : i32 to vector<552x128xi32>
    %28 = arith.cmpi eq, %0, %27 : vector<552x128xi32>
    %c5 = arith.constant 5 : index
    %29 = memref.load %arg1[%c5] : memref<14xf32, #tpu.memory_space<smem>>
    %30 = vector.broadcast %29 : f32 to vector<552x128xf32>
    %31 = arith.select %28, %30, %26 : vector<552x128xi1>, vector<552x128xf32>
    %c6_i32 = arith.constant 6 : i32
    %32 = vector.broadcast %c6_i32 : i32 to vector<552x128xi32>
    %33 = arith.cmpi eq, %0, %32 : vector<552x128xi32>
    %c6 = arith.constant 6 : index
    %34 = memref.load %arg1[%c6] : memref<14xf32, #tpu.memory_space<smem>>
    %35 = vector.broadcast %34 : f32 to vector<552x128xf32>
    %36 = arith.select %33, %35, %31 : vector<552x128xi1>, vector<552x128xf32>
    %c7_i32 = arith.constant 7 : i32
    %37 = vector.broadcast %c7_i32 : i32 to vector<552x128xi32>
    %38 = arith.cmpi eq, %0, %37 : vector<552x128xi32>
    %c7 = arith.constant 7 : index
    %39 = memref.load %arg1[%c7] : memref<14xf32, #tpu.memory_space<smem>>
    %40 = vector.broadcast %39 : f32 to vector<552x128xf32>
    %41 = arith.select %38, %40, %36 : vector<552x128xi1>, vector<552x128xf32>
    %c8_i32 = arith.constant 8 : i32
    %42 = vector.broadcast %c8_i32 : i32 to vector<552x128xi32>
    %43 = arith.cmpi eq, %0, %42 : vector<552x128xi32>
    %c8 = arith.constant 8 : index
    %44 = memref.load %arg1[%c8] : memref<14xf32, #tpu.memory_space<smem>>
    %45 = vector.broadcast %44 : f32 to vector<552x128xf32>
    %46 = arith.select %43, %45, %41 : vector<552x128xi1>, vector<552x128xf32>
    %c9_i32 = arith.constant 9 : i32
    %47 = vector.broadcast %c9_i32 : i32 to vector<552x128xi32>
    %48 = arith.cmpi eq, %0, %47 : vector<552x128xi32>
    %c9 = arith.constant 9 : index
    %49 = memref.load %arg1[%c9] : memref<14xf32, #tpu.memory_space<smem>>
    %50 = vector.broadcast %49 : f32 to vector<552x128xf32>
    %51 = arith.select %48, %50, %46 : vector<552x128xi1>, vector<552x128xf32>
    %c10_i32 = arith.constant 10 : i32
    %52 = vector.broadcast %c10_i32 : i32 to vector<552x128xi32>
    %53 = arith.cmpi eq, %0, %52 : vector<552x128xi32>
    %c10 = arith.constant 10 : index
    %54 = memref.load %arg1[%c10] : memref<14xf32, #tpu.memory_space<smem>>
    %55 = vector.broadcast %54 : f32 to vector<552x128xf32>
    %56 = arith.select %53, %55, %51 : vector<552x128xi1>, vector<552x128xf32>
    %c11_i32 = arith.constant 11 : i32
    %57 = vector.broadcast %c11_i32 : i32 to vector<552x128xi32>
    %58 = arith.cmpi eq, %0, %57 : vector<552x128xi32>
    %c11 = arith.constant 11 : index
    %59 = memref.load %arg1[%c11] : memref<14xf32, #tpu.memory_space<smem>>
    %60 = vector.broadcast %59 : f32 to vector<552x128xf32>
    %61 = arith.select %58, %60, %56 : vector<552x128xi1>, vector<552x128xf32>
    %c12_i32 = arith.constant 12 : i32
    %62 = vector.broadcast %c12_i32 : i32 to vector<552x128xi32>
    %63 = arith.cmpi eq, %0, %62 : vector<552x128xi32>
    %c12 = arith.constant 12 : index
    %64 = memref.load %arg1[%c12] : memref<14xf32, #tpu.memory_space<smem>>
    %65 = vector.broadcast %64 : f32 to vector<552x128xf32>
    %66 = arith.select %63, %65, %61 : vector<552x128xi1>, vector<552x128xf32>
    %c13_i32 = arith.constant 13 : i32
    %67 = vector.broadcast %c13_i32 : i32 to vector<552x128xi32>
    %68 = arith.cmpi eq, %0, %67 : vector<552x128xi32>
    %c13 = arith.constant 13 : index
    %69 = memref.load %arg1[%c13] : memref<14xf32, #tpu.memory_space<smem>>
    %70 = vector.broadcast %69 : f32 to vector<552x128xf32>
    %71 = arith.select %68, %70, %66 : vector<552x128xi1>, vector<552x128xf32>
    %c0_2 = arith.constant 0 : index
    %c0_3 = arith.constant 0 : index
    %72 = vector.load %arg3[%c0_2, %c0_3] : memref<552x128xf32, #tpu.memory_space<vmem>>, vector<552x128xf32>
    tpu.vector_store %arg3[%c0_2, %c0_3], %71 {strides = array<i32>} : memref<552x128xf32, #tpu.memory_space<vmem>>, vector<552x128xf32>,
    return
  }
  func.func @transform_0(%arg0: i32) -> i32 {
    %c0_i32 = arith.constant 0 : i32
    %c0_i32_0 = arith.constant 0 : i32
    return %c0_i32 : i32
  }
  func.func @transform_1(%arg0: i32) -> (i32, i32) {
    %c0_i32 = arith.constant 0 : i32
    %c0_i32_0 = arith.constant 0 : i32
    return %arg0, %c0_i32 : i32, i32
  }
  func.func @transform_2(%arg0: i32) -> (i32, i32) {
    %c0_i32 = arith.constant 0 : i32
    %c0_i32_0 = arith.constant 0 : i32
    return %arg0, %c0_i32 : i32, i32
  }
}

</mosaic_0001>

<bundles_post_ra>
// kernel: tpu_custom_call.1
= control target key start
LH: loop header
LB: loop body
LE: loop exit
PB: predicated region body
PF: predicated region fallthrough
CT: control target
= control target key end

     0   :  { %7 = vsyncpa [#allocation5], 0  ;;  %s5313_s0 = inlined_call_operand.hbm [shape: f32[14], index: 0, kind: input, shape index: {}]   ;;  %s5314_s1 = inlined_call_operand.hbm [shape: s32[1104,128], index: 1, kind: input, shape index: {}]   ;;  %s5315_s2 = inlined_call_operand.hbm [shape: f32[1104,128], index: 2, kind: output, shape index: {}]  }
   0x1   :  { %8 = vsyncpa [#allocation3], 0 }
   0x2   :  { %10 = vsyncpa [#allocation3 + $0x1], 0 }
   0x3   :  { %11 = vsyncpa [#allocation4], 0 }
   0x4   :  { %13 = vsyncpa [#allocation4 + $0x1], 0  ;;  %s2604_s9 = smov 0   ;;  %s2606_s10 = smov 0  }
   0x5   :  { %s2608_s11 = smov 0   ;;  %s2610_s12 = smov 0  }
   0x6 LB: > { %s2625_s13 = sadd.s32 4294967295, %s2582_s12   ;;  %s2379_s14 = sadd.s32 4294967294, %s2582_s12   ;;  %s2582_s12 = sphi %s2610_s12, %s5333_s12   ;;  %s2578_s11 = sphi %s2608_s11, %s5332_s11   ;;  %s2574_s10 = sphi %s2606_s10, %s5331_s10   ;;  %s2570_s9 = sphi %s2604_s9, %s5330_s9  }
   0x7   : > { %s2629_s15 = sadd.s32 1, %s2582_s12   ;;  %s47_s16 = sadd.s32 1, %s2578_s11 }
   0x8   : > { %s44_s17 = ssub.s32 %s2582_s12, %s2629_s15  ;;  %p54_p0 = scmp.ne.s32.totalorder %s2578_s11, %s2574_s10 }
   0x9   : > { %p45_p1 = scmp.eq.s32.totalorder %s44_s17, 0  ;;  %p55_p2 = scmp.eq.s32.totalorder %s2582_s12, 0 }
   0xa   : > { %p60_p3 = scmp.ne.s32.totalorder %s2574_s10, %s2570_s9  ;;  %p61_p4 = scmp.eq.s32.totalorder %s2625_s13, 0 }
   0xb   : > { %s2641_s18 = scalar_select %p45_p1, %s2578_s11, %s47_s16  }
   0xc   : > { %p2643_p5 = por %p55_p2, %p54_p0  ;;  %p2649_p6 = por %p61_p4, %p60_p3 }
   0xd   : > { %p84_p7 = scmp.eq.s32.totalorder %s2625_s13, 1  ;;  %p90_p8 = scmp.eq.s32.totalorder %s2379_s14, 1 }
   0xe   : > { %p2380_p9 = scmp.ge.s32.totalorder %s2582_s12, 1  ;;  %p97_p10 = scmp.lt.s32.totalorder %s2582_s12, 3 }
   0xf   : > { %p2656_p11 = por %p84_p7, %p54_p0  ;;  %p2660_p12 = por %p90_p8, %p60_p3 }
  0x10   : > { %p2664_p13 = pnand %p2380_p9, %p97_p10  ;;  %s109_s26 = sshll.u32 %s5313_s0, 4  ;;  %s110_s26 = int_to_ptr.hbm [resolvable:$true] %s109_s26 }
  0x11   : > { %p2427_p2 = scmp.lt.s32.totalorder %s2582_s12, 2  ;;  %s120_s27 = sand.u32 1, %s2578_s11  }
  0x12   : > { %p2414_p1 = pneg %p2664_p13  ;;  %s2404_s29 = smul.u32 552, %s120_s27 }
  0x13   : > { %p2680_p3 = pnand %p2427_p2, %p2643_p5  ;;  %s2584_s30 = smov [#allocation2]  }
  0x14   : > { %p2415_p7 = pnand %p2414_p1, %p61_p4  ;;  %s2402_s3 = smul.u32 552, %s2582_s12 }
  0x15   : > { %s124_s4 = scalar_lea.vmem [#allocation6], %s2404_s29  ;;  %s121_s16 = scalar_lea.sflag [#allocation3], %s120_s27 }
  0x16   : > { %2417 = dma.hbm_to_smem (!%p2415_p7), %s110_s26, 16, %s2584_s30, [#allocation5]  }
  0x17   : > { %s132_s5 = sshll.u32 %s124_s4, 4  ;;  %s129_s8 = scalar_lea.hbm %s5314_s1, %s2402_s3  ;;  %s133_s5 = int_to_ptr.vmem [resolvable:$true] %s132_s5 }
  0x18   : > { %s130_s14 = sshll.u32 %s129_s8, 4  ;;  %p2486_p8 = pneg %p2680_p3  ;;  %s131_s14 = int_to_ptr.hbm [resolvable:$true] %s130_s14 }
  0x19   : > { %s2482_s17 = sshra.s32 %s131_s14, 4  ;;  %s2489_s26 = scalar_lea.hbm %s5314_s1, 1104  ;;  %s2483_s17 = int_to_ptr.hbm [resolvable:$true] %s2482_s17 }
  0x1a   : > { %s2484_s19 = scalar_lea.hbm %s2483_s17, 552  ;;  %p2490_p1 = scmp.lt.s32.totalorder %s2483_s17, %s5314_s1 }
  0x1b   : > { %p2485_p5 = scmp.ne.s32.totalorder %s2483_s17, %s2484_s19  ;;  %p2491_p2 = scmp.lt.s32.totalorder %s2489_s26, %s2484_s19 }
  0x1d   : > { %p2487_p9 = pnand %p2486_p8, %p2485_p5  ;;  %p2492_p7 = por %p2491_p2, %p2490_p1 }
  0x1f   : > { %p2488_p10 = pneg %p2487_p9 }
  0x21   : > { %p2493_p0 = pnand %p2492_p7, %p2488_p10 }
  0x23   : > { %2496 = shalt.err (!%p2493_p0)
}
  0x24   : > { %s2585_s27 = smov 128   ;;  %s2586_s3 = smov 8  }
  0x25   : > { %2421 = dma.hbm_to_vmem [thread:$0]  (!%p2680_p3), %s131_s14, 8832, %s133_s5, %s121_s16, %s2585_s27, %s2585_s27, %s2586_s3  }
  0x26   : > { %144 = sbr.rel (%p2664_p13) target bundleno = 549 (0x225), region = 28 }
  0x2b   : > { %2557 = dma.done.wait (%p61_p4), [#allocation5], 16  }
  0x2c   : > { %2559 = vsyncadd (%p61_p4), [#allocation5], 4294967280  ;;  %s2705_s4 = sand.u32 1, %s2574_s10  }
  0x2d   : > { %s2405_s6 = smul.u32 552, %s2705_s4  ;;  %s152_s7 = scalar_lea.sflag [#allocation3], %s2705_s4 }
  0x2f   : > { %s2711_s28 = scalar_lea.vmem [#allocation6], %s2405_s6 }
  0x30   : > { %2561 = dma.done.wait (%p2649_p6), %s152_s7, 8832  }
  0x31   : > { %2563 = vsyncadd (%p2649_p6), %s152_s7, 4294958464 }
  0x32   : > { %161 = sfence }
  0x33   : > { %v2718_v0 = vld [vmem:[%s2711_s28] sm:$0xff]  ;;  %s318_s23 = sld [smem:[#allocation2]]  ;;  %v2721_v1 = vld [vmem:[%s2711_s28 + $0x8] sm:$0xff]  ;;  %v2789_v12 = vld [vmem:[%s2711_s28 + $0x10] sm:$0xff]  ;;  %s2899_s3 = scalar_lea.vmem [#allocation7], %s2405_s6 }
  0x34   : > { %s2386_s5 = sld [smem:[#allocation2 + $0x1]]  ;;  %vm249_vm0 = vcmp.eq.s32.totalorder %v2718_v0, 0  ;;  %vm389_vm1 = vcmp.eq.s32.totalorder %v2718_v0, 1  ;;  %vm529_vm2 = vcmp.eq.s32.totalorder %v2718_v0, 2  ;;  %vm669_vm3 = vcmp.eq.s32.totalorder %v2718_v0, 3  ;;  %v2895_v49 = vld [vmem:[%s2711_s28 + $0x18] sm:$0xff] }
  0x35   : > { %s2387_s8 = sld [smem:[#allocation2 + $0x2]]  ;;  %vm809_vm4 = vcmp.eq.s32.totalorder %v2718_v0, 4  ;;  %vm949_vm5 = vcmp.eq.s32.totalorder %v2718_v0, 5  ;;  %vm250_vm9 = vcmp.eq.s32.totalorder %v2721_v1, 0  ;;  %vm390_vm10 = vcmp.eq.s32.totalorder %v2721_v1, 1  ;;  %v2930_v61 = vld [vmem:[%s2711_s28 + $0x20] sm:$0xff] }
  0x36   : > { %s2727_s20 = sld [smem:[#allocation2 + $0x3]]  ;;  %vm530_vm12 = vcmp.eq.s32.totalorder %v2721_v1, 2  ;;  %vm670_vm13 = vcmp.eq.s32.totalorder %v2721_v1, 3  ;;  %vm810_vm14 = vcmp.eq.s32.totalorder %v2721_v1, 4  ;;  %vm1090_vm7 = vcmp.eq.s32.totalorder %v2721_v1, 6  ;;  %s2403_s6 = smul.u32 552, %s2625_s13 }
  0x37   : > { %s2732_s14 = sld [smem:[#allocation2 + $0x4]]  ;;  %vm1230_vm6 = vcmp.eq.s32.totalorder %v2721_v1, 7  ;;  %vm1370_vm11 = vcmp.eq.s32.totalorder %v2721_v1, 8  ;;  %vm1789_vm15 = vcmp.eq.s32.totalorder %v2718_v0, 11  ;;  %vm1510_vm8 = vcmp.eq.s32.totalorder %v2721_v1, 9 }
  0x38   : > { %s2738_s16 = sld [smem:[#allocation2 + $0x5]] }
  0x39   : > { %v2745_v2 = vstv %s318_s23  ;;  %s2747_s17 = sld [smem:[#allocation2 + $0x6]]  ;;  %s2291_s23 = sshll.u32 %s2899_s3, 4  ;;  %s2292_s23 = int_to_ptr.vmem [resolvable:$true] %s2291_s23 }
  0x3a   : > { %v320_v3 = vsel %vm249_vm0, %v2745_v2, 0.0  ;;  %v2756_v4 = vstv %s2386_s5  ;;  %s2758_s19 = sld [smem:[#allocation2 + $0x7]]  ;;  %v321_v5 = vsel %vm250_vm9, %v2745_v2, 0.0  ;;  %vm1650_vm9 = vcmp.eq.s32.totalorder %v2721_v1, 10 }
  0x3b   : > { %v460_v6 = vsel %vm389_vm1, %v2756_v4, %v320_v3  ;;  %v2768_v7 = vstv %s2387_s8  ;;  %s2770_s24 = sld [smem:[#allocation2 + $0x8]]  ;;  %v461_v8 = vsel %vm390_vm10, %v2756_v4, %v321_v5  ;;  %vm2069_vm1 = vcmp.eq.s32.totalorder %v2718_v0, 13  ;;  %s2279_s8 = scalar_lea.sflag [#allocation4], %s2705_s4 }
  0x3c   : > { %v600_v9 = vsel %vm529_vm2, %v2768_v7, %v460_v6  ;;  %v2781_v10 = vstv %s2727_s20  ;;  %s2394_s25 = sld [smem:[#allocation2 + $0x9]]  ;;  %v601_v11 = vsel %vm530_vm12, %v2768_v7, %v461_v8  ;;  %vm1790_vm0 = vcmp.eq.s32.totalorder %v2721_v1, 11 }
  0x3d   : > { %v740_v13 = vsel %vm669_vm3, %v2781_v10, %v600_v9  ;;  %v2795_v14 = vstv %s2732_s14  ;;  %s2395_s26 = sld [smem:[#allocation2 + $0xa]]  ;;  %v741_v15 = vsel %vm670_vm13, %v2781_v10, %v601_v11  ;;  %vm1930_vm2 = vcmp.eq.s32.totalorder %v2721_v1, 12 }
  0x3e   : > { %v880_v16 = vsel %vm809_vm4, %v2795_v14, %v740_v13  ;;  %v2805_v17 = vstv %s2738_s16  ;;  %s2396_s29 = sld [smem:[#allocation2 + $0xb]]  ;;  %v881_v18 = vsel %vm810_vm14, %v2795_v14, %v741_v15  ;;  %vm2070_vm3 = vcmp.eq.s32.totalorder %v2721_v1, 13 }
  0x3f   : > { %v1020_v19 = vsel %vm949_vm5, %v2805_v17, %v880_v16  ;;  %v2815_v20 = vstv %s2747_s17  ;;  %s2397_s30 = sld [smem:[#allocation2 + $0xc]]  ;;  %vm5322_vm4 = vcmp.eq.s32.totalorder %v2721_v1, 5  ;;  %vm251_vm10 = vcmp.eq.s32.totalorder %v2789_v12, 0 }
  0x40   : > { %v1021_v21 = vsel %vm5322_vm4, %v2805_v17, %v881_v18  ;;  %vm5323_vm12 = vcmp.eq.s32.totalorder %v2718_v0, 6  ;;  %v2825_v23 = vstv %s2758_s19  ;;  %s2398_s27 = sld [smem:[#allocation2 + $0xd]]  ;;  %v322_v25 = vsel %vm251_vm10, %v2745_v2, 0.0  ;;  %v2966_v18 = vld [vmem:[%s2711_s28 + $0x28] sm:$0xff]  ;;  %s2532_s19 = scalar_lea.hbm %s5315_s2, 1104 }
  0x41   : > { %v1160_v22 = vsel %vm5323_vm12, %v2815_v20, %v1020_v19  ;;  %v1161_v24 = vsel %vm1090_vm7, %v2815_v20, %v1021_v21  ;;  %vm5324_vm5 = vcmp.eq.s32.totalorder %v2718_v0, 7  ;;  %v2835_v27 = vstv %s2770_s24 }
  0x42   : > { %v1300_v26 = vsel %vm5324_vm5, %v2825_v23, %v1160_v22  ;;  %v1301_v28 = vsel %vm1230_vm6, %v2825_v23, %v1161_v24  ;;  %vm391_vm13 = vcmp.eq.s32.totalorder %v2789_v12, 1  ;;  %vm5325_vm14 = vcmp.eq.s32.totalorder %v2718_v0, 8 }
  0x43   : > { %v1440_v29 = vsel %vm5325_vm14, %v2835_v27, %v1300_v26  ;;  %v2844_v30 = vstv %s2394_s25  ;;  %v1441_v31 = vsel %vm1370_vm11, %v2835_v27, %v1301_v28  ;;  %v462_v32 = vsel %vm391_vm13, %v2756_v4, %v322_v25 }
  0x44   : > { %vm5326_vm7 = vcmp.eq.s32.totalorder %v2718_v0, 9  ;;  %v2853_v34 = vstv %s2395_s26  ;;  %v1581_v35 = vsel %vm1510_vm8, %v2844_v30, %v1441_v31  ;;  %vm531_vm6 = vcmp.eq.s32.totalorder %v2789_v12, 2 }
  0x45   : > { %v1580_v33 = vsel %vm5326_vm7, %v2844_v30, %v1440_v29  ;;  %vm5327_vm4 = vcmp.eq.s32.totalorder %v2718_v0, 10  ;;  %v2862_v37 = vstv %s2396_s29  ;;  %v1721_v38 = vsel %vm1650_vm9, %v2853_v34, %v1581_v35 }
  0x46   : > { %v1720_v36 = vsel %vm5327_vm4, %v2853_v34, %v1580_v33  ;;  %v602_v39 = vsel %vm531_vm6, %v2768_v7, %v462_v32  ;;  %v2871_v41 = vstv %s2397_s30  ;;  %v1861_v42 = vsel %vm1790_vm0, %v2862_v37, %v1721_v38 }
  0x47   : > { %v1860_v40 = vsel %vm1789_vm15, %v2862_v37, %v1720_v36  ;;  %vm671_vm8 = vcmp.eq.s32.totalorder %v2789_v12, 3  ;;  %vm5328_vm11 = vcmp.eq.s32.totalorder %v2718_v0, 12  ;;  %v2880_v44 = vstv %s2398_s27 }
  0x48   : > { %v2000_v43 = vsel %vm5328_vm11, %v2871_v41, %v1860_v40  ;;  %v2001_v45 = vsel %vm1930_vm2, %v2871_v41, %v1861_v42  ;;  %v742_v46 = vsel %vm671_vm8, %v2781_v10, %v602_v39  ;;  %vm811_vm15 = vcmp.eq.s32.totalorder %v2789_v12, 4  ;;  %v3002_v39 = vld [vmem:[%s2711_s28 + $0x30] sm:$0xff] }
  0x49   : > { %v2140_v47 = vsel %vm2069_vm1, %v2880_v44, %v2000_v43  ;;  %v2141_v48 = vsel %vm2070_vm3, %v2880_v44, %v2001_v45  ;;  %vm951_vm0 = vcmp.eq.s32.totalorder %v2789_v12, 5  ;;  %v882_v50 = vsel %vm811_vm15, %v2795_v14, %v742_v46 }
  0x4a   : > { %2209 = vst [vmem:[%s2899_s3] sm:$0xff] %v2140_v47  ;;  %vm1091_vm9 = vcmp.eq.s32.totalorder %v2789_v12, 6  ;;  %vm1231_vm1 = vcmp.eq.s32.totalorder %v2789_v12, 7  ;;  %v1022_v51 = vsel %vm951_vm0, %v2805_v17, %v882_v50  ;;  %vm1371_vm2 = vcmp.eq.s32.totalorder %v2789_v12, 8 }
  0x4b   : > { %2210 = vst [vmem:[%s2899_s3 + $0x8] sm:$0xff] %v2141_v48  ;;  %vm1511_vm3 = vcmp.eq.s32.totalorder %v2789_v12, 9  ;;  %v1162_v52 = vsel %vm1091_vm9, %v2815_v20, %v1022_v51  ;;  %vm1651_vm10 = vcmp.eq.s32.totalorder %v2789_v12, 10  ;;  %vm1791_vm12 = vcmp.eq.s32.totalorder %v2789_v12, 11 }
  0x4c   : > { %vm252_vm5 = vcmp.eq.s32.totalorder %v2895_v49, 0  ;;  %v1302_v53 = vsel %vm1231_vm1, %v2825_v23, %v1162_v52  ;;  %vm392_vm13 = vcmp.eq.s32.totalorder %v2895_v49, 1  ;;  %vm532_vm14 = vcmp.eq.s32.totalorder %v2895_v49, 2 }
  0x4d   : > { %v323_v54 = vsel %vm252_vm5, %v2745_v2, 0.0  ;;  %v1442_v55 = vsel %vm1371_vm2, %v2835_v27, %v1302_v53  ;;  %vm672_vm7 = vcmp.eq.s32.totalorder %v2895_v49, 3  ;;  %vm812_vm6 = vcmp.eq.s32.totalorder %v2895_v49, 4 }
  0x4e   : > { %v463_v56 = vsel %vm392_vm13, %v2756_v4, %v323_v54  ;;  %v1582_v57 = vsel %vm1511_vm3, %v2844_v30, %v1442_v55  ;;  %vm1931_vm4 = vcmp.eq.s32.totalorder %v2789_v12, 12  ;;  %vm952_vm8 = vcmp.eq.s32.totalorder %v2895_v49, 5 }
  0x4f   : > { %v603_v58 = vsel %vm532_vm14, %v2768_v7, %v463_v56  ;;  %v1722_v59 = vsel %vm1651_vm10, %v2853_v34, %v1582_v57  ;;  %vm2071_vm11 = vcmp.eq.s32.totalorder %v2789_v12, 13  ;;  %vm1092_vm15 = vcmp.eq.s32.totalorder %v2895_v49, 6  ;;  %v3038_v56 = vld [vmem:[%s2711_s28 + $0x38] sm:$0xff] }
  0x50   : > { %v743_v60 = vsel %vm672_vm7, %v2781_v10, %v603_v58  ;;  %v1862_v62 = vsel %vm1791_vm12, %v2862_v37, %v1722_v59  ;;  %vm1232_vm0 = vcmp.eq.s32.totalorder %v2895_v49, 7  ;;  %vm1372_vm9 = vcmp.eq.s32.totalorder %v2895_v49, 8 }
  0x51   : > { %v883_v63 = vsel %vm812_vm6, %v2795_v14, %v743_v60  ;;  %v2002_v0 = vsel %vm1931_vm4, %v2871_v41, %v1862_v62  ;;  %vm1512_vm1 = vcmp.eq.s32.totalorder %v2895_v49, 9  ;;  %vm1652_vm2 = vcmp.eq.s32.totalorder %v2895_v49, 10 }
  0x52   : > { %v1023_v1 = vsel %vm952_vm8, %v2805_v17, %v883_v63  ;;  %v2142_v3 = vsel %vm2071_vm11, %v2880_v44, %v2002_v0  ;;  %vm1792_vm3 = vcmp.eq.s32.totalorder %v2895_v49, 11  ;;  %vm253_vm10 = vcmp.eq.s32.totalorder %v2930_v61, 0 }
  0x53   : > { %v1163_v5 = vsel %vm1092_vm15, %v2815_v20, %v1023_v1  ;;  %2211 = vst [vmem:[%s2899_s3 + $0x10] sm:$0xff] %v2142_v3  ;;  %v324_v8 = vsel %vm253_vm10, %v2745_v2, 0.0  ;;  %vm393_vm12 = vcmp.eq.s32.totalorder %v2930_v61, 1  ;;  %vm533_vm5 = vcmp.eq.s32.totalorder %v2930_v61, 2 }
  0x54   : > { %v1303_v6 = vsel %vm1232_vm0, %v2825_v23, %v1163_v5  ;;  %v464_v11 = vsel %vm393_vm12, %v2756_v4, %v324_v8  ;;  %vm673_vm13 = vcmp.eq.s32.totalorder %v2930_v61, 3  ;;  %vm813_vm14 = vcmp.eq.s32.totalorder %v2930_v61, 4 }
  0x55   : > { %v1443_v9 = vsel %vm1372_vm9, %v2835_v27, %v1303_v6  ;;  %vm1932_vm7 = vcmp.eq.s32.totalorder %v2895_v49, 12  ;;  %v604_v13 = vsel %vm533_vm5, %v2768_v7, %v464_v11  ;;  %vm953_vm6 = vcmp.eq.s32.totalorder %v2930_v61, 5  ;;  %v3074_v11 = vld [vmem:[%s2711_s28 + $0x40] sm:$0xff] }
  0x56   : > { %v1583_v12 = vsel %vm1512_vm1, %v2844_v30, %v1443_v9  ;;  %vm2072_vm4 = vcmp.eq.s32.totalorder %v2895_v49, 13  ;;  %v744_v16 = vsel %vm673_vm13, %v2781_v10, %v604_v13  ;;  %vm1093_vm8 = vcmp.eq.s32.totalorder %v2930_v61, 6 }
  0x57   : > { %v1723_v15 = vsel %vm1652_vm2, %v2853_v34, %v1583_v12  ;;  %v884_v21 = vsel %vm813_vm14, %v2795_v14, %v744_v16  ;;  %vm1233_vm11 = vcmp.eq.s32.totalorder %v2930_v61, 7  ;;  %vm1373_vm15 = vcmp.eq.s32.totalorder %v2930_v61, 8 }
  0x58   : > { %v1863_v19 = vsel %vm1792_vm3, %v2862_v37, %v1723_v15  ;;  %v1024_v24 = vsel %vm953_vm6, %v2805_v17, %v884_v21  ;;  %vm1513_vm0 = vcmp.eq.s32.totalorder %v2930_v61, 9  ;;  %vm1653_vm9 = vcmp.eq.s32.totalorder %v2930_v61, 10 }
  0x59   : > { %v2003_v22 = vsel %vm1932_vm7, %v2871_v41, %v1863_v19  ;;  %v1164_v26 = vsel %vm1093_vm8, %v2815_v20, %v1024_v24  ;;  %vm1793_vm1 = vcmp.eq.s32.totalorder %v2930_v61, 11  ;;  %vm254_vm2 = vcmp.eq.s32.totalorder %v2966_v18, 0 }
  0x5a   : > { %v2143_v25 = vsel %vm2072_vm4, %v2880_v44, %v2003_v22  ;;  %v1304_v28 = vsel %vm1233_vm11, %v2825_v23, %v1164_v26  ;;  %v325_v29 = vsel %vm254_vm2, %v2745_v2, 0.0  ;;  %vm394_vm3 = vcmp.eq.s32.totalorder %v2966_v18, 1 }
  0x5b   : > { %2212 = vst [vmem:[%s2899_s3 + $0x18] sm:$0xff] %v2143_v25  ;;  %vm534_vm10 = vcmp.eq.s32.totalorder %v2966_v18, 2  ;;  %v1444_v31 = vsel %vm1373_vm15, %v2835_v27, %v1304_v28  ;;  %v465_v32 = vsel %vm394_vm3, %v2756_v4, %v325_v29  ;;  %vm674_vm12 = vcmp.eq.s32.totalorder %v2966_v18, 3 }
  0x5c   : > { %vm814_vm5 = vcmp.eq.s32.totalorder %v2966_v18, 4  ;;  %v1584_v33 = vsel %vm1513_vm0, %v2844_v30, %v1444_v31  ;;  %vm1933_vm13 = vcmp.eq.s32.totalorder %v2930_v61, 12  ;;  %v605_v35 = vsel %vm534_vm10, %v2768_v7, %v465_v32  ;;  %v3110_v32 = vld [vmem:[%s2711_s28 + $0x48] sm:$0xff] }
  0x5d   : > { %vm954_vm14 = vcmp.eq.s32.totalorder %v2966_v18, 5  ;;  %v1724_v36 = vsel %vm1653_vm9, %v2853_v34, %v1584_v33  ;;  %vm2073_vm7 = vcmp.eq.s32.totalorder %v2930_v61, 13  ;;  %v745_v38 = vsel %vm674_vm12, %v2781_v10, %v605_v35 }
  0x5e   : > { %vm1094_vm6 = vcmp.eq.s32.totalorder %v2966_v18, 6  ;;  %v1864_v40 = vsel %vm1793_vm1, %v2862_v37, %v1724_v36  ;;  %v885_v42 = vsel %vm814_vm5, %v2795_v14, %v745_v38  ;;  %vm1234_vm4 = vcmp.eq.s32.totalorder %v2966_v18, 7 }
  0x5f   : > { %vm1374_vm8 = vcmp.eq.s32.totalorder %v2966_v18, 8  ;;  %v2004_v43 = vsel %vm1933_vm13, %v2871_v41, %v1864_v40  ;;  %v1025_v45 = vsel %vm954_vm14, %v2805_v17, %v885_v42  ;;  %vm1514_vm11 = vcmp.eq.s32.totalorder %v2966_v18, 9 }
  0x60   : > { %vm1654_vm15 = vcmp.eq.s32.totalorder %v2966_v18, 10  ;;  %v2144_v46 = vsel %vm2073_vm7, %v2880_v44, %v2004_v43  ;;  %v1165_v47 = vsel %vm1094_vm6, %v2815_v20, %v1025_v45  ;;  %vm1794_vm0 = vcmp.eq.s32.totalorder %v2966_v18, 11 }
  0x61   : > { %vm255_vm9 = vcmp.eq.s32.totalorder %v3002_v39, 0  ;;  %2213 = vst [vmem:[%s2899_s3 + $0x20] sm:$0xff] %v2144_v46  ;;  %v1305_v48 = vsel %vm1234_vm4, %v2825_v23, %v1165_v47  ;;  %vm395_vm1 = vcmp.eq.s32.totalorder %v3002_v39, 1  ;;  %vm535_vm2 = vcmp.eq.s32.totalorder %v3002_v39, 2 }
  0x62   : > { %v326_v49 = vsel %vm255_vm9, %v2745_v2, 0.0  ;;  %v1445_v50 = vsel %vm1374_vm8, %v2835_v27, %v1305_v48  ;;  %vm675_vm3 = vcmp.eq.s32.totalorder %v3002_v39, 3  ;;  %vm815_vm10 = vcmp.eq.s32.totalorder %v3002_v39, 4 }
  0x63   : > { %v466_v51 = vsel %vm395_vm1, %v2756_v4, %v326_v49  ;;  %v1585_v52 = vsel %vm1514_vm11, %v2844_v30, %v1445_v50  ;;  %vm1934_vm12 = vcmp.eq.s32.totalorder %v2966_v18, 12  ;;  %vm955_vm5 = vcmp.eq.s32.totalorder %v3002_v39, 5 }
  0x64   : > { %v606_v53 = vsel %vm535_vm2, %v2768_v7, %v466_v51  ;;  %v1725_v54 = vsel %vm1654_vm15, %v2853_v34, %v1585_v52  ;;  %vm2074_vm13 = vcmp.eq.s32.totalorder %v2966_v18, 13  ;;  %vm1095_vm14 = vcmp.eq.s32.totalorder %v3002_v39, 6  ;;  %v3146_v51 = vld [vmem:[%s2711_s28 + $0x50] sm:$0xff] }
  0x65   : > { %v746_v55 = vsel %vm675_vm3, %v2781_v10, %v606_v53  ;;  %v1865_v57 = vsel %vm1794_vm0, %v2862_v37, %v1725_v54  ;;  %vm1235_vm7 = vcmp.eq.s32.totalorder %v3002_v39, 7  ;;  %vm1375_vm6 = vcmp.eq.s32.totalorder %v3002_v39, 8 }
  0x66   : > { %v886_v58 = vsel %vm815_vm10, %v2795_v14, %v746_v55  ;;  %v2005_v59 = vsel %vm1934_vm12, %v2871_v41, %v1865_v57  ;;  %vm1515_vm4 = vcmp.eq.s32.totalorder %v3002_v39, 9  ;;  %vm1655_vm8 = vcmp.eq.s32.totalorder %v3002_v39, 10 }
  0x67   : > { %v1026_v60 = vsel %vm955_vm5, %v2805_v17, %v886_v58  ;;  %v2145_v61 = vsel %vm2074_vm13, %v2880_v44, %v2005_v59  ;;  %vm1795_vm11 = vcmp.eq.s32.totalorder %v3002_v39, 11  ;;  %vm256_vm15 = vcmp.eq.s32.totalorder %v3038_v56, 0 }
  0x68   : > { %v1166_v62 = vsel %vm1095_vm14, %v2815_v20, %v1026_v60  ;;  %2214 = vst [vmem:[%s2899_s3 + $0x28] sm:$0xff] %v2145_v61  ;;  %v327_v0 = vsel %vm256_vm15, %v2745_v2, 0.0  ;;  %vm396_vm0 = vcmp.eq.s32.totalorder %v3038_v56, 1  ;;  %vm536_vm9 = vcmp.eq.s32.totalorder %v3038_v56, 2 }
  0x69   : > { %v1306_v63 = vsel %vm1235_vm7, %v2825_v23, %v1166_v62  ;;  %v467_v3 = vsel %vm396_vm0, %v2756_v4, %v327_v0  ;;  %vm676_vm1 = vcmp.eq.s32.totalorder %v3038_v56, 3  ;;  %vm816_vm2 = vcmp.eq.s32.totalorder %v3038_v56, 4 }
  0x6a   : > { %v1446_v1 = vsel %vm1375_vm6, %v2835_v27, %v1306_v63  ;;  %vm1935_vm3 = vcmp.eq.s32.totalorder %v3002_v39, 12  ;;  %v607_v6 = vsel %vm536_vm9, %v2768_v7, %v467_v3  ;;  %vm956_vm10 = vcmp.eq.s32.totalorder %v3038_v56, 5  ;;  %v3182_v3 = vld [vmem:[%s2711_s28 + $0x58] sm:$0xff] }
  0x6b   : > { %v1586_v5 = vsel %vm1515_vm4, %v2844_v30, %v1446_v1  ;;  %vm2075_vm12 = vcmp.eq.s32.totalorder %v3002_v39, 13  ;;  %v747_v9 = vsel %vm676_vm1, %v2781_v10, %v607_v6  ;;  %vm1096_vm5 = vcmp.eq.s32.totalorder %v3038_v56, 6 }
  0x6c   : > { %v1726_v8 = vsel %vm1655_vm8, %v2853_v34, %v1586_v5  ;;  %v887_v13 = vsel %vm816_vm2, %v2795_v14, %v747_v9  ;;  %vm1236_vm13 = vcmp.eq.s32.totalorder %v3038_v56, 7  ;;  %vm1376_vm14 = vcmp.eq.s32.totalorder %v3038_v56, 8 }
  0x6d   : > { %v1866_v12 = vsel %vm1795_vm11, %v2862_v37, %v1726_v8  ;;  %v1027_v16 = vsel %vm956_vm10, %v2805_v17, %v887_v13  ;;  %vm1516_vm7 = vcmp.eq.s32.totalorder %v3038_v56, 9  ;;  %vm1656_vm6 = vcmp.eq.s32.totalorder %v3038_v56, 10 }
  0x6e   : > { %v2006_v15 = vsel %vm1935_vm3, %v2871_v41, %v1866_v12  ;;  %v1167_v19 = vsel %vm1096_vm5, %v2815_v20, %v1027_v16  ;;  %vm1796_vm4 = vcmp.eq.s32.totalorder %v3038_v56, 11  ;;  %vm257_vm8 = vcmp.eq.s32.totalorder %v3074_v11, 0 }
  0x6f   : > { %v2146_v18 = vsel %vm2075_vm12, %v2880_v44, %v2006_v15  ;;  %v1307_v21 = vsel %vm1236_vm13, %v2825_v23, %v1167_v19  ;;  %v328_v22 = vsel %vm257_vm8, %v2745_v2, 0.0  ;;  %vm397_vm11 = vcmp.eq.s32.totalorder %v3074_v11, 1 }
  0x70   : > { %2215 = vst [vmem:[%s2899_s3 + $0x30] sm:$0xff] %v2146_v18  ;;  %vm537_vm15 = vcmp.eq.s32.totalorder %v3074_v11, 2  ;;  %v1447_v24 = vsel %vm1376_vm14, %v2835_v27, %v1307_v21  ;;  %v468_v25 = vsel %vm397_vm11, %v2756_v4, %v328_v22  ;;  %vm677_vm0 = vcmp.eq.s32.totalorder %v3074_v11, 3 }
  0x71   : > { %vm817_vm9 = vcmp.eq.s32.totalorder %v3074_v11, 4  ;;  %v1587_v26 = vsel %vm1516_vm7, %v2844_v30, %v1447_v24  ;;  %vm1936_vm1 = vcmp.eq.s32.totalorder %v3038_v56, 12  ;;  %v608_v28 = vsel %vm537_vm15, %v2768_v7, %v468_v25  ;;  %v3218_v25 = vld [vmem:[%s2711_s28 + $0x60] sm:$0xff] }
  0x72   : > { %vm957_vm2 = vcmp.eq.s32.totalorder %v3074_v11, 5  ;;  %v1727_v29 = vsel %vm1656_vm6, %v2853_v34, %v1587_v26  ;;  %vm2076_vm3 = vcmp.eq.s32.totalorder %v3038_v56, 13  ;;  %v748_v31 = vsel %vm677_vm0, %v2781_v10, %v608_v28 }
  0x73   : > { %vm1097_vm10 = vcmp.eq.s32.totalorder %v3074_v11, 6  ;;  %v1867_v33 = vsel %vm1796_vm4, %v2862_v37, %v1727_v29  ;;  %v888_v35 = vsel %vm817_vm9, %v2795_v14, %v748_v31  ;;  %vm1237_vm12 = vcmp.eq.s32.totalorder %v3074_v11, 7 }
  0x74   : > { %vm1377_vm5 = vcmp.eq.s32.totalorder %v3074_v11, 8  ;;  %v2007_v36 = vsel %vm1936_vm1, %v2871_v41, %v1867_v33  ;;  %v1028_v38 = vsel %vm957_vm2, %v2805_v17, %v888_v35  ;;  %vm1517_vm13 = vcmp.eq.s32.totalorder %v3074_v11, 9 }
  0x75   : > { %vm1657_vm14 = vcmp.eq.s32.totalorder %v3074_v11, 10  ;;  %v2147_v39 = vsel %vm2076_vm3, %v2880_v44, %v2007_v36  ;;  %v1168_v40 = vsel %vm1097_vm10, %v2815_v20, %v1028_v38  ;;  %vm1797_vm7 = vcmp.eq.s32.totalorder %v3074_v11, 11 }
  0x76   : > { %vm258_vm6 = vcmp.eq.s32.totalorder %v3110_v32, 0  ;;  %2216 = vst [vmem:[%s2899_s3 + $0x38] sm:$0xff] %v2147_v39  ;;  %v1308_v42 = vsel %vm1237_vm12, %v2825_v23, %v1168_v40  ;;  %vm398_vm4 = vcmp.eq.s32.totalorder %v3110_v32, 1  ;;  %vm538_vm8 = vcmp.eq.s32.totalorder %v3110_v32, 2 }
  0x77   : > { %v329_v43 = vsel %vm258_vm6, %v2745_v2, 0.0  ;;  %v1448_v45 = vsel %vm1377_vm5, %v2835_v27, %v1308_v42  ;;  %vm678_vm11 = vcmp.eq.s32.totalorder %v3110_v32, 3  ;;  %vm818_vm15 = vcmp.eq.s32.totalorder %v3110_v32, 4 }
  0x78   : > { %v469_v46 = vsel %vm398_vm4, %v2756_v4, %v329_v43  ;;  %v1588_v47 = vsel %vm1517_vm13, %v2844_v30, %v1448_v45  ;;  %vm1937_vm0 = vcmp.eq.s32.totalorder %v3074_v11, 12  ;;  %vm958_vm9 = vcmp.eq.s32.totalorder %v3110_v32, 5 }
  0x79   : > { %v609_v48 = vsel %vm538_vm8, %v2768_v7, %v469_v46  ;;  %v1728_v49 = vsel %vm1657_vm14, %v2853_v34, %v1588_v47  ;;  %vm2077_vm1 = vcmp.eq.s32.totalorder %v3074_v11, 13  ;;  %vm1098_vm2 = vcmp.eq.s32.totalorder %v3110_v32, 6  ;;  %v3254_v46 = vld [vmem:[%s2711_s28 + $0x68] sm:$0xff] }
  0x7a   : > { %v749_v50 = vsel %vm678_vm11, %v2781_v10, %v609_v48  ;;  %v1868_v52 = vsel %vm1797_vm7, %v2862_v37, %v1728_v49  ;;  %vm1238_vm3 = vcmp.eq.s32.totalorder %v3110_v32, 7  ;;  %vm1378_vm10 = vcmp.eq.s32.totalorder %v3110_v32, 8 }
  0x7b   : > { %v889_v53 = vsel %vm818_vm15, %v2795_v14, %v749_v50  ;;  %v2008_v54 = vsel %vm1937_vm0, %v2871_v41, %v1868_v52  ;;  %vm1518_vm12 = vcmp.eq.s32.totalorder %v3110_v32, 9  ;;  %vm1658_vm5 = vcmp.eq.s32.totalorder %v3110_v32, 10 }
  0x7c   : > { %v1029_v55 = vsel %vm958_vm9, %v2805_v17, %v889_v53  ;;  %v2148_v56 = vsel %vm2077_vm1, %v2880_v44, %v2008_v54  ;;  %vm1798_vm13 = vcmp.eq.s32.totalorder %v3110_v32, 11  ;;  %vm259_vm14 = vcmp.eq.s32.totalorder %v3146_v51, 0 }
  0x7d   : > { %v1169_v57 = vsel %vm1098_vm2, %v2815_v20, %v1029_v55  ;;  %2217 = vst [vmem:[%s2899_s3 + $0x40] sm:$0xff] %v2148_v56  ;;  %v330_v59 = vsel %vm259_vm14, %v2745_v2, 0.0  ;;  %vm399_vm7 = vcmp.eq.s32.totalorder %v3146_v51, 1  ;;  %vm539_vm6 = vcmp.eq.s32.totalorder %v3146_v51, 2 }
  0x7e   : > { %v1309_v58 = vsel %vm1238_vm3, %v2825_v23, %v1169_v57  ;;  %v470_v61 = vsel %vm399_vm7, %v2756_v4, %v330_v59  ;;  %vm679_vm4 = vcmp.eq.s32.totalorder %v3146_v51, 3  ;;  %vm819_vm8 = vcmp.eq.s32.totalorder %v3146_v51, 4 }
  0x7f   : > { %v1449_v60 = vsel %vm1378_vm10, %v2835_v27, %v1309_v58  ;;  %vm1938_vm11 = vcmp.eq.s32.totalorder %v3110_v32, 12  ;;  %v610_v63 = vsel %vm539_vm6, %v2768_v7, %v470_v61  ;;  %vm959_vm15 = vcmp.eq.s32.totalorder %v3146_v51, 5  ;;  %v3290_v61 = vld [vmem:[%s2711_s28 + $0x70] sm:$0xff] }
  0x80   : > { %v1589_v62 = vsel %vm1518_vm12, %v2844_v30, %v1449_v60  ;;  %vm2078_vm0 = vcmp.eq.s32.totalorder %v3110_v32, 13  ;;  %v750_v1 = vsel %vm679_vm4, %v2781_v10, %v610_v63  ;;  %vm1099_vm9 = vcmp.eq.s32.totalorder %v3146_v51, 6 }
  0x81   : > { %v1729_v0 = vsel %vm1658_vm5, %v2853_v34, %v1589_v62  ;;  %v890_v6 = vsel %vm819_vm8, %v2795_v14, %v750_v1  ;;  %vm1239_vm1 = vcmp.eq.s32.totalorder %v3146_v51, 7  ;;  %vm1379_vm2 = vcmp.eq.s32.totalorder %v3146_v51, 8 }
  0x82   : > { %v1869_v5 = vsel %vm1798_vm13, %v2862_v37, %v1729_v0  ;;  %v1030_v9 = vsel %vm959_vm15, %v2805_v17, %v890_v6  ;;  %vm1519_vm3 = vcmp.eq.s32.totalorder %v3146_v51, 9  ;;  %vm1659_vm10 = vcmp.eq.s32.totalorder %v3146_v51, 10 }
  0x83   : > { %v2009_v8 = vsel %vm1938_vm11, %v2871_v41, %v1869_v5  ;;  %v1170_v12 = vsel %vm1099_vm9, %v2815_v20, %v1030_v9  ;;  %vm1799_vm12 = vcmp.eq.s32.totalorder %v3146_v51, 11  ;;  %vm260_vm5 = vcmp.eq.s32.totalorder %v3182_v3, 0 }
  0x84   : > { %v2149_v11 = vsel %vm2078_vm0, %v2880_v44, %v2009_v8  ;;  %v1310_v13 = vsel %vm1239_vm1, %v2825_v23, %v1170_v12  ;;  %v331_v15 = vsel %vm260_vm5, %v2745_v2, 0.0  ;;  %vm400_vm13 = vcmp.eq.s32.totalorder %v3182_v3, 1 }
  0x85   : > { %2218 = vst [vmem:[%s2899_s3 + $0x48] sm:$0xff] %v2149_v11  ;;  %vm540_vm14 = vcmp.eq.s32.totalorder %v3182_v3, 2  ;;  %v1450_v16 = vsel %vm1379_vm2, %v2835_v27, %v1310_v13  ;;  %v471_v18 = vsel %vm400_vm13, %v2756_v4, %v331_v15  ;;  %vm680_vm7 = vcmp.eq.s32.totalorder %v3182_v3, 3 }
  0x86   : > { %vm820_vm6 = vcmp.eq.s32.totalorder %v3182_v3, 4  ;;  %v1590_v19 = vsel %vm1519_vm3, %v2844_v30, %v1450_v16  ;;  %vm1939_vm4 = vcmp.eq.s32.totalorder %v3146_v51, 12  ;;  %v611_v21 = vsel %vm540_vm14, %v2768_v7, %v471_v18  ;;  %v3326_v18 = vld [vmem:[%s2711_s28 + $0x78] sm:$0xff] }
  0x87   : > { %vm960_vm8 = vcmp.eq.s32.totalorder %v3182_v3, 5  ;;  %v1730_v22 = vsel %vm1659_vm10, %v2853_v34, %v1590_v19  ;;  %vm2079_vm11 = vcmp.eq.s32.totalorder %v3146_v51, 13  ;;  %v751_v24 = vsel %vm680_vm7, %v2781_v10, %v611_v21 }
  0x88   : > { %vm1100_vm15 = vcmp.eq.s32.totalorder %v3182_v3, 6  ;;  %v1870_v26 = vsel %vm1799_vm12, %v2862_v37, %v1730_v22  ;;  %v891_v28 = vsel %vm820_vm6, %v2795_v14, %v751_v24  ;;  %vm1240_vm0 = vcmp.eq.s32.totalorder %v3182_v3, 7 }
  0x89   : > { %vm1380_vm9 = vcmp.eq.s32.totalorder %v3182_v3, 8  ;;  %v2010_v29 = vsel %vm1939_vm4, %v2871_v41, %v1870_v26  ;;  %v1031_v31 = vsel %vm960_vm8, %v2805_v17, %v891_v28  ;;  %vm1520_vm1 = vcmp.eq.s32.totalorder %v3182_v3, 9 }
  0x8a   : > { %vm1660_vm2 = vcmp.eq.s32.totalorder %v3182_v3, 10  ;;  %v2150_v32 = vsel %vm2079_vm11, %v2880_v44, %v2010_v29  ;;  %v1171_v33 = vsel %vm1100_vm15, %v2815_v20, %v1031_v31  ;;  %vm1800_vm3 = vcmp.eq.s32.totalorder %v3182_v3, 11 }
  0x8b   : > { %vm261_vm10 = vcmp.eq.s32.totalorder %v3218_v25, 0  ;;  %2219 = vst [vmem:[%s2899_s3 + $0x50] sm:$0xff] %v2150_v32  ;;  %v1311_v35 = vsel %vm1240_vm0, %v2825_v23, %v1171_v33  ;;  %vm401_vm12 = vcmp.eq.s32.totalorder %v3218_v25, 1  ;;  %vm541_vm5 = vcmp.eq.s32.totalorder %v3218_v25, 2 }
  0x8c   : > { %v332_v36 = vsel %vm261_vm10, %v2745_v2, 0.0  ;;  %v1451_v38 = vsel %vm1380_vm9, %v2835_v27, %v1311_v35  ;;  %vm681_vm13 = vcmp.eq.s32.totalorder %v3218_v25, 3  ;;  %vm821_vm14 = vcmp.eq.s32.totalorder %v3218_v25, 4 }
  0x8d   : > { %v472_v39 = vsel %vm401_vm12, %v2756_v4, %v332_v36  ;;  %v1591_v40 = vsel %vm1520_vm1, %v2844_v30, %v1451_v38  ;;  %vm1940_vm7 = vcmp.eq.s32.totalorder %v3182_v3, 12  ;;  %vm961_vm6 = vcmp.eq.s32.totalorder %v3218_v25, 5 }
  0x8e   : > { %v612_v42 = vsel %vm541_vm5, %v2768_v7, %v472_v39  ;;  %v1731_v43 = vsel %vm1660_vm2, %v2853_v34, %v1591_v40  ;;  %vm2080_vm4 = vcmp.eq.s32.totalorder %v3182_v3, 13  ;;  %vm1101_vm8 = vcmp.eq.s32.totalorder %v3218_v25, 6  ;;  %v3362_v39 = vld [vmem:[%s2711_s28 + $0x80] sm:$0xff] }
  0x8f   : > { %v752_v45 = vsel %vm681_vm13, %v2781_v10, %v612_v42  ;;  %v1871_v47 = vsel %vm1800_vm3, %v2862_v37, %v1731_v43  ;;  %vm1241_vm11 = vcmp.eq.s32.totalorder %v3218_v25, 7  ;;  %vm1381_vm15 = vcmp.eq.s32.totalorder %v3218_v25, 8 }
  0x90   : > { %v892_v48 = vsel %vm821_vm14, %v2795_v14, %v752_v45  ;;  %v2011_v49 = vsel %vm1940_vm7, %v2871_v41, %v1871_v47  ;;  %vm1521_vm0 = vcmp.eq.s32.totalorder %v3218_v25, 9  ;;  %vm1661_vm9 = vcmp.eq.s32.totalorder %v3218_v25, 10 }
  0x91   : > { %v1032_v50 = vsel %vm961_vm6, %v2805_v17, %v892_v48  ;;  %v2151_v51 = vsel %vm2080_vm4, %v2880_v44, %v2011_v49  ;;  %vm1801_vm1 = vcmp.eq.s32.totalorder %v3218_v25, 11  ;;  %vm262_vm2 = vcmp.eq.s32.totalorder %v3254_v46, 0 }
  0x92   : > { %v1172_v52 = vsel %vm1101_vm8, %v2815_v20, %v1032_v50  ;;  %2220 = vst [vmem:[%s2899_s3 + $0x58] sm:$0xff] %v2151_v51  ;;  %v333_v54 = vsel %vm262_vm2, %v2745_v2, 0.0  ;;  %vm402_vm3 = vcmp.eq.s32.totalorder %v3254_v46, 1  ;;  %vm542_vm10 = vcmp.eq.s32.totalorder %v3254_v46, 2 }
  0x93   : > { %v1312_v53 = vsel %vm1241_vm11, %v2825_v23, %v1172_v52  ;;  %v473_v56 = vsel %vm402_vm3, %v2756_v4, %v333_v54  ;;  %vm682_vm12 = vcmp.eq.s32.totalorder %v3254_v46, 3  ;;  %vm822_vm5 = vcmp.eq.s32.totalorder %v3254_v46, 4 }
  0x94   : > { %v1452_v55 = vsel %vm1381_vm15, %v2835_v27, %v1312_v53  ;;  %vm1941_vm13 = vcmp.eq.s32.totalorder %v3218_v25, 12  ;;  %v613_v58 = vsel %vm542_vm10, %v2768_v7, %v473_v56  ;;  %vm962_vm14 = vcmp.eq.s32.totalorder %v3254_v46, 5  ;;  %v3398_v56 = vld [vmem:[%s2711_s28 + $0x88] sm:$0xff] }
  0x95   : > { %v1592_v57 = vsel %vm1521_vm0, %v2844_v30, %v1452_v55  ;;  %vm2081_vm7 = vcmp.eq.s32.totalorder %v3218_v25, 13  ;;  %v753_v60 = vsel %vm682_vm12, %v2781_v10, %v613_v58  ;;  %vm1102_vm6 = vcmp.eq.s32.totalorder %v3254_v46, 6 }
  0x96   : > { %v1732_v59 = vsel %vm1661_vm9, %v2853_v34, %v1592_v57  ;;  %v893_v63 = vsel %vm822_vm5, %v2795_v14, %v753_v60  ;;  %vm1242_vm4 = vcmp.eq.s32.totalorder %v3254_v46, 7  ;;  %vm1382_vm8 = vcmp.eq.s32.totalorder %v3254_v46, 8 }
  0x97   : > { %v1872_v62 = vsel %vm1801_vm1, %v2862_v37, %v1732_v59  ;;  %v1033_v1 = vsel %vm962_vm14, %v2805_v17, %v893_v63  ;;  %vm1522_vm11 = vcmp.eq.s32.totalorder %v3254_v46, 9  ;;  %vm1662_vm15 = vcmp.eq.s32.totalorder %v3254_v46, 10 }
  0x98   : > { %v2012_v0 = vsel %vm1941_vm13, %v2871_v41, %v1872_v62  ;;  %v1173_v5 = vsel %vm1102_vm6, %v2815_v20, %v1033_v1  ;;  %vm1802_vm0 = vcmp.eq.s32.totalorder %v3254_v46, 11  ;;  %vm263_vm9 = vcmp.eq.s32.totalorder %v3290_v61, 0 }
  0x99   : > { %v2152_v3 = vsel %vm2081_vm7, %v2880_v44, %v2012_v0  ;;  %v1313_v6 = vsel %vm1242_vm4, %v2825_v23, %v1173_v5  ;;  %v334_v8 = vsel %vm263_vm9, %v2745_v2, 0.0  ;;  %vm403_vm1 = vcmp.eq.s32.totalorder %v3290_v61, 1 }
  0x9a   : > { %2221 = vst [vmem:[%s2899_s3 + $0x60] sm:$0xff] %v2152_v3  ;;  %vm543_vm2 = vcmp.eq.s32.totalorder %v3290_v61, 2  ;;  %v1453_v9 = vsel %vm1382_vm8, %v2835_v27, %v1313_v6  ;;  %v474_v11 = vsel %vm403_vm1, %v2756_v4, %v334_v8  ;;  %vm683_vm3 = vcmp.eq.s32.totalorder %v3290_v61, 3 }
  0x9b   : > { %vm823_vm10 = vcmp.eq.s32.totalorder %v3290_v61, 4  ;;  %v1593_v12 = vsel %vm1522_vm11, %v2844_v30, %v1453_v9  ;;  %vm1942_vm12 = vcmp.eq.s32.totalorder %v3254_v46, 12  ;;  %v614_v13 = vsel %vm543_vm2, %v2768_v7, %v474_v11  ;;  %v3434_v11 = vld [vmem:[%s2711_s28 + $0x90] sm:$0xff] }
  0x9c   : > { %vm963_vm5 = vcmp.eq.s32.totalorder %v3290_v61, 5  ;;  %v1733_v15 = vsel %vm1662_vm15, %v2853_v34, %v1593_v12  ;;  %vm2082_vm13 = vcmp.eq.s32.totalorder %v3254_v46, 13  ;;  %v754_v16 = vsel %vm683_vm3, %v2781_v10, %v614_v13 }
  0x9d   : > { %vm1103_vm14 = vcmp.eq.s32.totalorder %v3290_v61, 6  ;;  %v1873_v19 = vsel %vm1802_vm0, %v2862_v37, %v1733_v15  ;;  %v894_v21 = vsel %vm823_vm10, %v2795_v14, %v754_v16  ;;  %vm1243_vm7 = vcmp.eq.s32.totalorder %v3290_v61, 7 }
  0x9e   : > { %vm1383_vm6 = vcmp.eq.s32.totalorder %v3290_v61, 8  ;;  %v2013_v22 = vsel %vm1942_vm12, %v2871_v41, %v1873_v19  ;;  %v1034_v24 = vsel %vm963_vm5, %v2805_v17, %v894_v21  ;;  %vm1523_vm4 = vcmp.eq.s32.totalorder %v3290_v61, 9 }
  0x9f   : > { %vm1663_vm8 = vcmp.eq.s32.totalorder %v3290_v61, 10  ;;  %v2153_v25 = vsel %vm2082_vm13, %v2880_v44, %v2013_v22  ;;  %v1174_v26 = vsel %vm1103_vm14, %v2815_v20, %v1034_v24  ;;  %vm1803_vm11 = vcmp.eq.s32.totalorder %v3290_v61, 11 }
  0xa0   : > { %vm264_vm15 = vcmp.eq.s32.totalorder %v3326_v18, 0  ;;  %2222 = vst [vmem:[%s2899_s3 + $0x68] sm:$0xff] %v2153_v25  ;;  %v1314_v28 = vsel %vm1243_vm7, %v2825_v23, %v1174_v26  ;;  %vm404_vm0 = vcmp.eq.s32.totalorder %v3326_v18, 1  ;;  %vm544_vm9 = vcmp.eq.s32.totalorder %v3326_v18, 2 }
  0xa1   : > { %v335_v29 = vsel %vm264_vm15, %v2745_v2, 0.0  ;;  %v1454_v31 = vsel %vm1383_vm6, %v2835_v27, %v1314_v28  ;;  %vm684_vm1 = vcmp.eq.s32.totalorder %v3326_v18, 3  ;;  %vm824_vm2 = vcmp.eq.s32.totalorder %v3326_v18, 4 }
  0xa2   : > { %v475_v32 = vsel %vm404_vm0, %v2756_v4, %v335_v29  ;;  %v1594_v33 = vsel %vm1523_vm4, %v2844_v30, %v1454_v31  ;;  %vm1943_vm3 = vcmp.eq.s32.totalorder %v3290_v61, 12  ;;  %vm964_vm10 = vcmp.eq.s32.totalorder %v3326_v18, 5 }
  0xa3   : > { %v615_v35 = vsel %vm544_vm9, %v2768_v7, %v475_v32  ;;  %v1734_v36 = vsel %vm1663_vm8, %v2853_v34, %v1594_v33  ;;  %vm2083_vm12 = vcmp.eq.s32.totalorder %v3290_v61, 13  ;;  %vm1104_vm5 = vcmp.eq.s32.totalorder %v3326_v18, 6  ;;  %v3470_v32 = vld [vmem:[%s2711_s28 + $0x98] sm:$0xff] }
  0xa4   : > { %v755_v38 = vsel %vm684_vm1, %v2781_v10, %v615_v35  ;;  %v1874_v40 = vsel %vm1803_vm11, %v2862_v37, %v1734_v36  ;;  %vm1244_vm13 = vcmp.eq.s32.totalorder %v3326_v18, 7  ;;  %vm1384_vm14 = vcmp.eq.s32.totalorder %v3326_v18, 8 }
  0xa5   : > { %v895_v42 = vsel %vm824_vm2, %v2795_v14, %v755_v38  ;;  %v2014_v43 = vsel %vm1943_vm3, %v2871_v41, %v1874_v40  ;;  %vm1524_vm7 = vcmp.eq.s32.totalorder %v3326_v18, 9  ;;  %vm1664_vm6 = vcmp.eq.s32.totalorder %v3326_v18, 10 }
  0xa6   : > { %v1035_v45 = vsel %vm964_vm10, %v2805_v17, %v895_v42  ;;  %v2154_v46 = vsel %vm2083_vm12, %v2880_v44, %v2014_v43  ;;  %vm1804_vm4 = vcmp.eq.s32.totalorder %v3326_v18, 11  ;;  %vm265_vm8 = vcmp.eq.s32.totalorder %v3362_v39, 0 }
  0xa7   : > { %v1175_v47 = vsel %vm1104_vm5, %v2815_v20, %v1035_v45  ;;  %2223 = vst [vmem:[%s2899_s3 + $0x70] sm:$0xff] %v2154_v46  ;;  %v336_v49 = vsel %vm265_vm8, %v2745_v2, 0.0  ;;  %vm405_vm11 = vcmp.eq.s32.totalorder %v3362_v39, 1  ;;  %vm545_vm15 = vcmp.eq.s32.totalorder %v3362_v39, 2 }
  0xa8   : > { %v1315_v48 = vsel %vm1244_vm13, %v2825_v23, %v1175_v47  ;;  %v476_v51 = vsel %vm405_vm11, %v2756_v4, %v336_v49  ;;  %vm685_vm0 = vcmp.eq.s32.totalorder %v3362_v39, 3  ;;  %vm825_vm9 = vcmp.eq.s32.totalorder %v3362_v39, 4 }
  0xa9   : > { %v1455_v50 = vsel %vm1384_vm14, %v2835_v27, %v1315_v48  ;;  %vm1944_vm1 = vcmp.eq.s32.totalorder %v3326_v18, 12  ;;  %v616_v53 = vsel %vm545_vm15, %v2768_v7, %v476_v51  ;;  %vm965_vm2 = vcmp.eq.s32.totalorder %v3362_v39, 5  ;;  %v3506_v51 = vld [vmem:[%s2711_s28 + $0xa0] sm:$0xff] }
  0xaa   : > { %v1595_v52 = vsel %vm1524_vm7, %v2844_v30, %v1455_v50  ;;  %vm2084_vm3 = vcmp.eq.s32.totalorder %v3326_v18, 13  ;;  %v756_v55 = vsel %vm685_vm0, %v2781_v10, %v616_v53  ;;  %vm1105_vm10 = vcmp.eq.s32.totalorder %v3362_v39, 6 }
  0xab   : > { %v1735_v54 = vsel %vm1664_vm6, %v2853_v34, %v1595_v52  ;;  %v896_v58 = vsel %vm825_vm9, %v2795_v14, %v756_v55  ;;  %vm1245_vm12 = vcmp.eq.s32.totalorder %v3362_v39, 7  ;;  %vm1385_vm5 = vcmp.eq.s32.totalorder %v3362_v39, 8 }
  0xac   : > { %v1875_v57 = vsel %vm1804_vm4, %v2862_v37, %v1735_v54  ;;  %v1036_v60 = vsel %vm965_vm2, %v2805_v17, %v896_v58  ;;  %vm1525_vm13 = vcmp.eq.s32.totalorder %v3362_v39, 9  ;;  %vm1665_vm14 = vcmp.eq.s32.totalorder %v3362_v39, 10 }
  0xad   : > { %v2015_v59 = vsel %vm1944_vm1, %v2871_v41, %v1875_v57  ;;  %v1176_v62 = vsel %vm1105_vm10, %v2815_v20, %v1036_v60  ;;  %vm1805_vm7 = vcmp.eq.s32.totalorder %v3362_v39, 11  ;;  %vm266_vm6 = vcmp.eq.s32.totalorder %v3398_v56, 0 }
  0xae   : > { %v2155_v61 = vsel %vm2084_vm3, %v2880_v44, %v2015_v59  ;;  %v1316_v63 = vsel %vm1245_vm12, %v2825_v23, %v1176_v62  ;;  %v337_v0 = vsel %vm266_vm6, %v2745_v2, 0.0  ;;  %vm406_vm4 = vcmp.eq.s32.totalorder %v3398_v56, 1 }
  0xaf   : > { %2224 = vst [vmem:[%s2899_s3 + $0x78] sm:$0xff] %v2155_v61  ;;  %vm546_vm8 = vcmp.eq.s32.totalorder %v3398_v56, 2  ;;  %v1456_v1 = vsel %vm1385_vm5, %v2835_v27, %v1316_v63  ;;  %v477_v3 = vsel %vm406_vm4, %v2756_v4, %v337_v0  ;;  %vm686_vm11 = vcmp.eq.s32.totalorder %v3398_v56, 3 }
  0xb0   : > { %vm826_vm15 = vcmp.eq.s32.totalorder %v3398_v56, 4  ;;  %v1596_v5 = vsel %vm1525_vm13, %v2844_v30, %v1456_v1  ;;  %vm1945_vm0 = vcmp.eq.s32.totalorder %v3362_v39, 12  ;;  %v617_v6 = vsel %vm546_vm8, %v2768_v7, %v477_v3  ;;  %v3542_v3 = vld [vmem:[%s2711_s28 + $0xa8] sm:$0xff] }
  0xb1   : > { %vm966_vm9 = vcmp.eq.s32.totalorder %v3398_v56, 5  ;;  %v1736_v8 = vsel %vm1665_vm14, %v2853_v34, %v1596_v5  ;;  %vm2085_vm1 = vcmp.eq.s32.totalorder %v3362_v39, 13  ;;  %v757_v9 = vsel %vm686_vm11, %v2781_v10, %v617_v6 }
  0xb2   : > { %vm1106_vm2 = vcmp.eq.s32.totalorder %v3398_v56, 6  ;;  %v1876_v12 = vsel %vm1805_vm7, %v2862_v37, %v1736_v8  ;;  %v897_v13 = vsel %vm826_vm15, %v2795_v14, %v757_v9  ;;  %vm1246_vm3 = vcmp.eq.s32.totalorder %v3398_v56, 7 }
  0xb3   : > { %vm1386_vm10 = vcmp.eq.s32.totalorder %v3398_v56, 8  ;;  %v2016_v15 = vsel %vm1945_vm0, %v2871_v41, %v1876_v12  ;;  %v1037_v16 = vsel %vm966_vm9, %v2805_v17, %v897_v13  ;;  %vm1526_vm12 = vcmp.eq.s32.totalorder %v3398_v56, 9 }
  0xb4   : > { %vm1666_vm5 = vcmp.eq.s32.totalorder %v3398_v56, 10  ;;  %v2156_v18 = vsel %vm2085_vm1, %v2880_v44, %v2016_v15  ;;  %v1177_v19 = vsel %vm1106_vm2, %v2815_v20, %v1037_v16  ;;  %vm1806_vm13 = vcmp.eq.s32.totalorder %v3398_v56, 11 }
  0xb5   : > { %vm267_vm14 = vcmp.eq.s32.totalorder %v3434_v11, 0  ;;  %2225 = vst [vmem:[%s2899_s3 + $0x80] sm:$0xff] %v2156_v18  ;;  %v1317_v21 = vsel %vm1246_vm3, %v2825_v23, %v1177_v19  ;;  %vm407_vm7 = vcmp.eq.s32.totalorder %v3434_v11, 1  ;;  %vm547_vm6 = vcmp.eq.s32.totalorder %v3434_v11, 2 }
  0xb6   : > { %v338_v22 = vsel %vm267_vm14, %v2745_v2, 0.0  ;;  %v1457_v24 = vsel %vm1386_vm10, %v2835_v27, %v1317_v21  ;;  %vm687_vm4 = vcmp.eq.s32.totalorder %v3434_v11, 3  ;;  %vm827_vm8 = vcmp.eq.s32.totalorder %v3434_v11, 4 }
  0xb7   : > { %v478_v25 = vsel %vm407_vm7, %v2756_v4, %v338_v22  ;;  %v1597_v26 = vsel %vm1526_vm12, %v2844_v30, %v1457_v24  ;;  %vm1946_vm11 = vcmp.eq.s32.totalorder %v3398_v56, 12  ;;  %vm967_vm15 = vcmp.eq.s32.totalorder %v3434_v11, 5 }
  0xb8   : > { %v618_v28 = vsel %vm547_vm6, %v2768_v7, %v478_v25  ;;  %v1737_v29 = vsel %vm1666_vm5, %v2853_v34, %v1597_v26  ;;  %vm2086_vm0 = vcmp.eq.s32.totalorder %v3398_v56, 13  ;;  %vm1107_vm9 = vcmp.eq.s32.totalorder %v3434_v11, 6  ;;  %v3578_v25 = vld [vmem:[%s2711_s28 + $0xb0] sm:$0xff] }
  0xb9   : > { %v758_v31 = vsel %vm687_vm4, %v2781_v10, %v618_v28  ;;  %v1877_v33 = vsel %vm1806_vm13, %v2862_v37, %v1737_v29  ;;  %vm1247_vm1 = vcmp.eq.s32.totalorder %v3434_v11, 7  ;;  %vm1387_vm2 = vcmp.eq.s32.totalorder %v3434_v11, 8 }
  0xba   : > { %v898_v35 = vsel %vm827_vm8, %v2795_v14, %v758_v31  ;;  %v2017_v36 = vsel %vm1946_vm11, %v2871_v41, %v1877_v33  ;;  %vm1527_vm3 = vcmp.eq.s32.totalorder %v3434_v11, 9  ;;  %vm1667_vm10 = vcmp.eq.s32.totalorder %v3434_v11, 10 }
  0xbb   : > { %v1038_v38 = vsel %vm967_vm15, %v2805_v17, %v898_v35  ;;  %v2157_v39 = vsel %vm2086_vm0, %v2880_v44, %v2017_v36  ;;  %vm1807_vm12 = vcmp.eq.s32.totalorder %v3434_v11, 11  ;;  %vm268_vm5 = vcmp.eq.s32.totalorder %v3470_v32, 0 }
  0xbc   : > { %v1178_v40 = vsel %vm1107_vm9, %v2815_v20, %v1038_v38  ;;  %2226 = vst [vmem:[%s2899_s3 + $0x88] sm:$0xff] %v2157_v39  ;;  %v339_v43 = vsel %vm268_vm5, %v2745_v2, 0.0  ;;  %vm408_vm13 = vcmp.eq.s32.totalorder %v3470_v32, 1  ;;  %vm548_vm14 = vcmp.eq.s32.totalorder %v3470_v32, 2 }
  0xbd   : > { %v1318_v42 = vsel %vm1247_vm1, %v2825_v23, %v1178_v40  ;;  %v479_v46 = vsel %vm408_vm13, %v2756_v4, %v339_v43  ;;  %vm688_vm7 = vcmp.eq.s32.totalorder %v3470_v32, 3  ;;  %vm828_vm6 = vcmp.eq.s32.totalorder %v3470_v32, 4 }
  0xbe   : > { %v1458_v45 = vsel %vm1387_vm2, %v2835_v27, %v1318_v42  ;;  %vm1947_vm4 = vcmp.eq.s32.totalorder %v3434_v11, 12  ;;  %v619_v48 = vsel %vm548_vm14, %v2768_v7, %v479_v46  ;;  %vm968_vm8 = vcmp.eq.s32.totalorder %v3470_v32, 5  ;;  %v3614_v46 = vld [vmem:[%s2711_s28 + $0xb8] sm:$0xff] }
  0xbf   : > { %v1598_v47 = vsel %vm1527_vm3, %v2844_v30, %v1458_v45  ;;  %vm2087_vm11 = vcmp.eq.s32.totalorder %v3434_v11, 13  ;;  %v759_v50 = vsel %vm688_vm7, %v2781_v10, %v619_v48  ;;  %vm1108_vm15 = vcmp.eq.s32.totalorder %v3470_v32, 6 }
  0xc0   : > { %v1738_v49 = vsel %vm1667_vm10, %v2853_v34, %v1598_v47  ;;  %v899_v53 = vsel %vm828_vm6, %v2795_v14, %v759_v50  ;;  %vm1248_vm0 = vcmp.eq.s32.totalorder %v3470_v32, 7  ;;  %vm1388_vm9 = vcmp.eq.s32.totalorder %v3470_v32, 8 }
  0xc1   : > { %v1878_v52 = vsel %vm1807_vm12, %v2862_v37, %v1738_v49  ;;  %v1039_v55 = vsel %vm968_vm8, %v2805_v17, %v899_v53  ;;  %vm1528_vm1 = vcmp.eq.s32.totalorder %v3470_v32, 9  ;;  %vm1668_vm2 = vcmp.eq.s32.totalorder %v3470_v32, 10 }
  0xc2   : > { %v2018_v54 = vsel %vm1947_vm4, %v2871_v41, %v1878_v52  ;;  %v1179_v57 = vsel %vm1108_vm15, %v2815_v20, %v1039_v55  ;;  %vm1808_vm3 = vcmp.eq.s32.totalorder %v3470_v32, 11  ;;  %vm269_vm10 = vcmp.eq.s32.totalorder %v3506_v51, 0 }
  0xc3   : > { %v2158_v56 = vsel %vm2087_vm11, %v2880_v44, %v2018_v54  ;;  %v1319_v58 = vsel %vm1248_vm0, %v2825_v23, %v1179_v57  ;;  %v340_v59 = vsel %vm269_vm10, %v2745_v2, 0.0  ;;  %vm409_vm12 = vcmp.eq.s32.totalorder %v3506_v51, 1 }
  0xc4   : > { %2227 = vst [vmem:[%s2899_s3 + $0x90] sm:$0xff] %v2158_v56  ;;  %vm549_vm5 = vcmp.eq.s32.totalorder %v3506_v51, 2  ;;  %v1459_v60 = vsel %vm1388_vm9, %v2835_v27, %v1319_v58  ;;  %v480_v61 = vsel %vm409_vm12, %v2756_v4, %v340_v59  ;;  %vm689_vm13 = vcmp.eq.s32.totalorder %v3506_v51, 3 }
  0xc5   : > { %vm829_vm14 = vcmp.eq.s32.totalorder %v3506_v51, 4  ;;  %v1599_v62 = vsel %vm1528_vm1, %v2844_v30, %v1459_v60  ;;  %vm1948_vm7 = vcmp.eq.s32.totalorder %v3470_v32, 12  ;;  %v620_v63 = vsel %vm549_vm5, %v2768_v7, %v480_v61  ;;  %v3650_v61 = vld [vmem:[%s2711_s28 + $0xc0] sm:$0xff] }
  0xc6   : > { %vm969_vm6 = vcmp.eq.s32.totalorder %v3506_v51, 5  ;;  %v1739_v0 = vsel %vm1668_vm2, %v2853_v34, %v1599_v62  ;;  %vm2088_vm4 = vcmp.eq.s32.totalorder %v3470_v32, 13  ;;  %v760_v1 = vsel %vm689_vm13, %v2781_v10, %v620_v63 }
  0xc7   : > { %vm1109_vm8 = vcmp.eq.s32.totalorder %v3506_v51, 6  ;;  %v1879_v5 = vsel %vm1808_vm3, %v2862_v37, %v1739_v0  ;;  %v900_v6 = vsel %vm829_vm14, %v2795_v14, %v760_v1  ;;  %vm1249_vm11 = vcmp.eq.s32.totalorder %v3506_v51, 7 }
  0xc8   : > { %vm1389_vm15 = vcmp.eq.s32.totalorder %v3506_v51, 8  ;;  %v2019_v8 = vsel %vm1948_vm7, %v2871_v41, %v1879_v5  ;;  %v1040_v9 = vsel %vm969_vm6, %v2805_v17, %v900_v6  ;;  %vm1529_vm0 = vcmp.eq.s32.totalorder %v3506_v51, 9 }
  0xc9   : > { %vm1669_vm9 = vcmp.eq.s32.totalorder %v3506_v51, 10  ;;  %v2159_v11 = vsel %vm2088_vm4, %v2880_v44, %v2019_v8  ;;  %v1180_v12 = vsel %vm1109_vm8, %v2815_v20, %v1040_v9  ;;  %vm1809_vm1 = vcmp.eq.s32.totalorder %v3506_v51, 11 }
  0xca   : > { %vm270_vm2 = vcmp.eq.s32.totalorder %v3542_v3, 0  ;;  %2228 = vst [vmem:[%s2899_s3 + $0x98] sm:$0xff] %v2159_v11  ;;  %v1320_v13 = vsel %vm1249_vm11, %v2825_v23, %v1180_v12  ;;  %vm410_vm3 = vcmp.eq.s32.totalorder %v3542_v3, 1  ;;  %vm550_vm10 = vcmp.eq.s32.totalorder %v3542_v3, 2 }
  0xcb   : > { %v341_v15 = vsel %vm270_vm2, %v2745_v2, 0.0  ;;  %v1460_v16 = vsel %vm1389_vm15, %v2835_v27, %v1320_v13  ;;  %vm690_vm12 = vcmp.eq.s32.totalorder %v3542_v3, 3  ;;  %vm830_vm5 = vcmp.eq.s32.totalorder %v3542_v3, 4 }
  0xcc   : > { %v481_v18 = vsel %vm410_vm3, %v2756_v4, %v341_v15  ;;  %v1600_v19 = vsel %vm1529_vm0, %v2844_v30, %v1460_v16  ;;  %vm1949_vm13 = vcmp.eq.s32.totalorder %v3506_v51, 12  ;;  %vm970_vm14 = vcmp.eq.s32.totalorder %v3542_v3, 5 }
  0xcd   : > { %v621_v21 = vsel %vm550_vm10, %v2768_v7, %v481_v18  ;;  %v1740_v22 = vsel %vm1669_vm9, %v2853_v34, %v1600_v19  ;;  %vm2089_vm7 = vcmp.eq.s32.totalorder %v3506_v51, 13  ;;  %vm1110_vm6 = vcmp.eq.s32.totalorder %v3542_v3, 6  ;;  %v3686_v18 = vld [vmem:[%s2711_s28 + $0xc8] sm:$0xff] }
  0xce   : > { %v761_v24 = vsel %vm690_vm12, %v2781_v10, %v621_v21  ;;  %v1880_v26 = vsel %vm1809_vm1, %v2862_v37, %v1740_v22  ;;  %vm1250_vm4 = vcmp.eq.s32.totalorder %v3542_v3, 7  ;;  %vm1390_vm8 = vcmp.eq.s32.totalorder %v3542_v3, 8 }
  0xcf   : > { %v901_v28 = vsel %vm830_vm5, %v2795_v14, %v761_v24  ;;  %v2020_v29 = vsel %vm1949_vm13, %v2871_v41, %v1880_v26  ;;  %vm1530_vm11 = vcmp.eq.s32.totalorder %v3542_v3, 9  ;;  %vm1670_vm15 = vcmp.eq.s32.totalorder %v3542_v3, 10 }
  0xd0   : > { %v1041_v31 = vsel %vm970_vm14, %v2805_v17, %v901_v28  ;;  %v2160_v32 = vsel %vm2089_vm7, %v2880_v44, %v2020_v29  ;;  %vm1810_vm0 = vcmp.eq.s32.totalorder %v3542_v3, 11  ;;  %vm271_vm9 = vcmp.eq.s32.totalorder %v3578_v25, 0 }
  0xd1   : > { %v1181_v33 = vsel %vm1110_vm6, %v2815_v20, %v1041_v31  ;;  %2229 = vst [vmem:[%s2899_s3 + $0xa0] sm:$0xff] %v2160_v32  ;;  %v342_v36 = vsel %vm271_vm9, %v2745_v2, 0.0  ;;  %vm411_vm1 = vcmp.eq.s32.totalorder %v3578_v25, 1  ;;  %vm551_vm2 = vcmp.eq.s32.totalorder %v3578_v25, 2 }
  0xd2   : > { %v1321_v35 = vsel %vm1250_vm4, %v2825_v23, %v1181_v33  ;;  %v482_v39 = vsel %vm411_vm1, %v2756_v4, %v342_v36  ;;  %vm691_vm3 = vcmp.eq.s32.totalorder %v3578_v25, 3  ;;  %vm831_vm10 = vcmp.eq.s32.totalorder %v3578_v25, 4 }
  0xd3   : > { %v1461_v38 = vsel %vm1390_vm8, %v2835_v27, %v1321_v35  ;;  %vm1950_vm12 = vcmp.eq.s32.totalorder %v3542_v3, 12  ;;  %v622_v42 = vsel %vm551_vm2, %v2768_v7, %v482_v39  ;;  %vm971_vm5 = vcmp.eq.s32.totalorder %v3578_v25, 5  ;;  %v3722_v39 = vld [vmem:[%s2711_s28 + $0xd0] sm:$0xff] }
  0xd4   : > { %v1601_v40 = vsel %vm1530_vm11, %v2844_v30, %v1461_v38  ;;  %vm2090_vm13 = vcmp.eq.s32.totalorder %v3542_v3, 13  ;;  %v762_v45 = vsel %vm691_vm3, %v2781_v10, %v622_v42  ;;  %vm1111_vm14 = vcmp.eq.s32.totalorder %v3578_v25, 6 }
  0xd5   : > { %v1741_v43 = vsel %vm1670_vm15, %v2853_v34, %v1601_v40  ;;  %v902_v48 = vsel %vm831_vm10, %v2795_v14, %v762_v45  ;;  %vm1251_vm7 = vcmp.eq.s32.totalorder %v3578_v25, 7  ;;  %vm1391_vm6 = vcmp.eq.s32.totalorder %v3578_v25, 8 }
  0xd6   : > { %v1881_v47 = vsel %vm1810_vm0, %v2862_v37, %v1741_v43  ;;  %v1042_v50 = vsel %vm971_vm5, %v2805_v17, %v902_v48  ;;  %vm1531_vm4 = vcmp.eq.s32.totalorder %v3578_v25, 9  ;;  %vm1671_vm8 = vcmp.eq.s32.totalorder %v3578_v25, 10 }
  0xd7   : > { %v2021_v49 = vsel %vm1950_vm12, %v2871_v41, %v1881_v47  ;;  %v1182_v52 = vsel %vm1111_vm14, %v2815_v20, %v1042_v50  ;;  %vm1811_vm11 = vcmp.eq.s32.totalorder %v3578_v25, 11  ;;  %vm272_vm15 = vcmp.eq.s32.totalorder %v3614_v46, 0 }
  0xd8   : > { %v2161_v51 = vsel %vm2090_vm13, %v2880_v44, %v2021_v49  ;;  %v1322_v53 = vsel %vm1251_vm7, %v2825_v23, %v1182_v52  ;;  %v343_v54 = vsel %vm272_vm15, %v2745_v2, 0.0  ;;  %vm412_vm0 = vcmp.eq.s32.totalorder %v3614_v46, 1 }
  0xd9   : > { %2230 = vst [vmem:[%s2899_s3 + $0xa8] sm:$0xff] %v2161_v51  ;;  %vm552_vm9 = vcmp.eq.s32.totalorder %v3614_v46, 2  ;;  %v1462_v55 = vsel %vm1391_vm6, %v2835_v27, %v1322_v53  ;;  %v483_v56 = vsel %vm412_vm0, %v2756_v4, %v343_v54  ;;  %vm692_vm1 = vcmp.eq.s32.totalorder %v3614_v46, 3 }
  0xda   : > { %vm832_vm2 = vcmp.eq.s32.totalorder %v3614_v46, 4  ;;  %v1602_v57 = vsel %vm1531_vm4, %v2844_v30, %v1462_v55  ;;  %vm1951_vm3 = vcmp.eq.s32.totalorder %v3578_v25, 12  ;;  %v623_v58 = vsel %vm552_vm9, %v2768_v7, %v483_v56  ;;  %v3758_v56 = vld [vmem:[%s2711_s28 + $0xd8] sm:$0xff] }
  0xdb   : > { %vm972_vm10 = vcmp.eq.s32.totalorder %v3614_v46, 5  ;;  %v1742_v59 = vsel %vm1671_vm8, %v2853_v34, %v1602_v57  ;;  %vm2091_vm12 = vcmp.eq.s32.totalorder %v3578_v25, 13  ;;  %v763_v60 = vsel %vm692_vm1, %v2781_v10, %v623_v58 }
  0xdc   : > { %vm1112_vm5 = vcmp.eq.s32.totalorder %v3614_v46, 6  ;;  %v1882_v62 = vsel %vm1811_vm11, %v2862_v37, %v1742_v59  ;;  %v903_v63 = vsel %vm832_vm2, %v2795_v14, %v763_v60  ;;  %vm1252_vm13 = vcmp.eq.s32.totalorder %v3614_v46, 7 }
  0xdd   : > { %vm1392_vm14 = vcmp.eq.s32.totalorder %v3614_v46, 8  ;;  %v2022_v0 = vsel %vm1951_vm3, %v2871_v41, %v1882_v62  ;;  %v1043_v1 = vsel %vm972_vm10, %v2805_v17, %v903_v63  ;;  %vm1532_vm7 = vcmp.eq.s32.totalorder %v3614_v46, 9 }
  0xde   : > { %vm1672_vm6 = vcmp.eq.s32.totalorder %v3614_v46, 10  ;;  %v2162_v3 = vsel %vm2091_vm12, %v2880_v44, %v2022_v0  ;;  %v1183_v5 = vsel %vm1112_vm5, %v2815_v20, %v1043_v1  ;;  %vm1812_vm4 = vcmp.eq.s32.totalorder %v3614_v46, 11 }
  0xdf   : > { %vm273_vm8 = vcmp.eq.s32.totalorder %v3650_v61, 0  ;;  %2231 = vst [vmem:[%s2899_s3 + $0xb0] sm:$0xff] %v2162_v3  ;;  %v1323_v6 = vsel %vm1252_vm13, %v2825_v23, %v1183_v5  ;;  %vm413_vm11 = vcmp.eq.s32.totalorder %v3650_v61, 1  ;;  %vm553_vm15 = vcmp.eq.s32.totalorder %v3650_v61, 2 }
  0xe0   : > { %v344_v8 = vsel %vm273_vm8, %v2745_v2, 0.0  ;;  %v1463_v9 = vsel %vm1392_vm14, %v2835_v27, %v1323_v6  ;;  %vm693_vm0 = vcmp.eq.s32.totalorder %v3650_v61, 3  ;;  %vm833_vm9 = vcmp.eq.s32.totalorder %v3650_v61, 4 }
  0xe1   : > { %v484_v11 = vsel %vm413_vm11, %v2756_v4, %v344_v8  ;;  %v1603_v12 = vsel %vm1532_vm7, %v2844_v30, %v1463_v9  ;;  %vm1952_vm1 = vcmp.eq.s32.totalorder %v3614_v46, 12  ;;  %vm973_vm2 = vcmp.eq.s32.totalorder %v3650_v61, 5 }
  0xe2   : > { %v624_v13 = vsel %vm553_vm15, %v2768_v7, %v484_v11  ;;  %v1743_v15 = vsel %vm1672_vm6, %v2853_v34, %v1603_v12  ;;  %vm2092_vm3 = vcmp.eq.s32.totalorder %v3614_v46, 13  ;;  %vm1113_vm10 = vcmp.eq.s32.totalorder %v3650_v61, 6  ;;  %v3794_v11 = vld [vmem:[%s2711_s28 + $0xe0] sm:$0xff] }
  0xe3   : > { %v764_v16 = vsel %vm693_vm0, %v2781_v10, %v624_v13  ;;  %v1883_v19 = vsel %vm1812_vm4, %v2862_v37, %v1743_v15  ;;  %vm1253_vm12 = vcmp.eq.s32.totalorder %v3650_v61, 7  ;;  %vm1393_vm5 = vcmp.eq.s32.totalorder %v3650_v61, 8 }
  0xe4   : > { %v904_v21 = vsel %vm833_vm9, %v2795_v14, %v764_v16  ;;  %v2023_v22 = vsel %vm1952_vm1, %v2871_v41, %v1883_v19  ;;  %vm1533_vm13 = vcmp.eq.s32.totalorder %v3650_v61, 9  ;;  %vm1673_vm14 = vcmp.eq.s32.totalorder %v3650_v61, 10 }
  0xe5   : > { %v1044_v24 = vsel %vm973_vm2, %v2805_v17, %v904_v21  ;;  %v2163_v25 = vsel %vm2092_vm3, %v2880_v44, %v2023_v22  ;;  %vm1813_vm7 = vcmp.eq.s32.totalorder %v3650_v61, 11  ;;  %vm274_vm6 = vcmp.eq.s32.totalorder %v3686_v18, 0 }
  0xe6   : > { %v1184_v26 = vsel %vm1113_vm10, %v2815_v20, %v1044_v24  ;;  %2232 = vst [vmem:[%s2899_s3 + $0xb8] sm:$0xff] %v2163_v25  ;;  %v345_v29 = vsel %vm274_vm6, %v2745_v2, 0.0  ;;  %vm414_vm4 = vcmp.eq.s32.totalorder %v3686_v18, 1  ;;  %vm554_vm8 = vcmp.eq.s32.totalorder %v3686_v18, 2 }
  0xe7   : > { %v1324_v28 = vsel %vm1253_vm12, %v2825_v23, %v1184_v26  ;;  %v485_v32 = vsel %vm414_vm4, %v2756_v4, %v345_v29  ;;  %vm694_vm11 = vcmp.eq.s32.totalorder %v3686_v18, 3  ;;  %vm834_vm15 = vcmp.eq.s32.totalorder %v3686_v18, 4 }
  0xe8   : > { %v1464_v31 = vsel %vm1393_vm5, %v2835_v27, %v1324_v28  ;;  %vm1953_vm0 = vcmp.eq.s32.totalorder %v3650_v61, 12  ;;  %v625_v35 = vsel %vm554_vm8, %v2768_v7, %v485_v32  ;;  %vm974_vm9 = vcmp.eq.s32.totalorder %v3686_v18, 5  ;;  %v3830_v32 = vld [vmem:[%s2711_s28 + $0xe8] sm:$0xff] }
  0xe9   : > { %v1604_v33 = vsel %vm1533_vm13, %v2844_v30, %v1464_v31  ;;  %vm2093_vm1 = vcmp.eq.s32.totalorder %v3650_v61, 13  ;;  %v765_v38 = vsel %vm694_vm11, %v2781_v10, %v625_v35  ;;  %vm1114_vm2 = vcmp.eq.s32.totalorder %v3686_v18, 6 }
  0xea   : > { %v1744_v36 = vsel %vm1673_vm14, %v2853_v34, %v1604_v33  ;;  %v905_v42 = vsel %vm834_vm15, %v2795_v14, %v765_v38  ;;  %vm1254_vm3 = vcmp.eq.s32.totalorder %v3686_v18, 7  ;;  %vm1394_vm10 = vcmp.eq.s32.totalorder %v3686_v18, 8 }
  0xeb   : > { %v1884_v40 = vsel %vm1813_vm7, %v2862_v37, %v1744_v36  ;;  %v1045_v45 = vsel %vm974_vm9, %v2805_v17, %v905_v42  ;;  %vm1534_vm12 = vcmp.eq.s32.totalorder %v3686_v18, 9  ;;  %vm1674_vm5 = vcmp.eq.s32.totalorder %v3686_v18, 10 }
  0xec   : > { %v2024_v43 = vsel %vm1953_vm0, %v2871_v41, %v1884_v40  ;;  %v1185_v47 = vsel %vm1114_vm2, %v2815_v20, %v1045_v45  ;;  %vm1814_vm13 = vcmp.eq.s32.totalorder %v3686_v18, 11  ;;  %vm275_vm14 = vcmp.eq.s32.totalorder %v3722_v39, 0 }
  0xed   : > { %v2164_v46 = vsel %vm2093_vm1, %v2880_v44, %v2024_v43  ;;  %v1325_v48 = vsel %vm1254_vm3, %v2825_v23, %v1185_v47  ;;  %v346_v49 = vsel %vm275_vm14, %v2745_v2, 0.0  ;;  %vm415_vm7 = vcmp.eq.s32.totalorder %v3722_v39, 1 }
  0xee   : > { %2233 = vst [vmem:[%s2899_s3 + $0xc0] sm:$0xff] %v2164_v46  ;;  %vm555_vm6 = vcmp.eq.s32.totalorder %v3722_v39, 2  ;;  %v1465_v50 = vsel %vm1394_vm10, %v2835_v27, %v1325_v48  ;;  %v486_v51 = vsel %vm415_vm7, %v2756_v4, %v346_v49  ;;  %vm695_vm4 = vcmp.eq.s32.totalorder %v3722_v39, 3 }
  0xef   : > { %vm835_vm8 = vcmp.eq.s32.totalorder %v3722_v39, 4  ;;  %v1605_v52 = vsel %vm1534_vm12, %v2844_v30, %v1465_v50  ;;  %vm1954_vm11 = vcmp.eq.s32.totalorder %v3686_v18, 12  ;;  %v626_v53 = vsel %vm555_vm6, %v2768_v7, %v486_v51  ;;  %v3866_v51 = vld [vmem:[%s2711_s28 + $0xf0] sm:$0xff] }
  0xf0   : > { %vm975_vm15 = vcmp.eq.s32.totalorder %v3722_v39, 5  ;;  %v1745_v54 = vsel %vm1674_vm5, %v2853_v34, %v1605_v52  ;;  %vm2094_vm0 = vcmp.eq.s32.totalorder %v3686_v18, 13  ;;  %v766_v55 = vsel %vm695_vm4, %v2781_v10, %v626_v53 }
  0xf1   : > { %vm1115_vm9 = vcmp.eq.s32.totalorder %v3722_v39, 6  ;;  %v1885_v57 = vsel %vm1814_vm13, %v2862_v37, %v1745_v54  ;;  %v906_v58 = vsel %vm835_vm8, %v2795_v14, %v766_v55  ;;  %vm1255_vm1 = vcmp.eq.s32.totalorder %v3722_v39, 7 }
  0xf2   : > { %vm1395_vm2 = vcmp.eq.s32.totalorder %v3722_v39, 8  ;;  %v2025_v59 = vsel %vm1954_vm11, %v2871_v41, %v1885_v57  ;;  %v1046_v60 = vsel %vm975_vm15, %v2805_v17, %v906_v58  ;;  %vm1535_vm3 = vcmp.eq.s32.totalorder %v3722_v39, 9 }
  0xf3   : > { %vm1675_vm10 = vcmp.eq.s32.totalorder %v3722_v39, 10  ;;  %v2165_v61 = vsel %vm2094_vm0, %v2880_v44, %v2025_v59  ;;  %v1186_v62 = vsel %vm1115_vm9, %v2815_v20, %v1046_v60  ;;  %vm1815_vm12 = vcmp.eq.s32.totalorder %v3722_v39, 11 }
  0xf4   : > { %vm276_vm5 = vcmp.eq.s32.totalorder %v3758_v56, 0  ;;  %2234 = vst [vmem:[%s2899_s3 + $0xc8] sm:$0xff] %v2165_v61  ;;  %v1326_v63 = vsel %vm1255_vm1, %v2825_v23, %v1186_v62  ;;  %vm416_vm13 = vcmp.eq.s32.totalorder %v3758_v56, 1  ;;  %vm556_vm14 = vcmp.eq.s32.totalorder %v3758_v56, 2 }
  0xf5   : > { %v347_v0 = vsel %vm276_vm5, %v2745_v2, 0.0  ;;  %v1466_v1 = vsel %vm1395_vm2, %v2835_v27, %v1326_v63  ;;  %vm696_vm7 = vcmp.eq.s32.totalorder %v3758_v56, 3  ;;  %vm836_vm6 = vcmp.eq.s32.totalorder %v3758_v56, 4 }
  0xf6   : > { %v487_v3 = vsel %vm416_vm13, %v2756_v4, %v347_v0  ;;  %v1606_v5 = vsel %vm1535_vm3, %v2844_v30, %v1466_v1  ;;  %vm1955_vm4 = vcmp.eq.s32.totalorder %v3722_v39, 12  ;;  %vm976_vm8 = vcmp.eq.s32.totalorder %v3758_v56, 5 }
  0xf7   : > { %v627_v6 = vsel %vm556_vm14, %v2768_v7, %v487_v3  ;;  %v1746_v8 = vsel %vm1675_vm10, %v2853_v34, %v1606_v5  ;;  %vm2095_vm11 = vcmp.eq.s32.totalorder %v3722_v39, 13  ;;  %vm1116_vm15 = vcmp.eq.s32.totalorder %v3758_v56, 6  ;;  %v3902_v3 = vld [vmem:[%s2711_s28 + $0xf8] sm:$0xff] }
  0xf8   : > { %v767_v9 = vsel %vm696_vm7, %v2781_v10, %v627_v6  ;;  %v1886_v12 = vsel %vm1815_vm12, %v2862_v37, %v1746_v8  ;;  %vm1256_vm0 = vcmp.eq.s32.totalorder %v3758_v56, 7  ;;  %vm1396_vm9 = vcmp.eq.s32.totalorder %v3758_v56, 8 }
  0xf9   : > { %v907_v13 = vsel %vm836_vm6, %v2795_v14, %v767_v9  ;;  %v2026_v15 = vsel %vm1955_vm4, %v2871_v41, %v1886_v12  ;;  %vm1536_vm1 = vcmp.eq.s32.totalorder %v3758_v56, 9  ;;  %vm1676_vm2 = vcmp.eq.s32.totalorder %v3758_v56, 10 }
  0xfa   : > { %v1047_v16 = vsel %vm976_vm8, %v2805_v17, %v907_v13  ;;  %v2166_v18 = vsel %vm2095_vm11, %v2880_v44, %v2026_v15  ;;  %vm1816_vm3 = vcmp.eq.s32.totalorder %v3758_v56, 11  ;;  %vm277_vm10 = vcmp.eq.s32.totalorder %v3794_v11, 0 }
  0xfb   : > { %v1187_v19 = vsel %vm1116_vm15, %v2815_v20, %v1047_v16  ;;  %2235 = vst [vmem:[%s2899_s3 + $0xd0] sm:$0xff] %v2166_v18  ;;  %v348_v22 = vsel %vm277_vm10, %v2745_v2, 0.0  ;;  %vm417_vm12 = vcmp.eq.s32.totalorder %v3794_v11, 1  ;;  %vm557_vm5 = vcmp.eq.s32.totalorder %v3794_v11, 2 }
  0xfc   : > { %v1327_v21 = vsel %vm1256_vm0, %v2825_v23, %v1187_v19  ;;  %v488_v25 = vsel %vm417_vm12, %v2756_v4, %v348_v22  ;;  %vm697_vm13 = vcmp.eq.s32.totalorder %v3794_v11, 3  ;;  %vm837_vm14 = vcmp.eq.s32.totalorder %v3794_v11, 4 }
  0xfd   : > { %v1467_v24 = vsel %vm1396_vm9, %v2835_v27, %v1327_v21  ;;  %vm1956_vm7 = vcmp.eq.s32.totalorder %v3758_v56, 12  ;;  %v628_v28 = vsel %vm557_vm5, %v2768_v7, %v488_v25  ;;  %vm977_vm6 = vcmp.eq.s32.totalorder %v3794_v11, 5  ;;  %v3938_v25 = vld [vmem:[%s2711_s28 + $0x100] sm:$0xff] }
  0xfe   : > { %v1607_v26 = vsel %vm1536_vm1, %v2844_v30, %v1467_v24  ;;  %vm2096_vm4 = vcmp.eq.s32.totalorder %v3758_v56, 13  ;;  %v768_v31 = vsel %vm697_vm13, %v2781_v10, %v628_v28  ;;  %vm1117_vm8 = vcmp.eq.s32.totalorder %v3794_v11, 6 }
  0xff   : > { %v1747_v29 = vsel %vm1676_vm2, %v2853_v34, %v1607_v26  ;;  %v908_v35 = vsel %vm837_vm14, %v2795_v14, %v768_v31  ;;  %vm1257_vm11 = vcmp.eq.s32.totalorder %v3794_v11, 7  ;;  %vm1397_vm15 = vcmp.eq.s32.totalorder %v3794_v11, 8 }
 0x100   : > { %v1887_v33 = vsel %vm1816_vm3, %v2862_v37, %v1747_v29  ;;  %v1048_v38 = vsel %vm977_vm6, %v2805_v17, %v908_v35  ;;  %vm1537_vm0 = vcmp.eq.s32.totalorder %v3794_v11, 9  ;;  %vm1677_vm9 = vcmp.eq.s32.totalorder %v3794_v11, 10 }
 0x101   : > { %v2027_v36 = vsel %vm1956_vm7, %v2871_v41, %v1887_v33  ;;  %v1188_v40 = vsel %vm1117_vm8, %v2815_v20, %v1048_v38  ;;  %vm1817_vm1 = vcmp.eq.s32.totalorder %v3794_v11, 11  ;;  %vm278_vm2 = vcmp.eq.s32.totalorder %v3830_v32, 0 }
 0x102   : > { %v2167_v39 = vsel %vm2096_vm4, %v2880_v44, %v2027_v36  ;;  %v1328_v42 = vsel %vm1257_vm11, %v2825_v23, %v1188_v40  ;;  %v349_v43 = vsel %vm278_vm2, %v2745_v2, 0.0  ;;  %vm418_vm3 = vcmp.eq.s32.totalorder %v3830_v32, 1 }
 0x103   : > { %2236 = vst [vmem:[%s2899_s3 + $0xd8] sm:$0xff] %v2167_v39  ;;  %vm558_vm10 = vcmp.eq.s32.totalorder %v3830_v32, 2  ;;  %v1468_v45 = vsel %vm1397_vm15, %v2835_v27, %v1328_v42  ;;  %v489_v46 = vsel %vm418_vm3, %v2756_v4, %v349_v43  ;;  %vm698_vm12 = vcmp.eq.s32.totalorder %v3830_v32, 3 }
 0x104   : > { %vm838_vm5 = vcmp.eq.s32.totalorder %v3830_v32, 4  ;;  %v1608_v47 = vsel %vm1537_vm0, %v2844_v30, %v1468_v45  ;;  %vm1957_vm13 = vcmp.eq.s32.totalorder %v3794_v11, 12  ;;  %v629_v48 = vsel %vm558_vm10, %v2768_v7, %v489_v46  ;;  %v3974_v46 = vld [vmem:[%s2711_s28 + $0x108] sm:$0xff] }
 0x105   : > { %vm978_vm14 = vcmp.eq.s32.totalorder %v3830_v32, 5  ;;  %v1748_v49 = vsel %vm1677_vm9, %v2853_v34, %v1608_v47  ;;  %vm2097_vm7 = vcmp.eq.s32.totalorder %v3794_v11, 13  ;;  %v769_v50 = vsel %vm698_vm12, %v2781_v10, %v629_v48 }
 0x106   : > { %vm1118_vm6 = vcmp.eq.s32.totalorder %v3830_v32, 6  ;;  %v1888_v52 = vsel %vm1817_vm1, %v2862_v37, %v1748_v49  ;;  %v909_v53 = vsel %vm838_vm5, %v2795_v14, %v769_v50  ;;  %vm1258_vm4 = vcmp.eq.s32.totalorder %v3830_v32, 7 }
 0x107   : > { %vm1398_vm8 = vcmp.eq.s32.totalorder %v3830_v32, 8  ;;  %v2028_v54 = vsel %vm1957_vm13, %v2871_v41, %v1888_v52  ;;  %v1049_v55 = vsel %vm978_vm14, %v2805_v17, %v909_v53  ;;  %vm1538_vm11 = vcmp.eq.s32.totalorder %v3830_v32, 9 }
 0x108   : > { %vm1678_vm15 = vcmp.eq.s32.totalorder %v3830_v32, 10  ;;  %v2168_v56 = vsel %vm2097_vm7, %v2880_v44, %v2028_v54  ;;  %v1189_v57 = vsel %vm1118_vm6, %v2815_v20, %v1049_v55  ;;  %vm1818_vm0 = vcmp.eq.s32.totalorder %v3830_v32, 11 }
 0x109   : > { %vm279_vm9 = vcmp.eq.s32.totalorder %v3866_v51, 0  ;;  %2237 = vst [vmem:[%s2899_s3 + $0xe0] sm:$0xff] %v2168_v56  ;;  %v1329_v58 = vsel %vm1258_vm4, %v2825_v23, %v1189_v57  ;;  %vm419_vm1 = vcmp.eq.s32.totalorder %v3866_v51, 1  ;;  %vm559_vm2 = vcmp.eq.s32.totalorder %v3866_v51, 2 }
 0x10a   : > { %v350_v59 = vsel %vm279_vm9, %v2745_v2, 0.0  ;;  %v1469_v60 = vsel %vm1398_vm8, %v2835_v27, %v1329_v58  ;;  %vm699_vm3 = vcmp.eq.s32.totalorder %v3866_v51, 3  ;;  %vm839_vm10 = vcmp.eq.s32.totalorder %v3866_v51, 4 }
 0x10b   : > { %v490_v61 = vsel %vm419_vm1, %v2756_v4, %v350_v59  ;;  %v1609_v62 = vsel %vm1538_vm11, %v2844_v30, %v1469_v60  ;;  %vm1958_vm12 = vcmp.eq.s32.totalorder %v3830_v32, 12  ;;  %vm979_vm5 = vcmp.eq.s32.totalorder %v3866_v51, 5 }
 0x10c   : > { %v630_v63 = vsel %vm559_vm2, %v2768_v7, %v490_v61  ;;  %v1749_v0 = vsel %vm1678_vm15, %v2853_v34, %v1609_v62  ;;  %vm2098_vm13 = vcmp.eq.s32.totalorder %v3830_v32, 13  ;;  %vm1119_vm14 = vcmp.eq.s32.totalorder %v3866_v51, 6  ;;  %v4010_v61 = vld [vmem:[%s2711_s28 + $0x110] sm:$0xff] }
 0x10d   : > { %v770_v1 = vsel %vm699_vm3, %v2781_v10, %v630_v63  ;;  %v1889_v5 = vsel %vm1818_vm0, %v2862_v37, %v1749_v0  ;;  %vm1259_vm7 = vcmp.eq.s32.totalorder %v3866_v51, 7  ;;  %vm1399_vm6 = vcmp.eq.s32.totalorder %v3866_v51, 8 }
 0x10e   : > { %v910_v6 = vsel %vm839_vm10, %v2795_v14, %v770_v1  ;;  %v2029_v8 = vsel %vm1958_vm12, %v2871_v41, %v1889_v5  ;;  %vm1539_vm4 = vcmp.eq.s32.totalorder %v3866_v51, 9  ;;  %vm1679_vm8 = vcmp.eq.s32.totalorder %v3866_v51, 10 }
 0x10f   : > { %v1050_v9 = vsel %vm979_vm5, %v2805_v17, %v910_v6  ;;  %v2169_v11 = vsel %vm2098_vm13, %v2880_v44, %v2029_v8  ;;  %vm1819_vm11 = vcmp.eq.s32.totalorder %v3866_v51, 11  ;;  %vm280_vm15 = vcmp.eq.s32.totalorder %v3902_v3, 0 }
 0x110   : > { %v1190_v12 = vsel %vm1119_vm14, %v2815_v20, %v1050_v9  ;;  %2238 = vst [vmem:[%s2899_s3 + $0xe8] sm:$0xff] %v2169_v11  ;;  %v351_v15 = vsel %vm280_vm15, %v2745_v2, 0.0  ;;  %vm420_vm0 = vcmp.eq.s32.totalorder %v3902_v3, 1  ;;  %vm560_vm9 = vcmp.eq.s32.totalorder %v3902_v3, 2 }
 0x111   : > { %v1330_v13 = vsel %vm1259_vm7, %v2825_v23, %v1190_v12  ;;  %v491_v18 = vsel %vm420_vm0, %v2756_v4, %v351_v15  ;;  %vm700_vm1 = vcmp.eq.s32.totalorder %v3902_v3, 3  ;;  %vm840_vm2 = vcmp.eq.s32.totalorder %v3902_v3, 4 }
 0x112   : > { %v1470_v16 = vsel %vm1399_vm6, %v2835_v27, %v1330_v13  ;;  %vm1959_vm3 = vcmp.eq.s32.totalorder %v3866_v51, 12  ;;  %v631_v21 = vsel %vm560_vm9, %v2768_v7, %v491_v18  ;;  %vm980_vm10 = vcmp.eq.s32.totalorder %v3902_v3, 5  ;;  %v4046_v18 = vld [vmem:[%s2711_s28 + $0x118] sm:$0xff] }
 0x113   : > { %v1610_v19 = vsel %vm1539_vm4, %v2844_v30, %v1470_v16  ;;  %vm2099_vm12 = vcmp.eq.s32.totalorder %v3866_v51, 13  ;;  %v771_v24 = vsel %vm700_vm1, %v2781_v10, %v631_v21  ;;  %vm1120_vm5 = vcmp.eq.s32.totalorder %v3902_v3, 6 }
 0x114   : > { %v1750_v22 = vsel %vm1679_vm8, %v2853_v34, %v1610_v19  ;;  %v911_v28 = vsel %vm840_vm2, %v2795_v14, %v771_v24  ;;  %vm1260_vm13 = vcmp.eq.s32.totalorder %v3902_v3, 7  ;;  %vm1400_vm14 = vcmp.eq.s32.totalorder %v3902_v3, 8 }
 0x115   : > { %v1890_v26 = vsel %vm1819_vm11, %v2862_v37, %v1750_v22  ;;  %v1051_v31 = vsel %vm980_vm10, %v2805_v17, %v911_v28  ;;  %vm1540_vm7 = vcmp.eq.s32.totalorder %v3902_v3, 9  ;;  %vm1680_vm6 = vcmp.eq.s32.totalorder %v3902_v3, 10 }
 0x116   : > { %v2030_v29 = vsel %vm1959_vm3, %v2871_v41, %v1890_v26  ;;  %v1191_v33 = vsel %vm1120_vm5, %v2815_v20, %v1051_v31  ;;  %vm1820_vm4 = vcmp.eq.s32.totalorder %v3902_v3, 11  ;;  %vm281_vm8 = vcmp.eq.s32.totalorder %v3938_v25, 0 }
 0x117   : > { %v2170_v32 = vsel %vm2099_vm12, %v2880_v44, %v2030_v29  ;;  %v1331_v35 = vsel %vm1260_vm13, %v2825_v23, %v1191_v33  ;;  %v352_v36 = vsel %vm281_vm8, %v2745_v2, 0.0  ;;  %vm421_vm11 = vcmp.eq.s32.totalorder %v3938_v25, 1 }
 0x118   : > { %2239 = vst [vmem:[%s2899_s3 + $0xf0] sm:$0xff] %v2170_v32  ;;  %vm561_vm15 = vcmp.eq.s32.totalorder %v3938_v25, 2  ;;  %v1471_v38 = vsel %vm1400_vm14, %v2835_v27, %v1331_v35  ;;  %v492_v39 = vsel %vm421_vm11, %v2756_v4, %v352_v36  ;;  %vm701_vm0 = vcmp.eq.s32.totalorder %v3938_v25, 3 }
 0x119   : > { %vm841_vm9 = vcmp.eq.s32.totalorder %v3938_v25, 4  ;;  %v1611_v40 = vsel %vm1540_vm7, %v2844_v30, %v1471_v38  ;;  %vm1960_vm1 = vcmp.eq.s32.totalorder %v3902_v3, 12  ;;  %v632_v42 = vsel %vm561_vm15, %v2768_v7, %v492_v39  ;;  %v4082_v39 = vld [vmem:[%s2711_s28 + $0x120] sm:$0xff] }
 0x11a   : > { %vm981_vm2 = vcmp.eq.s32.totalorder %v3938_v25, 5  ;;  %v1751_v43 = vsel %vm1680_vm6, %v2853_v34, %v1611_v40  ;;  %vm2100_vm3 = vcmp.eq.s32.totalorder %v3902_v3, 13  ;;  %v772_v45 = vsel %vm701_vm0, %v2781_v10, %v632_v42 }
 0x11b   : > { %vm1121_vm10 = vcmp.eq.s32.totalorder %v3938_v25, 6  ;;  %v1891_v47 = vsel %vm1820_vm4, %v2862_v37, %v1751_v43  ;;  %v912_v48 = vsel %vm841_vm9, %v2795_v14, %v772_v45  ;;  %vm1261_vm12 = vcmp.eq.s32.totalorder %v3938_v25, 7 }
 0x11c   : > { %vm1401_vm5 = vcmp.eq.s32.totalorder %v3938_v25, 8  ;;  %v2031_v49 = vsel %vm1960_vm1, %v2871_v41, %v1891_v47  ;;  %v1052_v50 = vsel %vm981_vm2, %v2805_v17, %v912_v48  ;;  %vm1541_vm13 = vcmp.eq.s32.totalorder %v3938_v25, 9 }
 0x11d   : > { %vm1681_vm14 = vcmp.eq.s32.totalorder %v3938_v25, 10  ;;  %v2171_v51 = vsel %vm2100_vm3, %v2880_v44, %v2031_v49  ;;  %v1192_v52 = vsel %vm1121_vm10, %v2815_v20, %v1052_v50  ;;  %vm1821_vm7 = vcmp.eq.s32.totalorder %v3938_v25, 11 }
 0x11e   : > { %vm282_vm6 = vcmp.eq.s32.totalorder %v3974_v46, 0  ;;  %2240 = vst [vmem:[%s2899_s3 + $0xf8] sm:$0xff] %v2171_v51  ;;  %v1332_v53 = vsel %vm1261_vm12, %v2825_v23, %v1192_v52  ;;  %vm422_vm4 = vcmp.eq.s32.totalorder %v3974_v46, 1  ;;  %vm562_vm8 = vcmp.eq.s32.totalorder %v3974_v46, 2 }
 0x11f   : > { %v353_v54 = vsel %vm282_vm6, %v2745_v2, 0.0  ;;  %v1472_v55 = vsel %vm1401_vm5, %v2835_v27, %v1332_v53  ;;  %vm702_vm11 = vcmp.eq.s32.totalorder %v3974_v46, 3  ;;  %vm842_vm15 = vcmp.eq.s32.totalorder %v3974_v46, 4 }
 0x120   : > { %v493_v56 = vsel %vm422_vm4, %v2756_v4, %v353_v54  ;;  %v1612_v57 = vsel %vm1541_vm13, %v2844_v30, %v1472_v55  ;;  %vm1961_vm0 = vcmp.eq.s32.totalorder %v3938_v25, 12  ;;  %vm982_vm9 = vcmp.eq.s32.totalorder %v3974_v46, 5 }
 0x121   : > { %v633_v58 = vsel %vm562_vm8, %v2768_v7, %v493_v56  ;;  %v1752_v59 = vsel %vm1681_vm14, %v2853_v34, %v1612_v57  ;;  %vm2101_vm1 = vcmp.eq.s32.totalorder %v3938_v25, 13  ;;  %vm1122_vm2 = vcmp.eq.s32.totalorder %v3974_v46, 6  ;;  %v4118_v56 = vld [vmem:[%s2711_s28 + $0x128] sm:$0xff] }
 0x122   : > { %v773_v60 = vsel %vm702_vm11, %v2781_v10, %v633_v58  ;;  %v1892_v62 = vsel %vm1821_vm7, %v2862_v37, %v1752_v59  ;;  %vm1262_vm3 = vcmp.eq.s32.totalorder %v3974_v46, 7  ;;  %vm1402_vm10 = vcmp.eq.s32.totalorder %v3974_v46, 8 }
 0x123   : > { %v913_v63 = vsel %vm842_vm15, %v2795_v14, %v773_v60  ;;  %v2032_v0 = vsel %vm1961_vm0, %v2871_v41, %v1892_v62  ;;  %vm1542_vm12 = vcmp.eq.s32.totalorder %v3974_v46, 9  ;;  %vm1682_vm5 = vcmp.eq.s32.totalorder %v3974_v46, 10 }
 0x124   : > { %v1053_v1 = vsel %vm982_vm9, %v2805_v17, %v913_v63  ;;  %v2172_v3 = vsel %vm2101_vm1, %v2880_v44, %v2032_v0  ;;  %vm1822_vm13 = vcmp.eq.s32.totalorder %v3974_v46, 11  ;;  %vm283_vm14 = vcmp.eq.s32.totalorder %v4010_v61, 0 }
 0x125   : > { %v1193_v5 = vsel %vm1122_vm2, %v2815_v20, %v1053_v1  ;;  %2241 = vst [vmem:[%s2899_s3 + $0x100] sm:$0xff] %v2172_v3  ;;  %v354_v8 = vsel %vm283_vm14, %v2745_v2, 0.0  ;;  %vm423_vm7 = vcmp.eq.s32.totalorder %v4010_v61, 1  ;;  %vm563_vm6 = vcmp.eq.s32.totalorder %v4010_v61, 2 }
 0x126   : > { %v1333_v6 = vsel %vm1262_vm3, %v2825_v23, %v1193_v5  ;;  %v494_v11 = vsel %vm423_vm7, %v2756_v4, %v354_v8  ;;  %vm703_vm4 = vcmp.eq.s32.totalorder %v4010_v61, 3  ;;  %vm843_vm8 = vcmp.eq.s32.totalorder %v4010_v61, 4 }
 0x127   : > { %v1473_v9 = vsel %vm1402_vm10, %v2835_v27, %v1333_v6  ;;  %vm1962_vm11 = vcmp.eq.s32.totalorder %v3974_v46, 12  ;;  %v634_v13 = vsel %vm563_vm6, %v2768_v7, %v494_v11  ;;  %vm983_vm15 = vcmp.eq.s32.totalorder %v4010_v61, 5  ;;  %v4154_v11 = vld [vmem:[%s2711_s28 + $0x130] sm:$0xff] }
 0x128   : > { %v1613_v12 = vsel %vm1542_vm12, %v2844_v30, %v1473_v9  ;;  %vm2102_vm0 = vcmp.eq.s32.totalorder %v3974_v46, 13  ;;  %v774_v16 = vsel %vm703_vm4, %v2781_v10, %v634_v13  ;;  %vm1123_vm9 = vcmp.eq.s32.totalorder %v4010_v61, 6 }
 0x129   : > { %v1753_v15 = vsel %vm1682_vm5, %v2853_v34, %v1613_v12  ;;  %v914_v21 = vsel %vm843_vm8, %v2795_v14, %v774_v16  ;;  %vm1263_vm1 = vcmp.eq.s32.totalorder %v4010_v61, 7  ;;  %vm1403_vm2 = vcmp.eq.s32.totalorder %v4010_v61, 8 }
 0x12a   : > { %v1893_v19 = vsel %vm1822_vm13, %v2862_v37, %v1753_v15  ;;  %v1054_v24 = vsel %vm983_vm15, %v2805_v17, %v914_v21  ;;  %vm1543_vm3 = vcmp.eq.s32.totalorder %v4010_v61, 9  ;;  %vm1683_vm10 = vcmp.eq.s32.totalorder %v4010_v61, 10 }
 0x12b   : > { %v2033_v22 = vsel %vm1962_vm11, %v2871_v41, %v1893_v19  ;;  %v1194_v26 = vsel %vm1123_vm9, %v2815_v20, %v1054_v24  ;;  %vm1823_vm12 = vcmp.eq.s32.totalorder %v4010_v61, 11  ;;  %vm284_vm5 = vcmp.eq.s32.totalorder %v4046_v18, 0 }
 0x12c   : > { %v2173_v25 = vsel %vm2102_vm0, %v2880_v44, %v2033_v22  ;;  %v1334_v28 = vsel %vm1263_vm1, %v2825_v23, %v1194_v26  ;;  %v355_v29 = vsel %vm284_vm5, %v2745_v2, 0.0  ;;  %vm424_vm13 = vcmp.eq.s32.totalorder %v4046_v18, 1 }
 0x12d   : > { %2242 = vst [vmem:[%s2899_s3 + $0x108] sm:$0xff] %v2173_v25  ;;  %vm564_vm14 = vcmp.eq.s32.totalorder %v4046_v18, 2  ;;  %v1474_v31 = vsel %vm1403_vm2, %v2835_v27, %v1334_v28  ;;  %v495_v32 = vsel %vm424_vm13, %v2756_v4, %v355_v29  ;;  %vm704_vm7 = vcmp.eq.s32.totalorder %v4046_v18, 3 }
 0x12e   : > { %vm844_vm6 = vcmp.eq.s32.totalorder %v4046_v18, 4  ;;  %v1614_v33 = vsel %vm1543_vm3, %v2844_v30, %v1474_v31  ;;  %vm1963_vm4 = vcmp.eq.s32.totalorder %v4010_v61, 12  ;;  %v635_v35 = vsel %vm564_vm14, %v2768_v7, %v495_v32  ;;  %v4190_v32 = vld [vmem:[%s2711_s28 + $0x138] sm:$0xff] }
 0x12f   : > { %vm984_vm8 = vcmp.eq.s32.totalorder %v4046_v18, 5  ;;  %v1754_v36 = vsel %vm1683_vm10, %v2853_v34, %v1614_v33  ;;  %vm2103_vm11 = vcmp.eq.s32.totalorder %v4010_v61, 13  ;;  %v775_v38 = vsel %vm704_vm7, %v2781_v10, %v635_v35 }
 0x130   : > { %vm1124_vm15 = vcmp.eq.s32.totalorder %v4046_v18, 6  ;;  %v1894_v40 = vsel %vm1823_vm12, %v2862_v37, %v1754_v36  ;;  %v915_v42 = vsel %vm844_vm6, %v2795_v14, %v775_v38  ;;  %vm1264_vm0 = vcmp.eq.s32.totalorder %v4046_v18, 7 }
 0x131   : > { %vm1404_vm9 = vcmp.eq.s32.totalorder %v4046_v18, 8  ;;  %v2034_v43 = vsel %vm1963_vm4, %v2871_v41, %v1894_v40  ;;  %v1055_v45 = vsel %vm984_vm8, %v2805_v17, %v915_v42  ;;  %vm1544_vm1 = vcmp.eq.s32.totalorder %v4046_v18, 9 }
 0x132   : > { %vm1684_vm2 = vcmp.eq.s32.totalorder %v4046_v18, 10  ;;  %v2174_v46 = vsel %vm2103_vm11, %v2880_v44, %v2034_v43  ;;  %v1195_v47 = vsel %vm1124_vm15, %v2815_v20, %v1055_v45  ;;  %vm1824_vm3 = vcmp.eq.s32.totalorder %v4046_v18, 11 }
 0x133   : > { %vm285_vm10 = vcmp.eq.s32.totalorder %v4082_v39, 0  ;;  %2243 = vst [vmem:[%s2899_s3 + $0x110] sm:$0xff] %v2174_v46  ;;  %v1335_v48 = vsel %vm1264_vm0, %v2825_v23, %v1195_v47  ;;  %vm425_vm12 = vcmp.eq.s32.totalorder %v4082_v39, 1  ;;  %vm565_vm5 = vcmp.eq.s32.totalorder %v4082_v39, 2 }
 0x134   : > { %v356_v49 = vsel %vm285_vm10, %v2745_v2, 0.0  ;;  %v1475_v50 = vsel %vm1404_vm9, %v2835_v27, %v1335_v48  ;;  %vm705_vm13 = vcmp.eq.s32.totalorder %v4082_v39, 3  ;;  %vm845_vm14 = vcmp.eq.s32.totalorder %v4082_v39, 4 }
 0x135   : > { %v496_v51 = vsel %vm425_vm12, %v2756_v4, %v356_v49  ;;  %v1615_v52 = vsel %vm1544_vm1, %v2844_v30, %v1475_v50  ;;  %vm1964_vm7 = vcmp.eq.s32.totalorder %v4046_v18, 12  ;;  %vm985_vm6 = vcmp.eq.s32.totalorder %v4082_v39, 5 }
 0x136   : > { %v636_v53 = vsel %vm565_vm5, %v2768_v7, %v496_v51  ;;  %v1755_v54 = vsel %vm1684_vm2, %v2853_v34, %v1615_v52  ;;  %vm2104_vm4 = vcmp.eq.s32.totalorder %v4046_v18, 13  ;;  %vm1125_vm8 = vcmp.eq.s32.totalorder %v4082_v39, 6  ;;  %v4226_v51 = vld [vmem:[%s2711_s28 + $0x140] sm:$0xff] }
 0x137   : > { %v776_v55 = vsel %vm705_vm13, %v2781_v10, %v636_v53  ;;  %v1895_v57 = vsel %vm1824_vm3, %v2862_v37, %v1755_v54  ;;  %vm1265_vm11 = vcmp.eq.s32.totalorder %v4082_v39, 7  ;;  %vm1405_vm15 = vcmp.eq.s32.totalorder %v4082_v39, 8 }
 0x138   : > { %v916_v58 = vsel %vm845_vm14, %v2795_v14, %v776_v55  ;;  %v2035_v59 = vsel %vm1964_vm7, %v2871_v41, %v1895_v57  ;;  %vm1545_vm0 = vcmp.eq.s32.totalorder %v4082_v39, 9  ;;  %vm1685_vm9 = vcmp.eq.s32.totalorder %v4082_v39, 10 }
 0x139   : > { %v1056_v60 = vsel %vm985_vm6, %v2805_v17, %v916_v58  ;;  %v2175_v61 = vsel %vm2104_vm4, %v2880_v44, %v2035_v59  ;;  %vm1825_vm1 = vcmp.eq.s32.totalorder %v4082_v39, 11  ;;  %vm286_vm2 = vcmp.eq.s32.totalorder %v4118_v56, 0 }
 0x13a   : > { %v1196_v62 = vsel %vm1125_vm8, %v2815_v20, %v1056_v60  ;;  %2244 = vst [vmem:[%s2899_s3 + $0x118] sm:$0xff] %v2175_v61  ;;  %v357_v0 = vsel %vm286_vm2, %v2745_v2, 0.0  ;;  %vm426_vm3 = vcmp.eq.s32.totalorder %v4118_v56, 1  ;;  %vm566_vm10 = vcmp.eq.s32.totalorder %v4118_v56, 2 }
 0x13b   : > { %v1336_v63 = vsel %vm1265_vm11, %v2825_v23, %v1196_v62  ;;  %v497_v3 = vsel %vm426_vm3, %v2756_v4, %v357_v0  ;;  %vm706_vm12 = vcmp.eq.s32.totalorder %v4118_v56, 3  ;;  %vm846_vm5 = vcmp.eq.s32.totalorder %v4118_v56, 4 }
 0x13c   : > { %v1476_v1 = vsel %vm1405_vm15, %v2835_v27, %v1336_v63  ;;  %vm1965_vm13 = vcmp.eq.s32.totalorder %v4082_v39, 12  ;;  %v637_v6 = vsel %vm566_vm10, %v2768_v7, %v497_v3  ;;  %vm986_vm14 = vcmp.eq.s32.totalorder %v4118_v56, 5  ;;  %v4262_v3 = vld [vmem:[%s2711_s28 + $0x148] sm:$0xff] }
 0x13d   : > { %v1616_v5 = vsel %vm1545_vm0, %v2844_v30, %v1476_v1  ;;  %vm2105_vm7 = vcmp.eq.s32.totalorder %v4082_v39, 13  ;;  %v777_v9 = vsel %vm706_vm12, %v2781_v10, %v637_v6  ;;  %vm1126_vm6 = vcmp.eq.s32.totalorder %v4118_v56, 6 }
 0x13e   : > { %v1756_v8 = vsel %vm1685_vm9, %v2853_v34, %v1616_v5  ;;  %v917_v13 = vsel %vm846_vm5, %v2795_v14, %v777_v9  ;;  %vm1266_vm4 = vcmp.eq.s32.totalorder %v4118_v56, 7  ;;  %vm1406_vm8 = vcmp.eq.s32.totalorder %v4118_v56, 8 }
 0x13f   : > { %v1896_v12 = vsel %vm1825_vm1, %v2862_v37, %v1756_v8  ;;  %v1057_v16 = vsel %vm986_vm14, %v2805_v17, %v917_v13  ;;  %vm1546_vm11 = vcmp.eq.s32.totalorder %v4118_v56, 9  ;;  %vm1686_vm15 = vcmp.eq.s32.totalorder %v4118_v56, 10 }
 0x140   : > { %v2036_v15 = vsel %vm1965_vm13, %v2871_v41, %v1896_v12  ;;  %v1197_v19 = vsel %vm1126_vm6, %v2815_v20, %v1057_v16  ;;  %vm1826_vm0 = vcmp.eq.s32.totalorder %v4118_v56, 11  ;;  %vm287_vm9 = vcmp.eq.s32.totalorder %v4154_v11, 0 }
 0x141   : > { %v2176_v18 = vsel %vm2105_vm7, %v2880_v44, %v2036_v15  ;;  %v1337_v21 = vsel %vm1266_vm4, %v2825_v23, %v1197_v19  ;;  %v358_v22 = vsel %vm287_vm9, %v2745_v2, 0.0  ;;  %vm427_vm1 = vcmp.eq.s32.totalorder %v4154_v11, 1 }
 0x142   : > { %2245 = vst [vmem:[%s2899_s3 + $0x120] sm:$0xff] %v2176_v18  ;;  %vm567_vm2 = vcmp.eq.s32.totalorder %v4154_v11, 2  ;;  %v1477_v24 = vsel %vm1406_vm8, %v2835_v27, %v1337_v21  ;;  %v498_v25 = vsel %vm427_vm1, %v2756_v4, %v358_v22  ;;  %vm707_vm3 = vcmp.eq.s32.totalorder %v4154_v11, 3 }
 0x143   : > { %vm847_vm10 = vcmp.eq.s32.totalorder %v4154_v11, 4  ;;  %v1617_v26 = vsel %vm1546_vm11, %v2844_v30, %v1477_v24  ;;  %vm1966_vm12 = vcmp.eq.s32.totalorder %v4118_v56, 12  ;;  %v638_v28 = vsel %vm567_vm2, %v2768_v7, %v498_v25  ;;  %v4298_v25 = vld [vmem:[%s2711_s28 + $0x150] sm:$0xff] }
 0x144   : > { %vm987_vm5 = vcmp.eq.s32.totalorder %v4154_v11, 5  ;;  %v1757_v29 = vsel %vm1686_vm15, %v2853_v34, %v1617_v26  ;;  %vm2106_vm13 = vcmp.eq.s32.totalorder %v4118_v56, 13  ;;  %v778_v31 = vsel %vm707_vm3, %v2781_v10, %v638_v28 }
 0x145   : > { %vm1127_vm14 = vcmp.eq.s32.totalorder %v4154_v11, 6  ;;  %v1897_v33 = vsel %vm1826_vm0, %v2862_v37, %v1757_v29  ;;  %v918_v35 = vsel %vm847_vm10, %v2795_v14, %v778_v31  ;;  %vm1267_vm7 = vcmp.eq.s32.totalorder %v4154_v11, 7 }
 0x146   : > { %vm1407_vm6 = vcmp.eq.s32.totalorder %v4154_v11, 8  ;;  %v2037_v36 = vsel %vm1966_vm12, %v2871_v41, %v1897_v33  ;;  %v1058_v38 = vsel %vm987_vm5, %v2805_v17, %v918_v35  ;;  %vm1547_vm4 = vcmp.eq.s32.totalorder %v4154_v11, 9 }
 0x147   : > { %vm1687_vm8 = vcmp.eq.s32.totalorder %v4154_v11, 10  ;;  %v2177_v39 = vsel %vm2106_vm13, %v2880_v44, %v2037_v36  ;;  %v1198_v40 = vsel %vm1127_vm14, %v2815_v20, %v1058_v38  ;;  %vm1827_vm11 = vcmp.eq.s32.totalorder %v4154_v11, 11 }
 0x148   : > { %vm288_vm15 = vcmp.eq.s32.totalorder %v4190_v32, 0  ;;  %2246 = vst [vmem:[%s2899_s3 + $0x128] sm:$0xff] %v2177_v39  ;;  %v1338_v42 = vsel %vm1267_vm7, %v2825_v23, %v1198_v40  ;;  %vm428_vm0 = vcmp.eq.s32.totalorder %v4190_v32, 1  ;;  %vm568_vm9 = vcmp.eq.s32.totalorder %v4190_v32, 2 }
 0x149   : > { %v359_v43 = vsel %vm288_vm15, %v2745_v2, 0.0  ;;  %v1478_v45 = vsel %vm1407_vm6, %v2835_v27, %v1338_v42  ;;  %vm708_vm1 = vcmp.eq.s32.totalorder %v4190_v32, 3  ;;  %vm848_vm2 = vcmp.eq.s32.totalorder %v4190_v32, 4 }
 0x14a   : > { %v499_v46 = vsel %vm428_vm0, %v2756_v4, %v359_v43  ;;  %v1618_v47 = vsel %vm1547_vm4, %v2844_v30, %v1478_v45  ;;  %vm1967_vm3 = vcmp.eq.s32.totalorder %v4154_v11, 12  ;;  %vm988_vm10 = vcmp.eq.s32.totalorder %v4190_v32, 5 }
 0x14b   : > { %v639_v48 = vsel %vm568_vm9, %v2768_v7, %v499_v46  ;;  %v1758_v49 = vsel %vm1687_vm8, %v2853_v34, %v1618_v47  ;;  %vm2107_vm12 = vcmp.eq.s32.totalorder %v4154_v11, 13  ;;  %vm1128_vm5 = vcmp.eq.s32.totalorder %v4190_v32, 6  ;;  %v4334_v46 = vld [vmem:[%s2711_s28 + $0x158] sm:$0xff] }
 0x14c   : > { %v779_v50 = vsel %vm708_vm1, %v2781_v10, %v639_v48  ;;  %v1898_v52 = vsel %vm1827_vm11, %v2862_v37, %v1758_v49  ;;  %vm1268_vm13 = vcmp.eq.s32.totalorder %v4190_v32, 7  ;;  %vm1408_vm14 = vcmp.eq.s32.totalorder %v4190_v32, 8 }
 0x14d   : > { %v919_v53 = vsel %vm848_vm2, %v2795_v14, %v779_v50  ;;  %v2038_v54 = vsel %vm1967_vm3, %v2871_v41, %v1898_v52  ;;  %vm1548_vm7 = vcmp.eq.s32.totalorder %v4190_v32, 9  ;;  %vm1688_vm6 = vcmp.eq.s32.totalorder %v4190_v32, 10 }
 0x14e   : > { %v1059_v55 = vsel %vm988_vm10, %v2805_v17, %v919_v53  ;;  %v2178_v56 = vsel %vm2107_vm12, %v2880_v44, %v2038_v54  ;;  %vm1828_vm4 = vcmp.eq.s32.totalorder %v4190_v32, 11  ;;  %vm289_vm8 = vcmp.eq.s32.totalorder %v4226_v51, 0 }
 0x14f   : > { %v1199_v57 = vsel %vm1128_vm5, %v2815_v20, %v1059_v55  ;;  %2247 = vst [vmem:[%s2899_s3 + $0x130] sm:$0xff] %v2178_v56  ;;  %v360_v59 = vsel %vm289_vm8, %v2745_v2, 0.0  ;;  %vm429_vm11 = vcmp.eq.s32.totalorder %v4226_v51, 1  ;;  %vm569_vm15 = vcmp.eq.s32.totalorder %v4226_v51, 2 }
 0x150   : > { %v1339_v58 = vsel %vm1268_vm13, %v2825_v23, %v1199_v57  ;;  %v500_v61 = vsel %vm429_vm11, %v2756_v4, %v360_v59  ;;  %vm709_vm0 = vcmp.eq.s32.totalorder %v4226_v51, 3  ;;  %vm849_vm9 = vcmp.eq.s32.totalorder %v4226_v51, 4 }
 0x151   : > { %v1479_v60 = vsel %vm1408_vm14, %v2835_v27, %v1339_v58  ;;  %vm1968_vm1 = vcmp.eq.s32.totalorder %v4190_v32, 12  ;;  %v640_v63 = vsel %vm569_vm15, %v2768_v7, %v500_v61  ;;  %vm989_vm2 = vcmp.eq.s32.totalorder %v4226_v51, 5  ;;  %v4370_v61 = vld [vmem:[%s2711_s28 + $0x160] sm:$0xff] }
 0x152   : > { %v1619_v62 = vsel %vm1548_vm7, %v2844_v30, %v1479_v60  ;;  %vm2108_vm3 = vcmp.eq.s32.totalorder %v4190_v32, 13  ;;  %v780_v1 = vsel %vm709_vm0, %v2781_v10, %v640_v63  ;;  %vm1129_vm10 = vcmp.eq.s32.totalorder %v4226_v51, 6 }
 0x153   : > { %v1759_v0 = vsel %vm1688_vm6, %v2853_v34, %v1619_v62  ;;  %v920_v6 = vsel %vm849_vm9, %v2795_v14, %v780_v1  ;;  %vm1269_vm12 = vcmp.eq.s32.totalorder %v4226_v51, 7  ;;  %vm1409_vm5 = vcmp.eq.s32.totalorder %v4226_v51, 8 }
 0x154   : > { %v1899_v5 = vsel %vm1828_vm4, %v2862_v37, %v1759_v0  ;;  %v1060_v9 = vsel %vm989_vm2, %v2805_v17, %v920_v6  ;;  %vm1549_vm13 = vcmp.eq.s32.totalorder %v4226_v51, 9  ;;  %vm1689_vm14 = vcmp.eq.s32.totalorder %v4226_v51, 10 }
 0x155   : > { %v2039_v8 = vsel %vm1968_vm1, %v2871_v41, %v1899_v5  ;;  %v1200_v12 = vsel %vm1129_vm10, %v2815_v20, %v1060_v9  ;;  %vm1829_vm7 = vcmp.eq.s32.totalorder %v4226_v51, 11  ;;  %vm290_vm6 = vcmp.eq.s32.totalorder %v4262_v3, 0 }
 0x156   : > { %v2179_v11 = vsel %vm2108_vm3, %v2880_v44, %v2039_v8  ;;  %v1340_v13 = vsel %vm1269_vm12, %v2825_v23, %v1200_v12  ;;  %v361_v15 = vsel %vm290_vm6, %v2745_v2, 0.0  ;;  %vm430_vm4 = vcmp.eq.s32.totalorder %v4262_v3, 1 }
 0x157   : > { %2248 = vst [vmem:[%s2899_s3 + $0x138] sm:$0xff] %v2179_v11  ;;  %vm570_vm8 = vcmp.eq.s32.totalorder %v4262_v3, 2  ;;  %v1480_v16 = vsel %vm1409_vm5, %v2835_v27, %v1340_v13  ;;  %v501_v18 = vsel %vm430_vm4, %v2756_v4, %v361_v15  ;;  %vm710_vm11 = vcmp.eq.s32.totalorder %v4262_v3, 3 }
 0x158   : > { %vm850_vm15 = vcmp.eq.s32.totalorder %v4262_v3, 4  ;;  %v1620_v19 = vsel %vm1549_vm13, %v2844_v30, %v1480_v16  ;;  %vm1969_vm0 = vcmp.eq.s32.totalorder %v4226_v51, 12  ;;  %v641_v21 = vsel %vm570_vm8, %v2768_v7, %v501_v18  ;;  %v4406_v18 = vld [vmem:[%s2711_s28 + $0x168] sm:$0xff] }
 0x159   : > { %vm990_vm9 = vcmp.eq.s32.totalorder %v4262_v3, 5  ;;  %v1760_v22 = vsel %vm1689_vm14, %v2853_v34, %v1620_v19  ;;  %vm2109_vm1 = vcmp.eq.s32.totalorder %v4226_v51, 13  ;;  %v781_v24 = vsel %vm710_vm11, %v2781_v10, %v641_v21 }
 0x15a   : > { %vm1130_vm2 = vcmp.eq.s32.totalorder %v4262_v3, 6  ;;  %v1900_v26 = vsel %vm1829_vm7, %v2862_v37, %v1760_v22  ;;  %v921_v28 = vsel %vm850_vm15, %v2795_v14, %v781_v24  ;;  %vm1270_vm3 = vcmp.eq.s32.totalorder %v4262_v3, 7 }
 0x15b   : > { %vm1410_vm10 = vcmp.eq.s32.totalorder %v4262_v3, 8  ;;  %v2040_v29 = vsel %vm1969_vm0, %v2871_v41, %v1900_v26  ;;  %v1061_v31 = vsel %vm990_vm9, %v2805_v17, %v921_v28  ;;  %vm1550_vm12 = vcmp.eq.s32.totalorder %v4262_v3, 9 }
 0x15c   : > { %vm1690_vm5 = vcmp.eq.s32.totalorder %v4262_v3, 10  ;;  %v2180_v32 = vsel %vm2109_vm1, %v2880_v44, %v2040_v29  ;;  %v1201_v33 = vsel %vm1130_vm2, %v2815_v20, %v1061_v31  ;;  %vm1830_vm13 = vcmp.eq.s32.totalorder %v4262_v3, 11 }
 0x15d   : > { %vm291_vm14 = vcmp.eq.s32.totalorder %v4298_v25, 0  ;;  %2249 = vst [vmem:[%s2899_s3 + $0x140] sm:$0xff] %v2180_v32  ;;  %v1341_v35 = vsel %vm1270_vm3, %v2825_v23, %v1201_v33  ;;  %vm431_vm7 = vcmp.eq.s32.totalorder %v4298_v25, 1  ;;  %vm571_vm6 = vcmp.eq.s32.totalorder %v4298_v25, 2 }
 0x15e   : > { %v362_v36 = vsel %vm291_vm14, %v2745_v2, 0.0  ;;  %v1481_v38 = vsel %vm1410_vm10, %v2835_v27, %v1341_v35  ;;  %vm711_vm4 = vcmp.eq.s32.totalorder %v4298_v25, 3  ;;  %vm851_vm8 = vcmp.eq.s32.totalorder %v4298_v25, 4 }
 0x15f   : > { %v502_v39 = vsel %vm431_vm7, %v2756_v4, %v362_v36  ;;  %v1621_v40 = vsel %vm1550_vm12, %v2844_v30, %v1481_v38  ;;  %vm1970_vm11 = vcmp.eq.s32.totalorder %v4262_v3, 12  ;;  %vm991_vm15 = vcmp.eq.s32.totalorder %v4298_v25, 5 }
 0x160   : > { %v642_v42 = vsel %vm571_vm6, %v2768_v7, %v502_v39  ;;  %v1761_v43 = vsel %vm1690_vm5, %v2853_v34, %v1621_v40  ;;  %vm2110_vm0 = vcmp.eq.s32.totalorder %v4262_v3, 13  ;;  %vm1131_vm9 = vcmp.eq.s32.totalorder %v4298_v25, 6  ;;  %v4442_v39 = vld [vmem:[%s2711_s28 + $0x170] sm:$0xff] }
 0x161   : > { %v782_v45 = vsel %vm711_vm4, %v2781_v10, %v642_v42  ;;  %v1901_v47 = vsel %vm1830_vm13, %v2862_v37, %v1761_v43  ;;  %vm1271_vm1 = vcmp.eq.s32.totalorder %v4298_v25, 7  ;;  %vm1411_vm2 = vcmp.eq.s32.totalorder %v4298_v25, 8 }
 0x162   : > { %v922_v48 = vsel %vm851_vm8, %v2795_v14, %v782_v45  ;;  %v2041_v49 = vsel %vm1970_vm11, %v2871_v41, %v1901_v47  ;;  %vm1551_vm3 = vcmp.eq.s32.totalorder %v4298_v25, 9  ;;  %vm1691_vm10 = vcmp.eq.s32.totalorder %v4298_v25, 10 }
 0x163   : > { %v1062_v50 = vsel %vm991_vm15, %v2805_v17, %v922_v48  ;;  %v2181_v51 = vsel %vm2110_vm0, %v2880_v44, %v2041_v49  ;;  %vm1831_vm12 = vcmp.eq.s32.totalorder %v4298_v25, 11  ;;  %vm292_vm5 = vcmp.eq.s32.totalorder %v4334_v46, 0 }
 0x164   : > { %v1202_v52 = vsel %vm1131_vm9, %v2815_v20, %v1062_v50  ;;  %2250 = vst [vmem:[%s2899_s3 + $0x148] sm:$0xff] %v2181_v51  ;;  %v363_v54 = vsel %vm292_vm5, %v2745_v2, 0.0  ;;  %vm432_vm13 = vcmp.eq.s32.totalorder %v4334_v46, 1  ;;  %vm572_vm14 = vcmp.eq.s32.totalorder %v4334_v46, 2 }
 0x165   : > { %v1342_v53 = vsel %vm1271_vm1, %v2825_v23, %v1202_v52  ;;  %v503_v56 = vsel %vm432_vm13, %v2756_v4, %v363_v54  ;;  %vm712_vm7 = vcmp.eq.s32.totalorder %v4334_v46, 3  ;;  %vm852_vm6 = vcmp.eq.s32.totalorder %v4334_v46, 4 }
 0x166   : > { %v1482_v55 = vsel %vm1411_vm2, %v2835_v27, %v1342_v53  ;;  %vm1971_vm4 = vcmp.eq.s32.totalorder %v4298_v25, 12  ;;  %v643_v58 = vsel %vm572_vm14, %v2768_v7, %v503_v56  ;;  %vm992_vm8 = vcmp.eq.s32.totalorder %v4334_v46, 5  ;;  %v4478_v56 = vld [vmem:[%s2711_s28 + $0x178] sm:$0xff] }
 0x167   : > { %v1622_v57 = vsel %vm1551_vm3, %v2844_v30, %v1482_v55  ;;  %vm2111_vm11 = vcmp.eq.s32.totalorder %v4298_v25, 13  ;;  %v783_v60 = vsel %vm712_vm7, %v2781_v10, %v643_v58  ;;  %vm1132_vm15 = vcmp.eq.s32.totalorder %v4334_v46, 6 }
 0x168   : > { %v1762_v59 = vsel %vm1691_vm10, %v2853_v34, %v1622_v57  ;;  %v923_v63 = vsel %vm852_vm6, %v2795_v14, %v783_v60  ;;  %vm1272_vm0 = vcmp.eq.s32.totalorder %v4334_v46, 7  ;;  %vm1412_vm9 = vcmp.eq.s32.totalorder %v4334_v46, 8 }
 0x169   : > { %v1902_v62 = vsel %vm1831_vm12, %v2862_v37, %v1762_v59  ;;  %v1063_v1 = vsel %vm992_vm8, %v2805_v17, %v923_v63  ;;  %vm1552_vm1 = vcmp.eq.s32.totalorder %v4334_v46, 9  ;;  %vm1692_vm2 = vcmp.eq.s32.totalorder %v4334_v46, 10 }
 0x16a   : > { %v2042_v0 = vsel %vm1971_vm4, %v2871_v41, %v1902_v62  ;;  %v1203_v5 = vsel %vm1132_vm15, %v2815_v20, %v1063_v1  ;;  %vm1832_vm3 = vcmp.eq.s32.totalorder %v4334_v46, 11  ;;  %vm293_vm10 = vcmp.eq.s32.totalorder %v4370_v61, 0 }
 0x16b   : > { %v2182_v3 = vsel %vm2111_vm11, %v2880_v44, %v2042_v0  ;;  %v1343_v6 = vsel %vm1272_vm0, %v2825_v23, %v1203_v5  ;;  %v364_v8 = vsel %vm293_vm10, %v2745_v2, 0.0  ;;  %vm433_vm12 = vcmp.eq.s32.totalorder %v4370_v61, 1 }
 0x16c   : > { %2251 = vst [vmem:[%s2899_s3 + $0x150] sm:$0xff] %v2182_v3  ;;  %vm573_vm5 = vcmp.eq.s32.totalorder %v4370_v61, 2  ;;  %v1483_v9 = vsel %vm1412_vm9, %v2835_v27, %v1343_v6  ;;  %v504_v11 = vsel %vm433_vm12, %v2756_v4, %v364_v8  ;;  %vm713_vm13 = vcmp.eq.s32.totalorder %v4370_v61, 3 }
 0x16d   : > { %vm853_vm14 = vcmp.eq.s32.totalorder %v4370_v61, 4  ;;  %v1623_v12 = vsel %vm1552_vm1, %v2844_v30, %v1483_v9  ;;  %vm1972_vm7 = vcmp.eq.s32.totalorder %v4334_v46, 12  ;;  %v644_v13 = vsel %vm573_vm5, %v2768_v7, %v504_v11  ;;  %v4514_v11 = vld [vmem:[%s2711_s28 + $0x180] sm:$0xff] }
 0x16e   : > { %vm993_vm6 = vcmp.eq.s32.totalorder %v4370_v61, 5  ;;  %v1763_v15 = vsel %vm1692_vm2, %v2853_v34, %v1623_v12  ;;  %vm2112_vm4 = vcmp.eq.s32.totalorder %v4334_v46, 13  ;;  %v784_v16 = vsel %vm713_vm13, %v2781_v10, %v644_v13 }
 0x16f   : > { %vm1133_vm8 = vcmp.eq.s32.totalorder %v4370_v61, 6  ;;  %v1903_v19 = vsel %vm1832_vm3, %v2862_v37, %v1763_v15  ;;  %v924_v21 = vsel %vm853_vm14, %v2795_v14, %v784_v16  ;;  %vm1273_vm11 = vcmp.eq.s32.totalorder %v4370_v61, 7 }
 0x170   : > { %vm1413_vm15 = vcmp.eq.s32.totalorder %v4370_v61, 8  ;;  %v2043_v22 = vsel %vm1972_vm7, %v2871_v41, %v1903_v19  ;;  %v1064_v24 = vsel %vm993_vm6, %v2805_v17, %v924_v21  ;;  %vm1553_vm0 = vcmp.eq.s32.totalorder %v4370_v61, 9 }
 0x171   : > { %vm1693_vm9 = vcmp.eq.s32.totalorder %v4370_v61, 10  ;;  %v2183_v25 = vsel %vm2112_vm4, %v2880_v44, %v2043_v22  ;;  %v1204_v26 = vsel %vm1133_vm8, %v2815_v20, %v1064_v24  ;;  %vm1833_vm1 = vcmp.eq.s32.totalorder %v4370_v61, 11 }
 0x172   : > { %vm294_vm2 = vcmp.eq.s32.totalorder %v4406_v18, 0  ;;  %2252 = vst [vmem:[%s2899_s3 + $0x158] sm:$0xff] %v2183_v25  ;;  %v1344_v28 = vsel %vm1273_vm11, %v2825_v23, %v1204_v26  ;;  %vm434_vm3 = vcmp.eq.s32.totalorder %v4406_v18, 1  ;;  %vm574_vm10 = vcmp.eq.s32.totalorder %v4406_v18, 2 }
 0x173   : > { %v365_v29 = vsel %vm294_vm2, %v2745_v2, 0.0  ;;  %v1484_v31 = vsel %vm1413_vm15, %v2835_v27, %v1344_v28  ;;  %vm714_vm12 = vcmp.eq.s32.totalorder %v4406_v18, 3  ;;  %vm854_vm5 = vcmp.eq.s32.totalorder %v4406_v18, 4 }
 0x174   : > { %v505_v32 = vsel %vm434_vm3, %v2756_v4, %v365_v29  ;;  %v1624_v33 = vsel %vm1553_vm0, %v2844_v30, %v1484_v31  ;;  %vm1973_vm13 = vcmp.eq.s32.totalorder %v4370_v61, 12  ;;  %vm994_vm14 = vcmp.eq.s32.totalorder %v4406_v18, 5 }
 0x175   : > { %v645_v35 = vsel %vm574_vm10, %v2768_v7, %v505_v32  ;;  %v1764_v36 = vsel %vm1693_vm9, %v2853_v34, %v1624_v33  ;;  %vm2113_vm7 = vcmp.eq.s32.totalorder %v4370_v61, 13  ;;  %vm1134_vm6 = vcmp.eq.s32.totalorder %v4406_v18, 6  ;;  %v4550_v32 = vld [vmem:[%s2711_s28 + $0x188] sm:$0xff] }
 0x176   : > { %v785_v38 = vsel %vm714_vm12, %v2781_v10, %v645_v35  ;;  %v1904_v40 = vsel %vm1833_vm1, %v2862_v37, %v1764_v36  ;;  %vm1274_vm4 = vcmp.eq.s32.totalorder %v4406_v18, 7  ;;  %vm1414_vm8 = vcmp.eq.s32.totalorder %v4406_v18, 8 }
 0x177   : > { %v925_v42 = vsel %vm854_vm5, %v2795_v14, %v785_v38  ;;  %v2044_v43 = vsel %vm1973_vm13, %v2871_v41, %v1904_v40  ;;  %vm1554_vm11 = vcmp.eq.s32.totalorder %v4406_v18, 9  ;;  %vm1694_vm15 = vcmp.eq.s32.totalorder %v4406_v18, 10 }
 0x178   : > { %v1065_v45 = vsel %vm994_vm14, %v2805_v17, %v925_v42  ;;  %v2184_v46 = vsel %vm2113_vm7, %v2880_v44, %v2044_v43  ;;  %vm1834_vm0 = vcmp.eq.s32.totalorder %v4406_v18, 11  ;;  %vm295_vm9 = vcmp.eq.s32.totalorder %v4442_v39, 0 }
 0x179   : > { %v1205_v47 = vsel %vm1134_vm6, %v2815_v20, %v1065_v45  ;;  %2253 = vst [vmem:[%s2899_s3 + $0x160] sm:$0xff] %v2184_v46  ;;  %v366_v49 = vsel %vm295_vm9, %v2745_v2, 0.0  ;;  %vm435_vm1 = vcmp.eq.s32.totalorder %v4442_v39, 1  ;;  %vm575_vm2 = vcmp.eq.s32.totalorder %v4442_v39, 2 }
 0x17a   : > { %v1345_v48 = vsel %vm1274_vm4, %v2825_v23, %v1205_v47  ;;  %v506_v51 = vsel %vm435_vm1, %v2756_v4, %v366_v49  ;;  %vm715_vm3 = vcmp.eq.s32.totalorder %v4442_v39, 3  ;;  %vm855_vm10 = vcmp.eq.s32.totalorder %v4442_v39, 4 }
 0x17b   : > { %v1485_v50 = vsel %vm1414_vm8, %v2835_v27, %v1345_v48  ;;  %vm1974_vm12 = vcmp.eq.s32.totalorder %v4406_v18, 12  ;;  %v646_v53 = vsel %vm575_vm2, %v2768_v7, %v506_v51  ;;  %vm995_vm5 = vcmp.eq.s32.totalorder %v4442_v39, 5  ;;  %v4586_v51 = vld [vmem:[%s2711_s28 + $0x190] sm:$0xff] }
 0x17c   : > { %v1625_v52 = vsel %vm1554_vm11, %v2844_v30, %v1485_v50  ;;  %vm2114_vm13 = vcmp.eq.s32.totalorder %v4406_v18, 13  ;;  %v786_v55 = vsel %vm715_vm3, %v2781_v10, %v646_v53  ;;  %vm1135_vm14 = vcmp.eq.s32.totalorder %v4442_v39, 6 }
 0x17d   : > { %v1765_v54 = vsel %vm1694_vm15, %v2853_v34, %v1625_v52  ;;  %v926_v58 = vsel %vm855_vm10, %v2795_v14, %v786_v55  ;;  %vm1275_vm7 = vcmp.eq.s32.totalorder %v4442_v39, 7  ;;  %vm1415_vm6 = vcmp.eq.s32.totalorder %v4442_v39, 8 }
 0x17e   : > { %v1905_v57 = vsel %vm1834_vm0, %v2862_v37, %v1765_v54  ;;  %v1066_v60 = vsel %vm995_vm5, %v2805_v17, %v926_v58  ;;  %vm1555_vm4 = vcmp.eq.s32.totalorder %v4442_v39, 9  ;;  %vm1695_vm8 = vcmp.eq.s32.totalorder %v4442_v39, 10 }
 0x17f   : > { %v2045_v59 = vsel %vm1974_vm12, %v2871_v41, %v1905_v57  ;;  %v1206_v62 = vsel %vm1135_vm14, %v2815_v20, %v1066_v60  ;;  %vm1835_vm11 = vcmp.eq.s32.totalorder %v4442_v39, 11  ;;  %vm296_vm15 = vcmp.eq.s32.totalorder %v4478_v56, 0 }
 0x180   : > { %v2185_v61 = vsel %vm2114_vm13, %v2880_v44, %v2045_v59  ;;  %v1346_v63 = vsel %vm1275_vm7, %v2825_v23, %v1206_v62  ;;  %v367_v0 = vsel %vm296_vm15, %v2745_v2, 0.0  ;;  %vm436_vm0 = vcmp.eq.s32.totalorder %v4478_v56, 1 }
 0x181   : > { %2254 = vst [vmem:[%s2899_s3 + $0x168] sm:$0xff] %v2185_v61  ;;  %vm576_vm9 = vcmp.eq.s32.totalorder %v4478_v56, 2  ;;  %v1486_v1 = vsel %vm1415_vm6, %v2835_v27, %v1346_v63  ;;  %v507_v3 = vsel %vm436_vm0, %v2756_v4, %v367_v0  ;;  %vm716_vm1 = vcmp.eq.s32.totalorder %v4478_v56, 3 }
 0x182   : > { %vm856_vm2 = vcmp.eq.s32.totalorder %v4478_v56, 4  ;;  %v1626_v5 = vsel %vm1555_vm4, %v2844_v30, %v1486_v1  ;;  %vm1975_vm3 = vcmp.eq.s32.totalorder %v4442_v39, 12  ;;  %v647_v6 = vsel %vm576_vm9, %v2768_v7, %v507_v3  ;;  %v4622_v3 = vld [vmem:[%s2711_s28 + $0x198] sm:$0xff] }
 0x183   : > { %vm996_vm10 = vcmp.eq.s32.totalorder %v4478_v56, 5  ;;  %v1766_v8 = vsel %vm1695_vm8, %v2853_v34, %v1626_v5  ;;  %vm2115_vm12 = vcmp.eq.s32.totalorder %v4442_v39, 13  ;;  %v787_v9 = vsel %vm716_vm1, %v2781_v10, %v647_v6 }
 0x184   : > { %vm1136_vm5 = vcmp.eq.s32.totalorder %v4478_v56, 6  ;;  %v1906_v12 = vsel %vm1835_vm11, %v2862_v37, %v1766_v8  ;;  %v927_v13 = vsel %vm856_vm2, %v2795_v14, %v787_v9  ;;  %vm1276_vm13 = vcmp.eq.s32.totalorder %v4478_v56, 7 }
 0x185   : > { %vm1416_vm14 = vcmp.eq.s32.totalorder %v4478_v56, 8  ;;  %v2046_v15 = vsel %vm1975_vm3, %v2871_v41, %v1906_v12  ;;  %v1067_v16 = vsel %vm996_vm10, %v2805_v17, %v927_v13  ;;  %vm1556_vm7 = vcmp.eq.s32.totalorder %v4478_v56, 9 }
 0x186   : > { %vm1696_vm6 = vcmp.eq.s32.totalorder %v4478_v56, 10  ;;  %v2186_v18 = vsel %vm2115_vm12, %v2880_v44, %v2046_v15  ;;  %v1207_v19 = vsel %vm1136_vm5, %v2815_v20, %v1067_v16  ;;  %vm1836_vm4 = vcmp.eq.s32.totalorder %v4478_v56, 11 }
 0x187   : > { %vm297_vm8 = vcmp.eq.s32.totalorder %v4514_v11, 0  ;;  %2255 = vst [vmem:[%s2899_s3 + $0x170] sm:$0xff] %v2186_v18  ;;  %v1347_v21 = vsel %vm1276_vm13, %v2825_v23, %v1207_v19  ;;  %vm437_vm11 = vcmp.eq.s32.totalorder %v4514_v11, 1  ;;  %vm577_vm15 = vcmp.eq.s32.totalorder %v4514_v11, 2 }
 0x188   : > { %v368_v22 = vsel %vm297_vm8, %v2745_v2, 0.0  ;;  %v1487_v24 = vsel %vm1416_vm14, %v2835_v27, %v1347_v21  ;;  %vm717_vm0 = vcmp.eq.s32.totalorder %v4514_v11, 3  ;;  %vm857_vm9 = vcmp.eq.s32.totalorder %v4514_v11, 4 }
 0x189   : > { %v508_v25 = vsel %vm437_vm11, %v2756_v4, %v368_v22  ;;  %v1627_v26 = vsel %vm1556_vm7, %v2844_v30, %v1487_v24  ;;  %vm1976_vm1 = vcmp.eq.s32.totalorder %v4478_v56, 12  ;;  %vm997_vm2 = vcmp.eq.s32.totalorder %v4514_v11, 5 }
 0x18a   : > { %v648_v28 = vsel %vm577_vm15, %v2768_v7, %v508_v25  ;;  %v1767_v29 = vsel %vm1696_vm6, %v2853_v34, %v1627_v26  ;;  %vm2116_vm3 = vcmp.eq.s32.totalorder %v4478_v56, 13  ;;  %vm1137_vm10 = vcmp.eq.s32.totalorder %v4514_v11, 6  ;;  %v4658_v25 = vld [vmem:[%s2711_s28 + $0x1a0] sm:$0xff] }
 0x18b   : > { %v788_v31 = vsel %vm717_vm0, %v2781_v10, %v648_v28  ;;  %v1907_v33 = vsel %vm1836_vm4, %v2862_v37, %v1767_v29  ;;  %vm1277_vm12 = vcmp.eq.s32.totalorder %v4514_v11, 7  ;;  %vm1417_vm5 = vcmp.eq.s32.totalorder %v4514_v11, 8 }
 0x18c   : > { %v928_v35 = vsel %vm857_vm9, %v2795_v14, %v788_v31  ;;  %v2047_v36 = vsel %vm1976_vm1, %v2871_v41, %v1907_v33  ;;  %vm1557_vm13 = vcmp.eq.s32.totalorder %v4514_v11, 9  ;;  %vm1697_vm14 = vcmp.eq.s32.totalorder %v4514_v11, 10 }
 0x18d   : > { %v1068_v38 = vsel %vm997_vm2, %v2805_v17, %v928_v35  ;;  %v2187_v39 = vsel %vm2116_vm3, %v2880_v44, %v2047_v36  ;;  %vm1837_vm7 = vcmp.eq.s32.totalorder %v4514_v11, 11  ;;  %vm298_vm6 = vcmp.eq.s32.totalorder %v4550_v32, 0 }
 0x18e   : > { %v1208_v40 = vsel %vm1137_vm10, %v2815_v20, %v1068_v38  ;;  %2256 = vst [vmem:[%s2899_s3 + $0x178] sm:$0xff] %v2187_v39  ;;  %v369_v43 = vsel %vm298_vm6, %v2745_v2, 0.0  ;;  %vm438_vm4 = vcmp.eq.s32.totalorder %v4550_v32, 1  ;;  %vm578_vm8 = vcmp.eq.s32.totalorder %v4550_v32, 2 }
 0x18f   : > { %v1348_v42 = vsel %vm1277_vm12, %v2825_v23, %v1208_v40  ;;  %v509_v46 = vsel %vm438_vm4, %v2756_v4, %v369_v43  ;;  %vm718_vm11 = vcmp.eq.s32.totalorder %v4550_v32, 3  ;;  %vm858_vm15 = vcmp.eq.s32.totalorder %v4550_v32, 4 }
 0x190   : > { %v1488_v45 = vsel %vm1417_vm5, %v2835_v27, %v1348_v42  ;;  %vm1977_vm0 = vcmp.eq.s32.totalorder %v4514_v11, 12  ;;  %v649_v48 = vsel %vm578_vm8, %v2768_v7, %v509_v46  ;;  %vm998_vm9 = vcmp.eq.s32.totalorder %v4550_v32, 5  ;;  %v4694_v46 = vld [vmem:[%s2711_s28 + $0x1a8] sm:$0xff] }
 0x191   : > { %v1628_v47 = vsel %vm1557_vm13, %v2844_v30, %v1488_v45  ;;  %vm2117_vm1 = vcmp.eq.s32.totalorder %v4514_v11, 13  ;;  %v789_v50 = vsel %vm718_vm11, %v2781_v10, %v649_v48  ;;  %vm1138_vm2 = vcmp.eq.s32.totalorder %v4550_v32, 6 }
 0x192   : > { %v1768_v49 = vsel %vm1697_vm14, %v2853_v34, %v1628_v47  ;;  %v929_v53 = vsel %vm858_vm15, %v2795_v14, %v789_v50  ;;  %vm1278_vm3 = vcmp.eq.s32.totalorder %v4550_v32, 7  ;;  %vm1418_vm10 = vcmp.eq.s32.totalorder %v4550_v32, 8 }
 0x193   : > { %v1908_v52 = vsel %vm1837_vm7, %v2862_v37, %v1768_v49  ;;  %v1069_v55 = vsel %vm998_vm9, %v2805_v17, %v929_v53  ;;  %vm1558_vm12 = vcmp.eq.s32.totalorder %v4550_v32, 9  ;;  %vm1698_vm5 = vcmp.eq.s32.totalorder %v4550_v32, 10 }
 0x194   : > { %v2048_v54 = vsel %vm1977_vm0, %v2871_v41, %v1908_v52  ;;  %v1209_v57 = vsel %vm1138_vm2, %v2815_v20, %v1069_v55  ;;  %vm1838_vm13 = vcmp.eq.s32.totalorder %v4550_v32, 11  ;;  %vm299_vm14 = vcmp.eq.s32.totalorder %v4586_v51, 0 }
 0x195   : > { %v2188_v56 = vsel %vm2117_vm1, %v2880_v44, %v2048_v54  ;;  %v1349_v58 = vsel %vm1278_vm3, %v2825_v23, %v1209_v57  ;;  %v370_v59 = vsel %vm299_vm14, %v2745_v2, 0.0  ;;  %vm439_vm7 = vcmp.eq.s32.totalorder %v4586_v51, 1 }
 0x196   : > { %2257 = vst [vmem:[%s2899_s3 + $0x180] sm:$0xff] %v2188_v56  ;;  %vm579_vm6 = vcmp.eq.s32.totalorder %v4586_v51, 2  ;;  %v1489_v60 = vsel %vm1418_vm10, %v2835_v27, %v1349_v58  ;;  %v510_v61 = vsel %vm439_vm7, %v2756_v4, %v370_v59  ;;  %vm719_vm4 = vcmp.eq.s32.totalorder %v4586_v51, 3 }
 0x197   : > { %vm859_vm8 = vcmp.eq.s32.totalorder %v4586_v51, 4  ;;  %v1629_v62 = vsel %vm1558_vm12, %v2844_v30, %v1489_v60  ;;  %vm1978_vm11 = vcmp.eq.s32.totalorder %v4550_v32, 12  ;;  %v650_v63 = vsel %vm579_vm6, %v2768_v7, %v510_v61  ;;  %v4730_v61 = vld [vmem:[%s2711_s28 + $0x1b0] sm:$0xff] }
 0x198   : > { %vm999_vm15 = vcmp.eq.s32.totalorder %v4586_v51, 5  ;;  %v1769_v0 = vsel %vm1698_vm5, %v2853_v34, %v1629_v62  ;;  %vm2118_vm0 = vcmp.eq.s32.totalorder %v4550_v32, 13  ;;  %v790_v1 = vsel %vm719_vm4, %v2781_v10, %v650_v63 }
 0x199   : > { %vm1139_vm9 = vcmp.eq.s32.totalorder %v4586_v51, 6  ;;  %v1909_v5 = vsel %vm1838_vm13, %v2862_v37, %v1769_v0  ;;  %v930_v6 = vsel %vm859_vm8, %v2795_v14, %v790_v1  ;;  %vm1279_vm1 = vcmp.eq.s32.totalorder %v4586_v51, 7 }
 0x19a   : > { %vm1419_vm2 = vcmp.eq.s32.totalorder %v4586_v51, 8  ;;  %v2049_v8 = vsel %vm1978_vm11, %v2871_v41, %v1909_v5  ;;  %v1070_v9 = vsel %vm999_vm15, %v2805_v17, %v930_v6  ;;  %vm1559_vm3 = vcmp.eq.s32.totalorder %v4586_v51, 9 }
 0x19b   : > { %vm1699_vm10 = vcmp.eq.s32.totalorder %v4586_v51, 10  ;;  %v2189_v11 = vsel %vm2118_vm0, %v2880_v44, %v2049_v8  ;;  %v1210_v12 = vsel %vm1139_vm9, %v2815_v20, %v1070_v9  ;;  %vm1839_vm12 = vcmp.eq.s32.totalorder %v4586_v51, 11 }
 0x19c   : > { %vm300_vm5 = vcmp.eq.s32.totalorder %v4622_v3, 0  ;;  %2258 = vst [vmem:[%s2899_s3 + $0x188] sm:$0xff] %v2189_v11  ;;  %v1350_v13 = vsel %vm1279_vm1, %v2825_v23, %v1210_v12  ;;  %vm440_vm13 = vcmp.eq.s32.totalorder %v4622_v3, 1  ;;  %vm580_vm14 = vcmp.eq.s32.totalorder %v4622_v3, 2 }
 0x19d   : > { %v371_v15 = vsel %vm300_vm5, %v2745_v2, 0.0  ;;  %v1490_v16 = vsel %vm1419_vm2, %v2835_v27, %v1350_v13  ;;  %vm720_vm7 = vcmp.eq.s32.totalorder %v4622_v3, 3  ;;  %vm860_vm6 = vcmp.eq.s32.totalorder %v4622_v3, 4 }
 0x19e   : > { %v511_v18 = vsel %vm440_vm13, %v2756_v4, %v371_v15  ;;  %v1630_v19 = vsel %vm1559_vm3, %v2844_v30, %v1490_v16  ;;  %vm1979_vm4 = vcmp.eq.s32.totalorder %v4586_v51, 12  ;;  %vm1000_vm8 = vcmp.eq.s32.totalorder %v4622_v3, 5 }
 0x19f   : > { %v651_v21 = vsel %vm580_vm14, %v2768_v7, %v511_v18  ;;  %v1770_v22 = vsel %vm1699_vm10, %v2853_v34, %v1630_v19  ;;  %vm2119_vm11 = vcmp.eq.s32.totalorder %v4586_v51, 13  ;;  %vm1140_vm15 = vcmp.eq.s32.totalorder %v4622_v3, 6  ;;  %v4766_v18 = vld [vmem:[%s2711_s28 + $0x1b8] sm:$0xff] }
 0x1a0   : > { %v791_v24 = vsel %vm720_vm7, %v2781_v10, %v651_v21  ;;  %v1910_v26 = vsel %vm1839_vm12, %v2862_v37, %v1770_v22  ;;  %vm1280_vm0 = vcmp.eq.s32.totalorder %v4622_v3, 7  ;;  %vm1420_vm9 = vcmp.eq.s32.totalorder %v4622_v3, 8 }
 0x1a1   : > { %v931_v28 = vsel %vm860_vm6, %v2795_v14, %v791_v24  ;;  %v2050_v29 = vsel %vm1979_vm4, %v2871_v41, %v1910_v26  ;;  %vm1560_vm1 = vcmp.eq.s32.totalorder %v4622_v3, 9  ;;  %vm1700_vm2 = vcmp.eq.s32.totalorder %v4622_v3, 10 }
 0x1a2   : > { %v1071_v31 = vsel %vm1000_vm8, %v2805_v17, %v931_v28  ;;  %v2190_v32 = vsel %vm2119_vm11, %v2880_v44, %v2050_v29  ;;  %vm1840_vm3 = vcmp.eq.s32.totalorder %v4622_v3, 11  ;;  %vm301_vm10 = vcmp.eq.s32.totalorder %v4658_v25, 0 }
 0x1a3   : > { %v1211_v33 = vsel %vm1140_vm15, %v2815_v20, %v1071_v31  ;;  %2259 = vst [vmem:[%s2899_s3 + $0x190] sm:$0xff] %v2190_v32  ;;  %v372_v36 = vsel %vm301_vm10, %v2745_v2, 0.0  ;;  %vm441_vm12 = vcmp.eq.s32.totalorder %v4658_v25, 1  ;;  %vm581_vm5 = vcmp.eq.s32.totalorder %v4658_v25, 2 }
 0x1a4   : > { %v1351_v35 = vsel %vm1280_vm0, %v2825_v23, %v1211_v33  ;;  %v512_v39 = vsel %vm441_vm12, %v2756_v4, %v372_v36  ;;  %vm721_vm13 = vcmp.eq.s32.totalorder %v4658_v25, 3  ;;  %vm861_vm14 = vcmp.eq.s32.totalorder %v4658_v25, 4 }
 0x1a5   : > { %v1491_v38 = vsel %vm1420_vm9, %v2835_v27, %v1351_v35  ;;  %vm1980_vm7 = vcmp.eq.s32.totalorder %v4622_v3, 12  ;;  %v652_v42 = vsel %vm581_vm5, %v2768_v7, %v512_v39  ;;  %vm1001_vm6 = vcmp.eq.s32.totalorder %v4658_v25, 5  ;;  %v4802_v39 = vld [vmem:[%s2711_s28 + $0x1c0] sm:$0xff] }
 0x1a6   : > { %v1631_v40 = vsel %vm1560_vm1, %v2844_v30, %v1491_v38  ;;  %vm2120_vm4 = vcmp.eq.s32.totalorder %v4622_v3, 13  ;;  %v792_v45 = vsel %vm721_vm13, %v2781_v10, %v652_v42  ;;  %vm1141_vm8 = vcmp.eq.s32.totalorder %v4658_v25, 6 }
 0x1a7   : > { %v1771_v43 = vsel %vm1700_vm2, %v2853_v34, %v1631_v40  ;;  %v932_v48 = vsel %vm861_vm14, %v2795_v14, %v792_v45  ;;  %vm1281_vm11 = vcmp.eq.s32.totalorder %v4658_v25, 7  ;;  %vm1421_vm15 = vcmp.eq.s32.totalorder %v4658_v25, 8 }
 0x1a8   : > { %v1911_v47 = vsel %vm1840_vm3, %v2862_v37, %v1771_v43  ;;  %v1072_v50 = vsel %vm1001_vm6, %v2805_v17, %v932_v48  ;;  %vm1561_vm0 = vcmp.eq.s32.totalorder %v4658_v25, 9  ;;  %vm1701_vm9 = vcmp.eq.s32.totalorder %v4658_v25, 10 }
 0x1a9   : > { %v2051_v49 = vsel %vm1980_vm7, %v2871_v41, %v1911_v47  ;;  %v1212_v52 = vsel %vm1141_vm8, %v2815_v20, %v1072_v50  ;;  %vm1841_vm1 = vcmp.eq.s32.totalorder %v4658_v25, 11  ;;  %vm302_vm2 = vcmp.eq.s32.totalorder %v4694_v46, 0 }
 0x1aa   : > { %v2191_v51 = vsel %vm2120_vm4, %v2880_v44, %v2051_v49  ;;  %v1352_v53 = vsel %vm1281_vm11, %v2825_v23, %v1212_v52  ;;  %v373_v54 = vsel %vm302_vm2, %v2745_v2, 0.0  ;;  %vm442_vm3 = vcmp.eq.s32.totalorder %v4694_v46, 1 }
 0x1ab   : > { %2260 = vst [vmem:[%s2899_s3 + $0x198] sm:$0xff] %v2191_v51  ;;  %vm582_vm10 = vcmp.eq.s32.totalorder %v4694_v46, 2  ;;  %v1492_v55 = vsel %vm1421_vm15, %v2835_v27, %v1352_v53  ;;  %v513_v56 = vsel %vm442_vm3, %v2756_v4, %v373_v54  ;;  %vm722_vm12 = vcmp.eq.s32.totalorder %v4694_v46, 3 }
 0x1ac   : > { %vm862_vm5 = vcmp.eq.s32.totalorder %v4694_v46, 4  ;;  %v1632_v57 = vsel %vm1561_vm0, %v2844_v30, %v1492_v55  ;;  %vm1981_vm13 = vcmp.eq.s32.totalorder %v4658_v25, 12  ;;  %v653_v58 = vsel %vm582_vm10, %v2768_v7, %v513_v56  ;;  %v4838_v56 = vld [vmem:[%s2711_s28 + $0x1c8] sm:$0xff] }
 0x1ad   : > { %vm1002_vm14 = vcmp.eq.s32.totalorder %v4694_v46, 5  ;;  %v1772_v59 = vsel %vm1701_vm9, %v2853_v34, %v1632_v57  ;;  %vm2121_vm7 = vcmp.eq.s32.totalorder %v4658_v25, 13  ;;  %v793_v60 = vsel %vm722_vm12, %v2781_v10, %v653_v58 }
 0x1ae   : > { %vm1142_vm6 = vcmp.eq.s32.totalorder %v4694_v46, 6  ;;  %v1912_v62 = vsel %vm1841_vm1, %v2862_v37, %v1772_v59  ;;  %v933_v63 = vsel %vm862_vm5, %v2795_v14, %v793_v60  ;;  %vm1282_vm4 = vcmp.eq.s32.totalorder %v4694_v46, 7 }
 0x1af   : > { %vm1422_vm8 = vcmp.eq.s32.totalorder %v4694_v46, 8  ;;  %v2052_v0 = vsel %vm1981_vm13, %v2871_v41, %v1912_v62  ;;  %v1073_v1 = vsel %vm1002_vm14, %v2805_v17, %v933_v63  ;;  %vm1562_vm11 = vcmp.eq.s32.totalorder %v4694_v46, 9 }
 0x1b0   : > { %vm1702_vm15 = vcmp.eq.s32.totalorder %v4694_v46, 10  ;;  %v2192_v3 = vsel %vm2121_vm7, %v2880_v44, %v2052_v0  ;;  %v1213_v5 = vsel %vm1142_vm6, %v2815_v20, %v1073_v1  ;;  %vm1842_vm0 = vcmp.eq.s32.totalorder %v4694_v46, 11 }
 0x1b1   : > { %vm303_vm9 = vcmp.eq.s32.totalorder %v4730_v61, 0  ;;  %2261 = vst [vmem:[%s2899_s3 + $0x1a0] sm:$0xff] %v2192_v3  ;;  %v1353_v6 = vsel %vm1282_vm4, %v2825_v23, %v1213_v5  ;;  %vm443_vm1 = vcmp.eq.s32.totalorder %v4730_v61, 1  ;;  %vm583_vm2 = vcmp.eq.s32.totalorder %v4730_v61, 2 }
 0x1b2   : > { %v374_v8 = vsel %vm303_vm9, %v2745_v2, 0.0  ;;  %v1493_v9 = vsel %vm1422_vm8, %v2835_v27, %v1353_v6  ;;  %vm723_vm3 = vcmp.eq.s32.totalorder %v4730_v61, 3  ;;  %vm863_vm10 = vcmp.eq.s32.totalorder %v4730_v61, 4 }
 0x1b3   : > { %v514_v11 = vsel %vm443_vm1, %v2756_v4, %v374_v8  ;;  %v1633_v12 = vsel %vm1562_vm11, %v2844_v30, %v1493_v9  ;;  %vm1982_vm12 = vcmp.eq.s32.totalorder %v4694_v46, 12  ;;  %vm1003_vm5 = vcmp.eq.s32.totalorder %v4730_v61, 5 }
 0x1b4   : > { %v654_v13 = vsel %vm583_vm2, %v2768_v7, %v514_v11  ;;  %v1773_v15 = vsel %vm1702_vm15, %v2853_v34, %v1633_v12  ;;  %vm2122_vm13 = vcmp.eq.s32.totalorder %v4694_v46, 13  ;;  %vm1143_vm14 = vcmp.eq.s32.totalorder %v4730_v61, 6  ;;  %v4874_v11 = vld [vmem:[%s2711_s28 + $0x1d0] sm:$0xff] }
 0x1b5   : > { %v794_v16 = vsel %vm723_vm3, %v2781_v10, %v654_v13  ;;  %v1913_v19 = vsel %vm1842_vm0, %v2862_v37, %v1773_v15  ;;  %vm1283_vm7 = vcmp.eq.s32.totalorder %v4730_v61, 7  ;;  %vm1423_vm6 = vcmp.eq.s32.totalorder %v4730_v61, 8 }
 0x1b6   : > { %v934_v21 = vsel %vm863_vm10, %v2795_v14, %v794_v16  ;;  %v2053_v22 = vsel %vm1982_vm12, %v2871_v41, %v1913_v19  ;;  %vm1563_vm4 = vcmp.eq.s32.totalorder %v4730_v61, 9  ;;  %vm1703_vm8 = vcmp.eq.s32.totalorder %v4730_v61, 10 }
 0x1b7   : > { %v1074_v24 = vsel %vm1003_vm5, %v2805_v17, %v934_v21  ;;  %v2193_v25 = vsel %vm2122_vm13, %v2880_v44, %v2053_v22  ;;  %vm1843_vm11 = vcmp.eq.s32.totalorder %v4730_v61, 11  ;;  %vm304_vm15 = vcmp.eq.s32.totalorder %v4766_v18, 0 }
 0x1b8   : > { %v1214_v26 = vsel %vm1143_vm14, %v2815_v20, %v1074_v24  ;;  %2262 = vst [vmem:[%s2899_s3 + $0x1a8] sm:$0xff] %v2193_v25  ;;  %v375_v29 = vsel %vm304_vm15, %v2745_v2, 0.0  ;;  %vm444_vm0 = vcmp.eq.s32.totalorder %v4766_v18, 1  ;;  %vm584_vm9 = vcmp.eq.s32.totalorder %v4766_v18, 2 }
 0x1b9   : > { %v1354_v28 = vsel %vm1283_vm7, %v2825_v23, %v1214_v26  ;;  %v515_v32 = vsel %vm444_vm0, %v2756_v4, %v375_v29  ;;  %vm724_vm1 = vcmp.eq.s32.totalorder %v4766_v18, 3  ;;  %vm864_vm2 = vcmp.eq.s32.totalorder %v4766_v18, 4 }
 0x1ba   : > { %v1494_v31 = vsel %vm1423_vm6, %v2835_v27, %v1354_v28  ;;  %vm1983_vm3 = vcmp.eq.s32.totalorder %v4730_v61, 12  ;;  %v655_v35 = vsel %vm584_vm9, %v2768_v7, %v515_v32  ;;  %vm1004_vm10 = vcmp.eq.s32.totalorder %v4766_v18, 5  ;;  %v4910_v32 = vld [vmem:[%s2711_s28 + $0x1d8] sm:$0xff] }
 0x1bb   : > { %v1634_v33 = vsel %vm1563_vm4, %v2844_v30, %v1494_v31  ;;  %vm2123_vm12 = vcmp.eq.s32.totalorder %v4730_v61, 13  ;;  %v795_v38 = vsel %vm724_vm1, %v2781_v10, %v655_v35  ;;  %vm1144_vm5 = vcmp.eq.s32.totalorder %v4766_v18, 6 }
 0x1bc   : > { %v1774_v36 = vsel %vm1703_vm8, %v2853_v34, %v1634_v33  ;;  %v935_v42 = vsel %vm864_vm2, %v2795_v14, %v795_v38  ;;  %vm1284_vm13 = vcmp.eq.s32.totalorder %v4766_v18, 7  ;;  %vm1424_vm14 = vcmp.eq.s32.totalorder %v4766_v18, 8 }
 0x1bd   : > { %v1914_v40 = vsel %vm1843_vm11, %v2862_v37, %v1774_v36  ;;  %v1075_v45 = vsel %vm1004_vm10, %v2805_v17, %v935_v42  ;;  %vm1564_vm7 = vcmp.eq.s32.totalorder %v4766_v18, 9  ;;  %vm1704_vm6 = vcmp.eq.s32.totalorder %v4766_v18, 10 }
 0x1be   : > { %v2054_v43 = vsel %vm1983_vm3, %v2871_v41, %v1914_v40  ;;  %v1215_v47 = vsel %vm1144_vm5, %v2815_v20, %v1075_v45  ;;  %vm1844_vm4 = vcmp.eq.s32.totalorder %v4766_v18, 11  ;;  %vm305_vm8 = vcmp.eq.s32.totalorder %v4802_v39, 0 }
 0x1bf   : > { %v2194_v46 = vsel %vm2123_vm12, %v2880_v44, %v2054_v43  ;;  %v1355_v48 = vsel %vm1284_vm13, %v2825_v23, %v1215_v47  ;;  %v376_v49 = vsel %vm305_vm8, %v2745_v2, 0.0  ;;  %vm445_vm11 = vcmp.eq.s32.totalorder %v4802_v39, 1 }
 0x1c0   : > { %2263 = vst [vmem:[%s2899_s3 + $0x1b0] sm:$0xff] %v2194_v46  ;;  %vm585_vm15 = vcmp.eq.s32.totalorder %v4802_v39, 2  ;;  %v1495_v50 = vsel %vm1424_vm14, %v2835_v27, %v1355_v48  ;;  %v516_v51 = vsel %vm445_vm11, %v2756_v4, %v376_v49  ;;  %vm725_vm0 = vcmp.eq.s32.totalorder %v4802_v39, 3 }
 0x1c1   : > { %vm865_vm9 = vcmp.eq.s32.totalorder %v4802_v39, 4  ;;  %v1635_v52 = vsel %vm1564_vm7, %v2844_v30, %v1495_v50  ;;  %vm1984_vm1 = vcmp.eq.s32.totalorder %v4766_v18, 12  ;;  %v656_v53 = vsel %vm585_vm15, %v2768_v7, %v516_v51  ;;  %v4946_v51 = vld [vmem:[%s2711_s28 + $0x1e0] sm:$0xff] }
 0x1c2   : > { %vm1005_vm2 = vcmp.eq.s32.totalorder %v4802_v39, 5  ;;  %v1775_v54 = vsel %vm1704_vm6, %v2853_v34, %v1635_v52  ;;  %vm2124_vm3 = vcmp.eq.s32.totalorder %v4766_v18, 13  ;;  %v796_v55 = vsel %vm725_vm0, %v2781_v10, %v656_v53 }
 0x1c3   : > { %vm1145_vm10 = vcmp.eq.s32.totalorder %v4802_v39, 6  ;;  %v1915_v57 = vsel %vm1844_vm4, %v2862_v37, %v1775_v54  ;;  %v936_v58 = vsel %vm865_vm9, %v2795_v14, %v796_v55  ;;  %vm1285_vm12 = vcmp.eq.s32.totalorder %v4802_v39, 7 }
 0x1c4   : > { %vm1425_vm5 = vcmp.eq.s32.totalorder %v4802_v39, 8  ;;  %v2055_v59 = vsel %vm1984_vm1, %v2871_v41, %v1915_v57  ;;  %v1076_v60 = vsel %vm1005_vm2, %v2805_v17, %v936_v58  ;;  %vm1565_vm13 = vcmp.eq.s32.totalorder %v4802_v39, 9 }
 0x1c5   : > { %vm1705_vm14 = vcmp.eq.s32.totalorder %v4802_v39, 10  ;;  %v2195_v61 = vsel %vm2124_vm3, %v2880_v44, %v2055_v59  ;;  %v1216_v62 = vsel %vm1145_vm10, %v2815_v20, %v1076_v60  ;;  %vm1845_vm7 = vcmp.eq.s32.totalorder %v4802_v39, 11 }
 0x1c6   : > { %vm306_vm6 = vcmp.eq.s32.totalorder %v4838_v56, 0  ;;  %2264 = vst [vmem:[%s2899_s3 + $0x1b8] sm:$0xff] %v2195_v61  ;;  %v1356_v63 = vsel %vm1285_vm12, %v2825_v23, %v1216_v62  ;;  %vm446_vm4 = vcmp.eq.s32.totalorder %v4838_v56, 1  ;;  %vm586_vm8 = vcmp.eq.s32.totalorder %v4838_v56, 2 }
 0x1c7   : > { %v377_v0 = vsel %vm306_vm6, %v2745_v2, 0.0  ;;  %v1496_v1 = vsel %vm1425_vm5, %v2835_v27, %v1356_v63  ;;  %vm726_vm11 = vcmp.eq.s32.totalorder %v4838_v56, 3  ;;  %vm866_vm15 = vcmp.eq.s32.totalorder %v4838_v56, 4 }
 0x1c8   : > { %v517_v3 = vsel %vm446_vm4, %v2756_v4, %v377_v0  ;;  %v1636_v5 = vsel %vm1565_vm13, %v2844_v30, %v1496_v1  ;;  %vm1985_vm0 = vcmp.eq.s32.totalorder %v4802_v39, 12  ;;  %vm1006_vm9 = vcmp.eq.s32.totalorder %v4838_v56, 5 }
 0x1c9   : > { %v657_v6 = vsel %vm586_vm8, %v2768_v7, %v517_v3  ;;  %v1776_v8 = vsel %vm1705_vm14, %v2853_v34, %v1636_v5  ;;  %vm2125_vm1 = vcmp.eq.s32.totalorder %v4802_v39, 13  ;;  %vm1146_vm2 = vcmp.eq.s32.totalorder %v4838_v56, 6  ;;  %v4982_v3 = vld [vmem:[%s2711_s28 + $0x1e8] sm:$0xff] }
 0x1ca   : > { %v797_v9 = vsel %vm726_vm11, %v2781_v10, %v657_v6  ;;  %v1916_v12 = vsel %vm1845_vm7, %v2862_v37, %v1776_v8  ;;  %vm1286_vm3 = vcmp.eq.s32.totalorder %v4838_v56, 7  ;;  %vm1426_vm10 = vcmp.eq.s32.totalorder %v4838_v56, 8 }
 0x1cb   : > { %v937_v13 = vsel %vm866_vm15, %v2795_v14, %v797_v9  ;;  %v2056_v15 = vsel %vm1985_vm0, %v2871_v41, %v1916_v12  ;;  %vm1566_vm12 = vcmp.eq.s32.totalorder %v4838_v56, 9  ;;  %vm1706_vm5 = vcmp.eq.s32.totalorder %v4838_v56, 10 }
 0x1cc   : > { %v1077_v16 = vsel %vm1006_vm9, %v2805_v17, %v937_v13  ;;  %v2196_v18 = vsel %vm2125_vm1, %v2880_v44, %v2056_v15  ;;  %vm1846_vm13 = vcmp.eq.s32.totalorder %v4838_v56, 11  ;;  %vm307_vm14 = vcmp.eq.s32.totalorder %v4874_v11, 0 }
 0x1cd   : > { %v1217_v19 = vsel %vm1146_vm2, %v2815_v20, %v1077_v16  ;;  %2265 = vst [vmem:[%s2899_s3 + $0x1c0] sm:$0xff] %v2196_v18  ;;  %v378_v22 = vsel %vm307_vm14, %v2745_v2, 0.0  ;;  %vm447_vm7 = vcmp.eq.s32.totalorder %v4874_v11, 1  ;;  %vm587_vm6 = vcmp.eq.s32.totalorder %v4874_v11, 2 }
 0x1ce   : > { %v1357_v21 = vsel %vm1286_vm3, %v2825_v23, %v1217_v19  ;;  %v518_v25 = vsel %vm447_vm7, %v2756_v4, %v378_v22  ;;  %vm727_vm4 = vcmp.eq.s32.totalorder %v4874_v11, 3  ;;  %vm867_vm8 = vcmp.eq.s32.totalorder %v4874_v11, 4 }
 0x1cf   : > { %v1497_v24 = vsel %vm1426_vm10, %v2835_v27, %v1357_v21  ;;  %vm1986_vm11 = vcmp.eq.s32.totalorder %v4838_v56, 12  ;;  %v658_v28 = vsel %vm587_vm6, %v2768_v7, %v518_v25  ;;  %vm1007_vm15 = vcmp.eq.s32.totalorder %v4874_v11, 5  ;;  %v5018_v25 = vld [vmem:[%s2711_s28 + $0x1f0] sm:$0xff] }
 0x1d0   : > { %v1637_v26 = vsel %vm1566_vm12, %v2844_v30, %v1497_v24  ;;  %vm2126_vm0 = vcmp.eq.s32.totalorder %v4838_v56, 13  ;;  %v798_v31 = vsel %vm727_vm4, %v2781_v10, %v658_v28  ;;  %vm1147_vm9 = vcmp.eq.s32.totalorder %v4874_v11, 6 }
 0x1d1   : > { %v1777_v29 = vsel %vm1706_vm5, %v2853_v34, %v1637_v26  ;;  %v938_v35 = vsel %vm867_vm8, %v2795_v14, %v798_v31  ;;  %vm1287_vm1 = vcmp.eq.s32.totalorder %v4874_v11, 7  ;;  %vm1427_vm2 = vcmp.eq.s32.totalorder %v4874_v11, 8 }
 0x1d2   : > { %v1917_v33 = vsel %vm1846_vm13, %v2862_v37, %v1777_v29  ;;  %v1078_v38 = vsel %vm1007_vm15, %v2805_v17, %v938_v35  ;;  %vm1567_vm3 = vcmp.eq.s32.totalorder %v4874_v11, 9  ;;  %vm1707_vm10 = vcmp.eq.s32.totalorder %v4874_v11, 10 }
 0x1d3   : > { %v2057_v36 = vsel %vm1986_vm11, %v2871_v41, %v1917_v33  ;;  %v1218_v40 = vsel %vm1147_vm9, %v2815_v20, %v1078_v38  ;;  %vm1847_vm12 = vcmp.eq.s32.totalorder %v4874_v11, 11  ;;  %vm308_vm5 = vcmp.eq.s32.totalorder %v4910_v32, 0 }
 0x1d4   : > { %v2197_v39 = vsel %vm2126_vm0, %v2880_v44, %v2057_v36  ;;  %v1358_v42 = vsel %vm1287_vm1, %v2825_v23, %v1218_v40  ;;  %v379_v43 = vsel %vm308_vm5, %v2745_v2, 0.0  ;;  %vm448_vm13 = vcmp.eq.s32.totalorder %v4910_v32, 1 }
 0x1d5   : > { %2266 = vst [vmem:[%s2899_s3 + $0x1c8] sm:$0xff] %v2197_v39  ;;  %vm588_vm14 = vcmp.eq.s32.totalorder %v4910_v32, 2  ;;  %v1498_v45 = vsel %vm1427_vm2, %v2835_v27, %v1358_v42  ;;  %v519_v46 = vsel %vm448_vm13, %v2756_v4, %v379_v43  ;;  %vm728_vm7 = vcmp.eq.s32.totalorder %v4910_v32, 3 }
 0x1d6   : > { %vm868_vm6 = vcmp.eq.s32.totalorder %v4910_v32, 4  ;;  %v1638_v47 = vsel %vm1567_vm3, %v2844_v30, %v1498_v45  ;;  %vm1987_vm4 = vcmp.eq.s32.totalorder %v4874_v11, 12  ;;  %v659_v48 = vsel %vm588_vm14, %v2768_v7, %v519_v46  ;;  %v5054_v46 = vld [vmem:[%s2711_s28 + $0x1f8] sm:$0xff] }
 0x1d7   : > { %vm1008_vm8 = vcmp.eq.s32.totalorder %v4910_v32, 5  ;;  %v1778_v49 = vsel %vm1707_vm10, %v2853_v34, %v1638_v47  ;;  %vm2127_vm11 = vcmp.eq.s32.totalorder %v4874_v11, 13  ;;  %v799_v50 = vsel %vm728_vm7, %v2781_v10, %v659_v48 }
 0x1d8   : > { %vm1148_vm15 = vcmp.eq.s32.totalorder %v4910_v32, 6  ;;  %v1918_v52 = vsel %vm1847_vm12, %v2862_v37, %v1778_v49  ;;  %v939_v53 = vsel %vm868_vm6, %v2795_v14, %v799_v50  ;;  %vm1288_vm0 = vcmp.eq.s32.totalorder %v4910_v32, 7 }
 0x1d9   : > { %vm1428_vm9 = vcmp.eq.s32.totalorder %v4910_v32, 8  ;;  %v2058_v54 = vsel %vm1987_vm4, %v2871_v41, %v1918_v52  ;;  %v1079_v55 = vsel %vm1008_vm8, %v2805_v17, %v939_v53  ;;  %vm1568_vm1 = vcmp.eq.s32.totalorder %v4910_v32, 9 }
 0x1da   : > { %vm1708_vm2 = vcmp.eq.s32.totalorder %v4910_v32, 10  ;;  %v2198_v56 = vsel %vm2127_vm11, %v2880_v44, %v2058_v54  ;;  %v1219_v57 = vsel %vm1148_vm15, %v2815_v20, %v1079_v55  ;;  %vm1848_vm3 = vcmp.eq.s32.totalorder %v4910_v32, 11 }
 0x1db   : > { %vm309_vm10 = vcmp.eq.s32.totalorder %v4946_v51, 0  ;;  %2267 = vst [vmem:[%s2899_s3 + $0x1d0] sm:$0xff] %v2198_v56  ;;  %v1359_v58 = vsel %vm1288_vm0, %v2825_v23, %v1219_v57  ;;  %vm449_vm12 = vcmp.eq.s32.totalorder %v4946_v51, 1  ;;  %vm589_vm5 = vcmp.eq.s32.totalorder %v4946_v51, 2 }
 0x1dc   : > { %v380_v59 = vsel %vm309_vm10, %v2745_v2, 0.0  ;;  %v1499_v60 = vsel %vm1428_vm9, %v2835_v27, %v1359_v58  ;;  %vm729_vm13 = vcmp.eq.s32.totalorder %v4946_v51, 3  ;;  %vm869_vm14 = vcmp.eq.s32.totalorder %v4946_v51, 4 }
 0x1dd   : > { %v520_v61 = vsel %vm449_vm12, %v2756_v4, %v380_v59  ;;  %v1639_v62 = vsel %vm1568_vm1, %v2844_v30, %v1499_v60  ;;  %vm1988_vm7 = vcmp.eq.s32.totalorder %v4910_v32, 12  ;;  %vm1009_vm6 = vcmp.eq.s32.totalorder %v4946_v51, 5 }
 0x1de   : > { %v660_v63 = vsel %vm589_vm5, %v2768_v7, %v520_v61  ;;  %v1779_v0 = vsel %vm1708_vm2, %v2853_v34, %v1639_v62  ;;  %vm2128_vm4 = vcmp.eq.s32.totalorder %v4910_v32, 13  ;;  %vm1149_vm8 = vcmp.eq.s32.totalorder %v4946_v51, 6  ;;  %v5090_v61 = vld [vmem:[%s2711_s28 + $0x200] sm:$0xff] }
 0x1df   : > { %v800_v1 = vsel %vm729_vm13, %v2781_v10, %v660_v63  ;;  %v1919_v5 = vsel %vm1848_vm3, %v2862_v37, %v1779_v0  ;;  %vm1289_vm11 = vcmp.eq.s32.totalorder %v4946_v51, 7  ;;  %vm1429_vm15 = vcmp.eq.s32.totalorder %v4946_v51, 8 }
 0x1e0   : > { %v940_v6 = vsel %vm869_vm14, %v2795_v14, %v800_v1  ;;  %v2059_v8 = vsel %vm1988_vm7, %v2871_v41, %v1919_v5  ;;  %vm1569_vm0 = vcmp.eq.s32.totalorder %v4946_v51, 9  ;;  %vm1709_vm9 = vcmp.eq.s32.totalorder %v4946_v51, 10 }
 0x1e1   : > { %v1080_v9 = vsel %vm1009_vm6, %v2805_v17, %v940_v6  ;;  %v2199_v11 = vsel %vm2128_vm4, %v2880_v44, %v2059_v8  ;;  %vm1849_vm1 = vcmp.eq.s32.totalorder %v4946_v51, 11  ;;  %vm310_vm2 = vcmp.eq.s32.totalorder %v4982_v3, 0 }
 0x1e2   : > { %v1220_v12 = vsel %vm1149_vm8, %v2815_v20, %v1080_v9  ;;  %2268 = vst [vmem:[%s2899_s3 + $0x1d8] sm:$0xff] %v2199_v11  ;;  %v381_v15 = vsel %vm310_vm2, %v2745_v2, 0.0  ;;  %vm450_vm3 = vcmp.eq.s32.totalorder %v4982_v3, 1  ;;  %vm590_vm10 = vcmp.eq.s32.totalorder %v4982_v3, 2 }
 0x1e3   : > { %v1360_v13 = vsel %vm1289_vm11, %v2825_v23, %v1220_v12  ;;  %v521_v18 = vsel %vm450_vm3, %v2756_v4, %v381_v15  ;;  %vm730_vm12 = vcmp.eq.s32.totalorder %v4982_v3, 3  ;;  %vm870_vm5 = vcmp.eq.s32.totalorder %v4982_v3, 4 }
 0x1e4   : > { %v1500_v16 = vsel %vm1429_vm15, %v2835_v27, %v1360_v13  ;;  %vm1989_vm13 = vcmp.eq.s32.totalorder %v4946_v51, 12  ;;  %v661_v21 = vsel %vm590_vm10, %v2768_v7, %v521_v18  ;;  %vm1010_vm14 = vcmp.eq.s32.totalorder %v4982_v3, 5  ;;  %v5126_v18 = vld [vmem:[%s2711_s28 + $0x208] sm:$0xff] }
 0x1e5   : > { %v1640_v19 = vsel %vm1569_vm0, %v2844_v30, %v1500_v16  ;;  %vm2129_vm7 = vcmp.eq.s32.totalorder %v4946_v51, 13  ;;  %v801_v24 = vsel %vm730_vm12, %v2781_v10, %v661_v21  ;;  %vm1150_vm6 = vcmp.eq.s32.totalorder %v4982_v3, 6 }
 0x1e6   : > { %v1780_v22 = vsel %vm1709_vm9, %v2853_v34, %v1640_v19  ;;  %v941_v28 = vsel %vm870_vm5, %v2795_v14, %v801_v24  ;;  %vm1290_vm4 = vcmp.eq.s32.totalorder %v4982_v3, 7  ;;  %vm1430_vm8 = vcmp.eq.s32.totalorder %v4982_v3, 8 }
 0x1e7   : > { %v1920_v26 = vsel %vm1849_vm1, %v2862_v37, %v1780_v22  ;;  %v1081_v31 = vsel %vm1010_vm14, %v2805_v17, %v941_v28  ;;  %vm1570_vm11 = vcmp.eq.s32.totalorder %v4982_v3, 9  ;;  %vm1710_vm15 = vcmp.eq.s32.totalorder %v4982_v3, 10 }
 0x1e8   : > { %v2060_v29 = vsel %vm1989_vm13, %v2871_v41, %v1920_v26  ;;  %v1221_v33 = vsel %vm1150_vm6, %v2815_v20, %v1081_v31  ;;  %vm1850_vm0 = vcmp.eq.s32.totalorder %v4982_v3, 11  ;;  %vm311_vm9 = vcmp.eq.s32.totalorder %v5018_v25, 0 }
 0x1e9   : > { %v2200_v32 = vsel %vm2129_vm7, %v2880_v44, %v2060_v29  ;;  %v1361_v35 = vsel %vm1290_vm4, %v2825_v23, %v1221_v33  ;;  %v382_v36 = vsel %vm311_vm9, %v2745_v2, 0.0  ;;  %vm451_vm1 = vcmp.eq.s32.totalorder %v5018_v25, 1 }
 0x1ea   : > { %2269 = vst [vmem:[%s2899_s3 + $0x1e0] sm:$0xff] %v2200_v32  ;;  %vm591_vm2 = vcmp.eq.s32.totalorder %v5018_v25, 2  ;;  %v1501_v38 = vsel %vm1430_vm8, %v2835_v27, %v1361_v35  ;;  %v522_v39 = vsel %vm451_vm1, %v2756_v4, %v382_v36  ;;  %vm731_vm3 = vcmp.eq.s32.totalorder %v5018_v25, 3 }
 0x1eb   : > { %vm871_vm10 = vcmp.eq.s32.totalorder %v5018_v25, 4  ;;  %v1641_v40 = vsel %vm1570_vm11, %v2844_v30, %v1501_v38  ;;  %vm1990_vm12 = vcmp.eq.s32.totalorder %v4982_v3, 12  ;;  %v662_v42 = vsel %vm591_vm2, %v2768_v7, %v522_v39  ;;  %v5162_v39 = vld [vmem:[%s2711_s28 + $0x210] sm:$0xff] }
 0x1ec   : > { %vm1011_vm5 = vcmp.eq.s32.totalorder %v5018_v25, 5  ;;  %v1781_v43 = vsel %vm1710_vm15, %v2853_v34, %v1641_v40  ;;  %vm2130_vm13 = vcmp.eq.s32.totalorder %v4982_v3, 13  ;;  %v802_v45 = vsel %vm731_vm3, %v2781_v10, %v662_v42 }
 0x1ed   : > { %vm1151_vm14 = vcmp.eq.s32.totalorder %v5018_v25, 6  ;;  %v1921_v47 = vsel %vm1850_vm0, %v2862_v37, %v1781_v43  ;;  %v942_v48 = vsel %vm871_vm10, %v2795_v14, %v802_v45  ;;  %vm1291_vm7 = vcmp.eq.s32.totalorder %v5018_v25, 7 }
 0x1ee   : > { %vm1431_vm6 = vcmp.eq.s32.totalorder %v5018_v25, 8  ;;  %v2061_v49 = vsel %vm1990_vm12, %v2871_v41, %v1921_v47  ;;  %v1082_v50 = vsel %vm1011_vm5, %v2805_v17, %v942_v48  ;;  %vm1571_vm4 = vcmp.eq.s32.totalorder %v5018_v25, 9 }
 0x1ef   : > { %vm1711_vm8 = vcmp.eq.s32.totalorder %v5018_v25, 10  ;;  %v2201_v51 = vsel %vm2130_vm13, %v2880_v44, %v2061_v49  ;;  %v1222_v52 = vsel %vm1151_vm14, %v2815_v20, %v1082_v50  ;;  %vm1851_vm11 = vcmp.eq.s32.totalorder %v5018_v25, 11 }
 0x1f0   : > { %vm312_vm15 = vcmp.eq.s32.totalorder %v5054_v46, 0  ;;  %2270 = vst [vmem:[%s2899_s3 + $0x1e8] sm:$0xff] %v2201_v51  ;;  %v1362_v53 = vsel %vm1291_vm7, %v2825_v23, %v1222_v52  ;;  %vm452_vm0 = vcmp.eq.s32.totalorder %v5054_v46, 1  ;;  %vm592_vm9 = vcmp.eq.s32.totalorder %v5054_v46, 2 }
 0x1f1   : > { %v383_v54 = vsel %vm312_vm15, %v2745_v2, 0.0  ;;  %v1502_v55 = vsel %vm1431_vm6, %v2835_v27, %v1362_v53  ;;  %vm732_vm1 = vcmp.eq.s32.totalorder %v5054_v46, 3  ;;  %vm872_vm2 = vcmp.eq.s32.totalorder %v5054_v46, 4 }
 0x1f2   : > { %v523_v56 = vsel %vm452_vm0, %v2756_v4, %v383_v54  ;;  %v1642_v57 = vsel %vm1571_vm4, %v2844_v30, %v1502_v55  ;;  %vm1991_vm3 = vcmp.eq.s32.totalorder %v5018_v25, 12  ;;  %vm1012_vm10 = vcmp.eq.s32.totalorder %v5054_v46, 5 }
 0x1f3   : > { %v663_v58 = vsel %vm592_vm9, %v2768_v7, %v523_v56  ;;  %v1782_v59 = vsel %vm1711_vm8, %v2853_v34, %v1642_v57  ;;  %vm2131_vm12 = vcmp.eq.s32.totalorder %v5018_v25, 13  ;;  %vm1152_vm5 = vcmp.eq.s32.totalorder %v5054_v46, 6  ;;  %v5198_v56 = vld [vmem:[%s2711_s28 + $0x218] sm:$0xff] }
 0x1f4   : > { %v803_v60 = vsel %vm732_vm1, %v2781_v10, %v663_v58  ;;  %v1922_v62 = vsel %vm1851_vm11, %v2862_v37, %v1782_v59  ;;  %vm1292_vm13 = vcmp.eq.s32.totalorder %v5054_v46, 7  ;;  %vm1432_vm14 = vcmp.eq.s32.totalorder %v5054_v46, 8 }
 0x1f5   : > { %v943_v63 = vsel %vm872_vm2, %v2795_v14, %v803_v60  ;;  %v2062_v0 = vsel %vm1991_vm3, %v2871_v41, %v1922_v62  ;;  %vm1572_vm7 = vcmp.eq.s32.totalorder %v5054_v46, 9  ;;  %vm1712_vm6 = vcmp.eq.s32.totalorder %v5054_v46, 10 }
 0x1f6   : > { %v1083_v1 = vsel %vm1012_vm10, %v2805_v17, %v943_v63  ;;  %v2202_v3 = vsel %vm2131_vm12, %v2880_v44, %v2062_v0  ;;  %vm1852_vm4 = vcmp.eq.s32.totalorder %v5054_v46, 11  ;;  %vm313_vm8 = vcmp.eq.s32.totalorder %v5090_v61, 0 }
 0x1f7   : > { %v1223_v5 = vsel %vm1152_vm5, %v2815_v20, %v1083_v1  ;;  %2271 = vst [vmem:[%s2899_s3 + $0x1f0] sm:$0xff] %v2202_v3  ;;  %v384_v8 = vsel %vm313_vm8, %v2745_v2, 0.0  ;;  %vm453_vm11 = vcmp.eq.s32.totalorder %v5090_v61, 1  ;;  %vm593_vm15 = vcmp.eq.s32.totalorder %v5090_v61, 2 }
 0x1f8   : > { %v1363_v6 = vsel %vm1292_vm13, %v2825_v23, %v1223_v5  ;;  %v524_v11 = vsel %vm453_vm11, %v2756_v4, %v384_v8  ;;  %vm733_vm0 = vcmp.eq.s32.totalorder %v5090_v61, 3  ;;  %vm873_vm9 = vcmp.eq.s32.totalorder %v5090_v61, 4 }
 0x1f9   : > { %v1503_v9 = vsel %vm1432_vm14, %v2835_v27, %v1363_v6  ;;  %vm1992_vm1 = vcmp.eq.s32.totalorder %v5054_v46, 12  ;;  %v664_v13 = vsel %vm593_vm15, %v2768_v7, %v524_v11  ;;  %vm1013_vm2 = vcmp.eq.s32.totalorder %v5090_v61, 5  ;;  %v248_v11 = vld [vmem:[%s2711_s28 + $0x220] sm:$0xff]  ;;  %s2290_s28 = scalar_lea.hbm %s5315_s2, %s2403_s6 }
 0x1fa   : > { %v1643_v12 = vsel %vm1572_vm7, %v2844_v30, %v1503_v9  ;;  %vm2132_vm3 = vcmp.eq.s32.totalorder %v5054_v46, 13  ;;  %v804_v16 = vsel %vm733_vm0, %v2781_v10, %v664_v13  ;;  %vm1153_vm10 = vcmp.eq.s32.totalorder %v5090_v61, 6  ;;  %s2293_s5 = sshll.u32 %s2290_s28, 4  ;;  %s2294_s5 = int_to_ptr.hbm [resolvable:$true] %s2293_s5 }
 0x1fb   : > { %v1783_v15 = vsel %vm1712_vm6, %v2853_v34, %v1643_v12  ;;  %v944_v21 = vsel %vm873_vm9, %v2795_v14, %v804_v16  ;;  %vm1293_vm12 = vcmp.eq.s32.totalorder %v5090_v61, 7  ;;  %vm1433_vm5 = vcmp.eq.s32.totalorder %v5090_v61, 8  ;;  %s2526_s20 = sshra.s32 %s2294_s5, 4  ;;  %s2527_s20 = int_to_ptr.hbm [resolvable:$true] %s2526_s20 }
 0x1fc   : > { %v1923_v19 = vsel %vm1852_vm4, %v2862_v37, %v1783_v15  ;;  %v1084_v24 = vsel %vm1013_vm2, %v2805_v17, %v944_v21  ;;  %vm1573_vm13 = vcmp.eq.s32.totalorder %v5090_v61, 9  ;;  %vm1713_vm14 = vcmp.eq.s32.totalorder %v5090_v61, 10  ;;  %s2528_s14 = scalar_lea.hbm %s2527_s20, 552  ;;  %p2533_p0 = scmp.lt.s32.totalorder %s2527_s20, %s5315_s2 }
 0x1fd   : > { %v2063_v22 = vsel %vm1992_vm1, %v2871_v41, %v1923_v19  ;;  %v1224_v26 = vsel %vm1153_vm10, %v2815_v20, %v1084_v24  ;;  %vm1853_vm7 = vcmp.eq.s32.totalorder %v5090_v61, 11  ;;  %vm314_vm6 = vcmp.eq.s32.totalorder %v5126_v18, 0  ;;  %p2529_p4 = scmp.ne.s32.totalorder %s2527_s20, %s2528_s14  ;;  %p2534_p3 = scmp.lt.s32.totalorder %s2532_s19, %s2528_s14 }
 0x1fe   : > { %v2203_v25 = vsel %vm2132_vm3, %v2880_v44, %v2063_v22  ;;  %v1364_v28 = vsel %vm1293_vm12, %v2825_v23, %v1224_v26  ;;  %v385_v29 = vsel %vm314_vm6, %v2745_v2, 0.0  ;;  %vm454_vm4 = vcmp.eq.s32.totalorder %v5126_v18, 1 }
 0x1ff   : > { %2272 = vst [vmem:[%s2899_s3 + $0x1f8] sm:$0xff] %v2203_v25  ;;  %vm594_vm8 = vcmp.eq.s32.totalorder %v5126_v18, 2  ;;  %v1504_v31 = vsel %vm1433_vm5, %v2835_v27, %v1364_v28  ;;  %v525_v32 = vsel %vm454_vm4, %v2756_v4, %v385_v29  ;;  %vm734_vm11 = vcmp.eq.s32.totalorder %v5126_v18, 3  ;;  %p2530_p6 = pnand %p2529_p4, %p2656_p11  ;;  %p2535_p5 = por %p2534_p3, %p2533_p0 }
 0x200   : > { %vm874_vm15 = vcmp.eq.s32.totalorder %v5126_v18, 4  ;;  %v1644_v33 = vsel %vm1573_vm13, %v2844_v30, %v1504_v31  ;;  %vm1993_vm0 = vcmp.eq.s32.totalorder %v5090_v61, 12  ;;  %v665_v35 = vsel %vm594_vm8, %v2768_v7, %v525_v32 }
 0x201   : > { %vm1014_vm9 = vcmp.eq.s32.totalorder %v5126_v18, 5  ;;  %v1784_v36 = vsel %vm1713_vm14, %v2853_v34, %v1644_v33  ;;  %vm2133_vm1 = vcmp.eq.s32.totalorder %v5090_v61, 13  ;;  %v805_v38 = vsel %vm734_vm11, %v2781_v10, %v665_v35  ;;  %p2531_p13 = pneg %p2530_p6 }
 0x202   : > { %vm1154_vm2 = vcmp.eq.s32.totalorder %v5126_v18, 6  ;;  %v1924_v40 = vsel %vm1853_vm7, %v2862_v37, %v1784_v36  ;;  %v945_v42 = vsel %vm874_vm15, %v2795_v14, %v805_v38  ;;  %vm1294_vm3 = vcmp.eq.s32.totalorder %v5126_v18, 7 }
 0x203   : > { %vm1434_vm10 = vcmp.eq.s32.totalorder %v5126_v18, 8  ;;  %v2064_v43 = vsel %vm1993_vm0, %v2871_v41, %v1924_v40  ;;  %v1085_v45 = vsel %vm1014_vm9, %v2805_v17, %v945_v42  ;;  %vm1574_vm12 = vcmp.eq.s32.totalorder %v5126_v18, 9  ;;  %p2536_p8 = pnand %p2535_p5, %p2531_p13 }
 0x204   : > { %vm1714_vm5 = vcmp.eq.s32.totalorder %v5126_v18, 10  ;;  %v2204_v46 = vsel %vm2133_vm1, %v2880_v44, %v2064_v43  ;;  %v1225_v47 = vsel %vm1154_vm2, %v2815_v20, %v1085_v45  ;;  %vm1854_vm13 = vcmp.eq.s32.totalorder %v5126_v18, 11 }
 0x205   : > { %vm315_vm14 = vcmp.eq.s32.totalorder %v5162_v39, 0  ;;  %2273 = vst [vmem:[%s2899_s3 + $0x200] sm:$0xff] %v2204_v46  ;;  %v1365_v48 = vsel %vm1294_vm3, %v2825_v23, %v1225_v47  ;;  %vm455_vm7 = vcmp.eq.s32.totalorder %v5162_v39, 1  ;;  %vm595_vm6 = vcmp.eq.s32.totalorder %v5162_v39, 2 }
 0x206   : > { %v386_v49 = vsel %vm315_vm14, %v2745_v2, 0.0  ;;  %v1505_v50 = vsel %vm1434_vm10, %v2835_v27, %v1365_v48  ;;  %vm735_vm4 = vcmp.eq.s32.totalorder %v5162_v39, 3  ;;  %vm875_vm8 = vcmp.eq.s32.totalorder %v5162_v39, 4 }
 0x207   : > { %v526_v51 = vsel %vm455_vm7, %v2756_v4, %v386_v49  ;;  %v1645_v52 = vsel %vm1574_vm12, %v2844_v30, %v1505_v50  ;;  %vm1994_vm11 = vcmp.eq.s32.totalorder %v5126_v18, 12  ;;  %vm1015_vm15 = vcmp.eq.s32.totalorder %v5162_v39, 5 }
 0x208   : > { %v666_v53 = vsel %vm595_vm6, %v2768_v7, %v526_v51  ;;  %v1785_v54 = vsel %vm1714_vm5, %v2853_v34, %v1645_v52  ;;  %vm2134_vm0 = vcmp.eq.s32.totalorder %v5126_v18, 13  ;;  %vm1155_vm9 = vcmp.eq.s32.totalorder %v5162_v39, 6 }
 0x209   : > { %v806_v55 = vsel %vm735_vm4, %v2781_v10, %v666_v53  ;;  %v1925_v57 = vsel %vm1854_vm13, %v2862_v37, %v1785_v54  ;;  %vm1295_vm1 = vcmp.eq.s32.totalorder %v5162_v39, 7  ;;  %vm1435_vm2 = vcmp.eq.s32.totalorder %v5162_v39, 8 }
 0x20a   : > { %v946_v58 = vsel %vm875_vm8, %v2795_v14, %v806_v55  ;;  %v2065_v59 = vsel %vm1994_vm11, %v2871_v41, %v1925_v57  ;;  %vm1575_vm3 = vcmp.eq.s32.totalorder %v5162_v39, 9  ;;  %vm1715_vm10 = vcmp.eq.s32.totalorder %v5162_v39, 10 }
 0x20b   : > { %v1086_v60 = vsel %vm1015_vm15, %v2805_v17, %v946_v58  ;;  %v2205_v61 = vsel %vm2134_vm0, %v2880_v44, %v2065_v59  ;;  %vm1855_vm12 = vcmp.eq.s32.totalorder %v5162_v39, 11  ;;  %vm316_vm5 = vcmp.eq.s32.totalorder %v5198_v56, 0 }
 0x20c   : > { %v1226_v62 = vsel %vm1155_vm9, %v2815_v20, %v1086_v60  ;;  %2274 = vst [vmem:[%s2899_s3 + $0x208] sm:$0xff] %v2205_v61  ;;  %v387_v0 = vsel %vm316_vm5, %v2745_v2, 0.0  ;;  %vm456_vm13 = vcmp.eq.s32.totalorder %v5198_v56, 1  ;;  %vm596_vm14 = vcmp.eq.s32.totalorder %v5198_v56, 2 }
 0x20d   : > { %v1366_v63 = vsel %vm1295_vm1, %v2825_v23, %v1226_v62  ;;  %v527_v3 = vsel %vm456_vm13, %v2756_v4, %v387_v0  ;;  %vm736_vm7 = vcmp.eq.s32.totalorder %v5198_v56, 3  ;;  %vm876_vm6 = vcmp.eq.s32.totalorder %v5198_v56, 4 }
 0x20e   : > { %v1506_v1 = vsel %vm1435_vm2, %v2835_v27, %v1366_v63  ;;  %vm1995_vm4 = vcmp.eq.s32.totalorder %v5162_v39, 12  ;;  %v667_v6 = vsel %vm596_vm14, %v2768_v7, %v527_v3  ;;  %vm1016_vm8 = vcmp.eq.s32.totalorder %v5198_v56, 5 }
 0x20f   : > { %v1646_v5 = vsel %vm1575_vm3, %v2844_v30, %v1506_v1  ;;  %vm2135_vm11 = vcmp.eq.s32.totalorder %v5162_v39, 13  ;;  %v807_v9 = vsel %vm736_vm7, %v2781_v10, %v667_v6  ;;  %vm1156_vm15 = vcmp.eq.s32.totalorder %v5198_v56, 6 }
 0x210   : > { %v1786_v8 = vsel %vm1715_vm10, %v2853_v34, %v1646_v5  ;;  %v947_v13 = vsel %vm876_vm6, %v2795_v14, %v807_v9  ;;  %vm1296_vm0 = vcmp.eq.s32.totalorder %v5198_v56, 7  ;;  %vm1436_vm9 = vcmp.eq.s32.totalorder %v5198_v56, 8 }
 0x211   : > { %v1926_v12 = vsel %vm1855_vm12, %v2862_v37, %v1786_v8  ;;  %v1087_v16 = vsel %vm1016_vm8, %v2805_v17, %v947_v13  ;;  %vm1576_vm1 = vcmp.eq.s32.totalorder %v5198_v56, 9  ;;  %vm1716_vm2 = vcmp.eq.s32.totalorder %v5198_v56, 10 }
 0x212   : > { %v2066_v15 = vsel %vm1995_vm4, %v2871_v41, %v1926_v12  ;;  %v1227_v19 = vsel %vm1156_vm15, %v2815_v20, %v1087_v16  ;;  %vm1856_vm3 = vcmp.eq.s32.totalorder %v5198_v56, 11  ;;  %vm317_vm10 = vcmp.eq.s32.totalorder %v248_v11, 0 }
 0x213   : > { %v2206_v18 = vsel %vm2135_vm11, %v2880_v44, %v2066_v15  ;;  %v1367_v21 = vsel %vm1296_vm0, %v2825_v23, %v1227_v19  ;;  %v388_v22 = vsel %vm317_vm10, %v2745_v2, 0.0  ;;  %vm457_vm12 = vcmp.eq.s32.totalorder %v248_v11, 1 }
 0x214   : > { %2275 = vst [vmem:[%s2899_s3 + $0x210] sm:$0xff] %v2206_v18  ;;  %vm597_vm5 = vcmp.eq.s32.totalorder %v248_v11, 2  ;;  %v1507_v24 = vsel %vm1436_vm9, %v2835_v27, %v1367_v21  ;;  %v528_v25 = vsel %vm457_vm12, %v2756_v4, %v388_v22  ;;  %vm737_vm13 = vcmp.eq.s32.totalorder %v248_v11, 3 }
 0x215   : > { %vm877_vm14 = vcmp.eq.s32.totalorder %v248_v11, 4  ;;  %v1647_v26 = vsel %vm1576_vm1, %v2844_v30, %v1507_v24  ;;  %vm1996_vm7 = vcmp.eq.s32.totalorder %v5198_v56, 12  ;;  %v668_v28 = vsel %vm597_vm5, %v2768_v7, %v528_v25 }
 0x216   : > { %vm1017_vm6 = vcmp.eq.s32.totalorder %v248_v11, 5  ;;  %v1787_v2 = vsel %vm1716_vm2, %v2853_v34, %v1647_v26  ;;  %vm2136_vm4 = vcmp.eq.s32.totalorder %v5198_v56, 13  ;;  %v808_v4 = vsel %vm737_vm13, %v2781_v10, %v668_v28 }
 0x217   : > { %vm1157_vm8 = vcmp.eq.s32.totalorder %v248_v11, 6  ;;  %v1927_v29 = vsel %vm1856_vm3, %v2862_v37, %v1787_v2  ;;  %v948_v31 = vsel %vm877_vm14, %v2795_v14, %v808_v4  ;;  %vm1297_vm11 = vcmp.eq.s32.totalorder %v248_v11, 7 }
 0x218   : > { %v2067_v7 = vsel %vm1996_vm7, %v2871_v41, %v1927_v29  ;;  %v1088_v32 = vsel %vm1017_vm6, %v2805_v17, %v948_v31  ;;  %vm1437_vm15 = vcmp.eq.s32.totalorder %v248_v11, 8  ;;  %vm1577_vm0 = vcmp.eq.s32.totalorder %v248_v11, 9 }
 0x219   : > { %v2207_v10 = vsel %vm2136_vm4, %v2880_v44, %v2067_v7  ;;  %v1228_v33 = vsel %vm1157_vm8, %v2815_v20, %v1088_v32  ;;  %vm1717_vm9 = vcmp.eq.s32.totalorder %v248_v11, 10  ;;  %vm1857_vm1 = vcmp.eq.s32.totalorder %v248_v11, 11 }
 0x21a   : > { %2276 = vst [vmem:[%s2899_s3 + $0x218] sm:$0xff] %v2207_v10  ;;  %v1368_v35 = vsel %vm1297_vm11, %v2825_v23, %v1228_v33  ;;  %vm1997_vm2 = vcmp.eq.s32.totalorder %v248_v11, 12  ;;  %vm2137_vm3 = vcmp.eq.s32.totalorder %v248_v11, 13 }
 0x21b   : > { %v1508_v14 = vsel %vm1437_vm15, %v2835_v27, %v1368_v35 }
 0x21c   : > { %v1648_v17 = vsel %vm1577_vm0, %v2844_v30, %v1508_v14 }
 0x21d   : > { %v1788_v36 = vsel %vm1717_vm9, %v2853_v34, %v1648_v17 }
 0x21e   : > { %v1928_v20 = vsel %vm1857_vm1, %v2862_v37, %v1788_v36 }
 0x21f   : > { %v2068_v23 = vsel %vm1997_vm2, %v2871_v41, %v1928_v20 }
 0x220   : > { %v2208_v38 = vsel %vm2137_vm3, %v2880_v44, %v2068_v23 }
 0x221   : > { %2277 = vst [vmem:[%s2899_s3 + $0x220] sm:$0xff] %v2208_v38 }
 0x222   : > { %2539 = shalt.err (!%p2536_p8)
}
 0x223   : > { %s2587_s4 = smov 128   ;;  %s2588_s26 = smov 8  }
 0x224   : > { %2412 = dma.vmem_to_hbm [thread:$0]  (%p2656_p11), %s2292_s23, 8832, %s2294_s5, %s2279_s8, %s2587_s4, %s2587_s4, %s2588_s26  }
 0x225 PF: > { %s2308_s29 = sand.u32 1, %s2570_s9   ;;  %p5329_p9 = scmp.ge.s32.totalorder %s2582_s12, 2 }
 0x226   : > { %s2309_s30 = scalar_lea.sflag [#allocation4], %s2308_s29 }
 0x227   : > { %p2423_p10 = pnand %p5329_p9, %p2660_p12 }
 0x229   : > { %p2424_p1 = pneg %p2423_p10 }
 0x22b   : > { %2565 = dma.done.wait (%p2424_p1), %s2309_s30, 8832  }
 0x22c   : > { %2567 = vsyncadd (%p2424_p1), %s2309_s30, 4294958464  ;;  %p16_p2 = scmp.ge.s32.totalorder %s2629_s15, 4   ;;  %s5330_s9 = smov %s2574_s10 }
 0x22d   : > { %s5331_s10 = smov %s2578_s11  ;;  %s5332_s11 = smov %s2641_s18 }
 0x22e   : > { %s5333_s12 = smov %s2629_s15  ;;  %18 = sbr.rel (!%p16_p2) target bundleno = 6 (0x6), region = 78 }
 0x233   :  { %2315 = vsyncpa [#allocation3], 1 }
 0x234   :  { %2317 = vsyncpa [#allocation3 + $0x1], 1 }
 0x235   :  { %2318 = vsyncpa [#allocation4], 1 }
 0x236   :  { %2320 = vsyncpa [#allocation4 + $0x1], 1 }
 0x237   :  { %2321 = vsyncpa [#allocation5], 1 }
 0x238   :  { %2323 = vsyncpa [#allocation5 + $0x1], 1 }

</bundles_post_ra>
